<compile_context>
chip_gen: v7x
topology: tpu7x:2x2x1
jax: 0.10.0
libtpu: 0.0.40
codegen_flags: <defaults>
</compile_context>

<pallas_src>
import functools

import jax
import jax.numpy as jnp
from jax.experimental import pallas as pl
from jax.experimental.pallas import tpu as pltpu


# ----------------------------------------------------------------------------
# Fused whole-network Pallas kernel (one batch element per grid step)
# ----------------------------------------------------------------------------
def _mcnn_col2_kernel(x_ref,
                      g1e_ref, g1o_ref, s1_ref, t1_ref,
                      g2e_ref, g2o_ref, t2_ref,
                      g3_ref, t3_ref,
                      g4_ref, t4_ref,
                      g5_ref, t5_ref,
                      o_ref,
                      a1, a2, a3, a4, *, H, W):
    """Activations live in a row-buffer layout A[r, x*C + c] (rows in sublanes,
    (x, channel) packed in lanes).  Each conv is k matmuls
    A[dy:dy+H_out, :] @ G[dy] accumulated in f32; dx taps, Cin and horizontal
    'same' padding are folded into G on the host.  Pooled layers use
    even/odd-column-split G so the 2x2 max-pool is pure elementwise maxima."""
    f32 = jnp.float32
    H2, W2 = H // 2, W // 2
    H4, W4 = H // 4, W // 4

    # Stage the input image into a vertically zero-padded row buffer
    # (horizontal zero padding is baked into the band matrices).
    a1[...] = jnp.zeros((H + 6, W), f32)
    a1[3:3 + H, :] = x_ref[...]

    # ---- conv1 7x7 (1->20) + BatchNorm + ReLU + 2x2 max-pool ----------------
    # (Dropout2d(0.3) is identity in eval mode.)
    acc_e = jnp.zeros((H, W2 * 20), f32)
    acc_o = jnp.zeros((H, W2 * 20), f32)
    for dy in range(7):
        lhs = a1[dy:dy + H, :]
        acc_e = acc_e + jnp.dot(lhs, g1e_ref[dy], preferred_element_type=f32)
        acc_o = acc_o + jnp.dot(lhs, g1o_ref[dy], preferred_element_type=f32)
    y_e = jnp.maximum(acc_e * s1_ref[...] + t1_ref[...], 0.0)
    y_o = jnp.maximum(acc_o * s1_ref[...] + t1_ref[...], 0.0)
    y = jnp.maximum(y_e, y_o)                    # horizontal max (even vs odd x)
    y = y.reshape(H2, 2, W2 * 20)
    y = jnp.maximum(y[:, 0, :], y[:, 1, :])      # vertical max -> (H2, W2*20)

    a2[...] = jnp.zeros((H2 + 4, W2 * 20), f32)
    a2[2:2 + H2, :] = y

    # ---- conv2 5x5 (20->40) + ReLU + 2x2 max-pool ---------------------------
    acc_e = jnp.zeros((H2, W4 * 40), f32)
    acc_o = jnp.zeros((H2, W4 * 40), f32)
    for dy in range(5):
        lhs = a2[dy:dy + H2, :]
        acc_e = acc_e + jnp.dot(lhs, g2e_ref[dy], preferred_element_type=f32)
        acc_o = acc_o + jnp.dot(lhs, g2o_ref[dy], preferred_element_type=f32)
    y_e = jnp.maximum(acc_e + t2_ref[...], 0.0)
    y_o = jnp.maximum(acc_o + t2_ref[...], 0.0)
    y = jnp.maximum(y_e, y_o)
    y = y.reshape(H4, 2, W4 * 40)
    y = jnp.maximum(y[:, 0, :], y[:, 1, :])      # (H4, W4*40)

    a3[...] = jnp.zeros((H4 + 4, W4 * 40), f32)
    a3[2:2 + H4, :] = y

    # ---- conv3 5x5 (40->20) + ReLU ------------------------------------------
    acc = jnp.zeros((H4, W4 * 20), f32)
    for dy in range(5):
        acc = acc + jnp.dot(a3[dy:dy + H4, :], g3_ref[dy],
                            preferred_element_type=f32)
    y = jnp.maximum(acc + t3_ref[...], 0.0)

    a4[...] = jnp.zeros((H4 + 4, W4 * 20), f32)
    a4[2:2 + H4, :] = y

    # ---- conv4 5x5 (20->10) + ReLU, fused conv5 1x1 (10->1) -----------------
    acc = jnp.zeros((H4, W4 * 10), f32)
    for dy in range(5):
        acc = acc + jnp.dot(a4[dy:dy + H4, :], g4_ref[dy],
                            preferred_element_type=f32)
    y = jnp.maximum(acc + t4_ref[...], 0.0)

    o_ref[...] = (jnp.dot(y, g5_ref[...], preferred_element_type=f32)
                  + t5_ref[...])


# ----------------------------------------------------------------------------
# Host-side parameter layout helpers
# ----------------------------------------------------------------------------
def _band_weights(w, w_in):
    """PyTorch conv weight (Cout, Cin, k, k), stride 1, padding k//2 ('same').

    Returns G of shape (k, w_in*Cin, w_in*Cout) such that, for a row buffer
    A[r, x*Cin + c] (vertically zero-padded by k//2 rows):
        conv_out[y, x*Cout + co] = sum_dy (A[y+dy, :] @ G[dy])[x*Cout + co]
    i.e. the dx taps, Cin and the horizontal zero padding are all folded into
    the matmul contraction dimension."""
    w = jnp.asarray(w, jnp.float32)
    cout, cin, k, _ = w.shape
    p = k // 2
    wt = jnp.transpose(w, (2, 3, 1, 0))               # (k, k, Cin, Cout)
    x_in = jnp.arange(w_in)[:, None]                  # input column xx
    x_out = jnp.arange(w_in)[None, :]                 # output column x
    dx = x_in - x_out + p                             # (w_in, w_in)
    valid = (dx >= 0) & (dx < k)
    g = wt[:, jnp.clip(dx, 0, k - 1)]                 # (k, xx, x, Cin, Cout)
    g = jnp.where(valid[None, :, :, None, None], g, 0.0)
    g = jnp.transpose(g, (0, 1, 3, 2, 4))             # (k, xx, Cin, x, Cout)
    return g.reshape(k, w_in * cin, w_in * cout)


def _split_cols_even_odd(g, w_out, cout):
    """Column-split a band matrix by output-x parity (fused 2x2 max-pool)."""
    k, kdim, _ = g.shape
    g = g.reshape(k, kdim, w_out, cout)
    g_e = g[:, :, 0::2, :].reshape(k, kdim, (w_out // 2) * cout)
    g_o = g[:, :, 1::2, :].reshape(k, kdim, (w_out // 2) * cout)
    return g_e, g_o


def _tile_row(v, reps):
    """Per-channel vector -> (1, reps*C) row matching the A[r, x*C+c] layout."""
    return jnp.tile(jnp.asarray(v, jnp.float32).reshape(-1), reps)[None, :]


def init_params(key):
    """Matches the module init: Normal(0, 0.1) conv weights, zero bias,
    default BatchNorm params (gamma=1, beta=0, running_mean=0, running_var=1)."""
    def conv_w(k, cout, cin, ksz):
        return 0.1 * jax.random.normal(k, (cout, cin, ksz, ksz), jnp.float32)

    k1, k2, k3, k4, k5 = jax.random.split(key, 5)
    return {
        "w1": conv_w(k1, 20, 1, 7), "b1": jnp.zeros((20,), jnp.float32),
        "bn_gamma": jnp.ones((20,), jnp.float32),
        "bn_beta": jnp.zeros((20,), jnp.float32),
        "bn_mean": jnp.zeros((20,), jnp.float32),
        "bn_var": jnp.ones((20,), jnp.float32),
        "w2": conv_w(k2, 40, 20, 5), "b2": jnp.zeros((40,), jnp.float32),
        "w3": conv_w(k3, 20, 40, 5), "b3": jnp.zeros((20,), jnp.float32),
        "w4": conv_w(k4, 10, 20, 5), "b4": jnp.zeros((10,), jnp.float32),
        "w5": conv_w(k5, 1, 10, 1), "b5": jnp.zeros((1,), jnp.float32),
    }


# ----------------------------------------------------------------------------
# Forward pass (eval semantics: Dropout2d = identity, BN uses running stats)
# ----------------------------------------------------------------------------
def mcnn_col2_forward(params, im_data):
    x = jnp.asarray(im_data, jnp.float32)
    N, cin, H, W = x.shape
    assert cin == 1 and H % 4 == 0 and W % 4 == 0, (N, cin, H, W)
    x = x[:, 0]                                         # (N, H, W)

    H2, W2, H4, W4 = H // 2, W // 2, H // 4, W // 4

    # Fold conv1 bias + eval-mode BatchNorm into one scale/shift per channel.
    eps = 1e-5
    s1 = params["bn_gamma"] / jnp.sqrt(params["bn_var"] + eps)
    t1 = params["bn_beta"] + (params["b1"] - params["bn_mean"]) * s1

    # Host-built band weight matrices (cheap; could be cached per (H, W)).
    g1 = _band_weights(params["w1"], W)                 # (7, W,     W*20)
    g2 = _band_weights(params["w2"], W2)                # (5, W2*20, W2*40)
    g3 = _band_weights(params["w3"], W4)                # (5, W4*40, W4*20)
    g4 = _band_weights(params["w4"], W4)                # (5, W4*20, W4*10)
    g1e, g1o = _split_cols_even_odd(g1, W, 20)          # (7, W,     W2*20) x2
    g2e, g2o = _split_cols_even_odd(g2, W2, 40)         # (5, W2*20, W4*40) x2
    # conv5 (1x1, 10->1) as a block-diagonal matmul fused into conv4's epilogue.
    w5 = jnp.asarray(params["w5"], jnp.float32)[:, :, 0, 0]          # (1, 10)
    g5 = jnp.kron(jnp.eye(W4, dtype=jnp.float32), w5[0][:, None])    # (W4*10, W4)
    t5 = jnp.full((1, W4), params["b5"][0], jnp.float32)

    s1r = _tile_row(s1, W2)
    t1r = _tile_row(t1, W2)
    t2r = _tile_row(params["b2"], W4)
    t3r = _tile_row(params["b3"], W4)
    t4r = _tile_row(params["b4"], W4)

    operands = (x, g1e, g1o, s1r, t1r, g2e, g2o, t2r,
                g3, t3r, g4, t4r, g5, t5)

    def full_spec(a):                                   # whole-array VMEM block
        if a.ndim == 3:
            return pl.BlockSpec(tuple(a.shape), lambda n: (0, 0, 0))
        return pl.BlockSpec(tuple(a.shape), lambda n: (0, 0))

    in_specs = [pl.BlockSpec((None, H, W), lambda n: (n, 0, 0))]
    in_specs += [full_spec(a) for a in operands[1:]]

    out = pl.pallas_call(
        functools.partial(_mcnn_col2_kernel, H=H, W=W),
        out_shape=jax.ShapeDtypeStruct((N, H4, W4), jnp.float32),
        grid=(N,),                                      # one image per grid step
        in_specs=in_specs,
        out_specs=pl.BlockSpec((None, H4, W4), lambda n: (n, 0, 0)),
        scratch_shapes=[                                # vertically padded row buffers
            pltpu.VMEM((H + 6, W), jnp.float32),
            pltpu.VMEM((H2 + 4, W2 * 20), jnp.float32),
            pltpu.VMEM((H4 + 4, W4 * 40), jnp.float32),
            pltpu.VMEM((H4 + 4, W4 * 20), jnp.float32),
        ],
        compiler_params=pltpu.CompilerParams(
            # N>=2 keeps both v7x TensorCores busy; v5e/v6e run N cheap steps.
            dimension_semantics=("parallel",),
            vmem_limit_bytes=32 * 1024 * 1024,          # well under v7x's 64 MiB
        ),
    )(*operands)

    return out[:, None]                                 # (N, 1, H/4, W/4) NCHW


# ----------------------------------------------------------------------------
# Pure-JAX reference (eval semantics) for validation
# ----------------------------------------------------------------------------
def _ref_forward(params, im_data):
    hi = jax.lax.Precision.HIGHEST
    x = jnp.asarray(im_data, jnp.float32)

    def conv(v, w, b, pad):
        y = jax.lax.conv_general_dilated(
            v, jnp.asarray(w, jnp.float32), (1, 1), [(pad, pad), (pad, pad)],
            dimension_numbers=("NCHW", "OIHW", "NCHW"), precision=hi)
        return y + jnp.asarray(b, jnp.float32)[None, :, None, None]

    def pool(v):
        return jax.lax.reduce_window(v, -jnp.inf, jax.lax.max,
                                     (1, 1, 2, 2), (1, 1, 2, 2), "VALID")

    eps = 1e-5
    y = conv(x, params["w1"], params["b1"], 3)
    s = params["bn_gamma"] / jnp.sqrt(params["bn_var"] + eps)
    y = ((y - params["bn_mean"][None, :, None, None]) * s[None, :, None, None]
         + params["bn_beta"][None, :, None, None])
    y = pool(jax.nn.relu(y))
    y = pool(jax.nn.relu(conv(y, params["w2"], params["b2"], 2)))
    y = jax.nn.relu(conv(y, params["w3"], params["b3"], 2))
    y = jax.nn.relu(conv(y, params["w4"], params["b4"], 2))
    return conv(y, params["w5"], params["b5"], 0)


if __name__ == "__main__":
    key = jax.random.PRNGKey(0)
    pkey, xkey = jax.random.split(key)
    params = init_params(pkey)

    # Input consistent with nn.Conv2d(1, ...): NCHW, 1 channel, 16x16 spatial.
    im_data = jax.random.normal(xkey, (2, 1, 16, 16), jnp.float32)

    fwd = jax.jit(mcnn_col2_forward)
    out = fwd(params, im_data)
    jax.block_until_ready(out)

    assert out.shape == (2, 1, 4, 4), out.shape
    assert out.dtype == jnp.float32

    ref = _ref_forward(params, im_data)
    rel = jnp.sqrt(jnp.sum((out - ref) ** 2)) / (jnp.sqrt(jnp.sum(ref ** 2)) + 1e-12)
    assert float(rel) < 5e-2, float(rel)

    print("KERNEL_OK")
</pallas_src>

<mosaic_0001>
module attributes {stable_mosaic.version = 11 : i64} {
  func.func @_mcnn_col2_kernel(%arg0: i32, %arg1: memref<1x16x16xf32, #tpu.memory_space<vmem>>, %arg2: memref<7x16x160xf32, #tpu.memory_space<vmem>>, %arg3: memref<7x16x160xf32, #tpu.memory_space<vmem>>, %arg4: memref<1x160xf32, #tpu.memory_space<vmem>>, %arg5: memref<1x160xf32, #tpu.memory_space<vmem>>, %arg6: memref<5x160x160xf32, #tpu.memory_space<vmem>>, %arg7: memref<5x160x160xf32, #tpu.memory_space<vmem>>, %arg8: memref<1x160xf32, #tpu.memory_space<vmem>>, %arg9: memref<5x160x80xf32, #tpu.memory_space<vmem>>, %arg10: memref<1x80xf32, #tpu.memory_space<vmem>>, %arg11: memref<5x80x40xf32, #tpu.memory_space<vmem>>, %arg12: memref<1x40xf32, #tpu.memory_space<vmem>>, %arg13: memref<40x4xf32, #tpu.memory_space<vmem>>, %arg14: memref<1x4xf32, #tpu.memory_space<vmem>>, %arg15: memref<1x4x4xf32, #tpu.memory_space<vmem>>, %arg16: memref<22x16xf32, #tpu.memory_space<vmem>>, %arg17: memref<12x160xf32, #tpu.memory_space<vmem>>, %arg18: memref<8x160xf32, #tpu.memory_space<vmem>>, %arg19: memref<8x80xf32, #tpu.memory_space<vmem>>) attributes {dimension_semantics = [#tpu.dimension_semantics<parallel>], iteration_bounds = array<i64: 2>, scalar_prefetch = 0 : i64, scratch_operands = 4 : i64, tpu.core_type = #tpu.core_type<tc>, window_params = [{transform_indices = @transform_0, window_bounds = array<i64: 1, 16, 16>}, {pipeline_mode = #tpu.pipeline_mode<synchronous>, transform_indices = @transform_1, window_bounds = array<i64: 7, 16, 160>}, {pipeline_mode = #tpu.pipeline_mode<synchronous>, transform_indices = @transform_2, window_bounds = array<i64: 7, 16, 160>}, {pipeline_mode = #tpu.pipeline_mode<synchronous>, transform_indices = @transform_3, window_bounds = array<i64: 1, 160>}, {pipeline_mode = #tpu.pipeline_mode<synchronous>, transform_indices = @transform_4, window_bounds = array<i64: 1, 160>}, {pipeline_mode = #tpu.pipeline_mode<synchronous>, transform_indices = @transform_5, window_bounds = array<i64: 5, 160, 160>}, {pipeline_mode = #tpu.pipeline_mode<synchronous>, transform_indices = @transform_6, window_bounds = array<i64: 5, 160, 160>}, {pipeline_mode = #tpu.pipeline_mode<synchronous>, transform_indices = @transform_7, window_bounds = array<i64: 1, 160>}, {pipeline_mode = #tpu.pipeline_mode<synchronous>, transform_indices = @transform_8, window_bounds = array<i64: 5, 160, 80>}, {pipeline_mode = #tpu.pipeline_mode<synchronous>, transform_indices = @transform_9, window_bounds = array<i64: 1, 80>}, {pipeline_mode = #tpu.pipeline_mode<synchronous>, transform_indices = @transform_10, window_bounds = array<i64: 5, 80, 40>}, {pipeline_mode = #tpu.pipeline_mode<synchronous>, transform_indices = @transform_11, window_bounds = array<i64: 1, 40>}, {pipeline_mode = #tpu.pipeline_mode<synchronous>, transform_indices = @transform_12, window_bounds = array<i64: 40, 4>}, {pipeline_mode = #tpu.pipeline_mode<synchronous>, transform_indices = @transform_13, window_bounds = array<i64: 1, 4>}, {transform_indices = @transform_14, window_bounds = array<i64: 1, 4, 4>}]} {
    %cst = arith.constant 0.000000e+00 : f32
    %0 = vector.broadcast %cst : f32 to vector<22x16xf32>
    %c0 = arith.constant 0 : index
    %c0_0 = arith.constant 0 : index
    %1 = vector.load %arg16[%c0, %c0_0] : memref<22x16xf32, #tpu.memory_space<vmem>>, vector<22x16xf32>
    tpu.vector_store %arg16[%c0, %c0_0], %0 {strides = array<i32>} : memref<22x16xf32, #tpu.memory_space<vmem>>, vector<22x16xf32>,
    %c0_1 = arith.constant 0 : index
    %c0_2 = arith.constant 0 : index
    %c0_3 = arith.constant 0 : index
    %2 = vector.load %arg1[%c0_1, %c0_2, %c0_3] : memref<1x16x16xf32, #tpu.memory_space<vmem>>, vector<1x16x16xf32>
    %3 = vector.shape_cast %2 : vector<1x16x16xf32> to vector<16x16xf32>
    %c3 = arith.constant 3 : index
    %c0_4 = arith.constant 0 : index
    %4 = vector.load %arg16[%c3, %c0_4] : memref<22x16xf32, #tpu.memory_space<vmem>>, vector<16x16xf32>
    tpu.vector_store %arg16[%c3, %c0_4], %3 {strides = array<i32>} : memref<22x16xf32, #tpu.memory_space<vmem>>, vector<16x16xf32>,
    %cst_5 = arith.constant 0.000000e+00 : f32
    %5 = vector.broadcast %cst_5 : f32 to vector<16x160xf32>
    %cst_6 = arith.constant 0.000000e+00 : f32
    %6 = vector.broadcast %cst_6 : f32 to vector<16x160xf32>
    %c0_7 = arith.constant 0 : index
    %c0_8 = arith.constant 0 : index
    %7 = vector.load %arg16[%c0_7, %c0_8] : memref<22x16xf32, #tpu.memory_space<vmem>>, vector<16x16xf32>
    %c0_9 = arith.constant 0 : index
    %c0_10 = arith.constant 0 : index
    %c0_11 = arith.constant 0 : index
    %8 = vector.load %arg2[%c0_9, %c0_10, %c0_11] : memref<7x16x160xf32, #tpu.memory_space<vmem>>, vector<1x16x160xf32>
    %9 = vector.shape_cast %8 : vector<1x16x160xf32> to vector<16x160xf32>
    %cst_12 = arith.constant dense<0.000000e+00> : vector<16x160xf32>
    %10 = tpu.matmul %7, %9, %cst_12 {dimension_numbers = #tpu.dot_dimension_numbers<[1], [0], [0], [1], [0, 0, 1, 1], [], []>} : vector<16x16xf32>, vector<16x160xf32>, vector<16x160xf32> -> vector<16x160xf32>
    %11 = arith.addf %5, %10 : vector<16x160xf32>
    %c0_13 = arith.constant 0 : index
    %c0_14 = arith.constant 0 : index
    %c0_15 = arith.constant 0 : index
    %12 = vector.load %arg3[%c0_13, %c0_14, %c0_15] : memref<7x16x160xf32, #tpu.memory_space<vmem>>, vector<1x16x160xf32>
    %13 = vector.shape_cast %12 : vector<1x16x160xf32> to vector<16x160xf32>
    %cst_16 = arith.constant dense<0.000000e+00> : vector<16x160xf32>
    %14 = tpu.matmul %7, %13, %cst_16 {dimension_numbers = #tpu.dot_dimension_numbers<[1], [0], [0], [1], [0, 0, 1, 1], [], []>} : vector<16x16xf32>, vector<16x160xf32>, vector<16x160xf32> -> vector<16x160xf32>
    %15 = arith.addf %6, %14 : vector<16x160xf32>
    %c1 = arith.constant 1 : index
    %c0_17 = arith.constant 0 : index
    %16 = vector.load %arg16[%c1, %c0_17] : memref<22x16xf32, #tpu.memory_space<vmem>>, vector<16x16xf32>
    %c1_18 = arith.constant 1 : index
    %c0_19 = arith.constant 0 : index
    %c0_20 = arith.constant 0 : index
    %17 = vector.load %arg2[%c1_18, %c0_19, %c0_20] : memref<7x16x160xf32, #tpu.memory_space<vmem>>, vector<1x16x160xf32>
    %18 = vector.shape_cast %17 : vector<1x16x160xf32> to vector<16x160xf32>
    %cst_21 = arith.constant dense<0.000000e+00> : vector<16x160xf32>
    %19 = tpu.matmul %16, %18, %cst_21 {dimension_numbers = #tpu.dot_dimension_numbers<[1], [0], [0], [1], [0, 0, 1, 1], [], []>} : vector<16x16xf32>, vector<16x160xf32>, vector<16x160xf32> -> vector<16x160xf32>
    %20 = arith.addf %11, %19 : vector<16x160xf32>
    %c1_22 = arith.constant 1 : index
    %c0_23 = arith.constant 0 : index
    %c0_24 = arith.constant 0 : index
    %21 = vector.load %arg3[%c1_22, %c0_23, %c0_24] : memref<7x16x160xf32, #tpu.memory_space<vmem>>, vector<1x16x160xf32>
    %22 = vector.shape_cast %21 : vector<1x16x160xf32> to vector<16x160xf32>
    %cst_25 = arith.constant dense<0.000000e+00> : vector<16x160xf32>
    %23 = tpu.matmul %16, %22, %cst_25 {dimension_numbers = #tpu.dot_dimension_numbers<[1], [0], [0], [1], [0, 0, 1, 1], [], []>} : vector<16x16xf32>, vector<16x160xf32>, vector<16x160xf32> -> vector<16x160xf32>
    %24 = arith.addf %15, %23 : vector<16x160xf32>
    %c2 = arith.constant 2 : index
    %c0_26 = arith.constant 0 : index
    %25 = vector.load %arg16[%c2, %c0_26] : memref<22x16xf32, #tpu.memory_space<vmem>>, vector<16x16xf32>
    %c2_27 = arith.constant 2 : index
    %c0_28 = arith.constant 0 : index
    %c0_29 = arith.constant 0 : index
    %26 = vector.load %arg2[%c2_27, %c0_28, %c0_29] : memref<7x16x160xf32, #tpu.memory_space<vmem>>, vector<1x16x160xf32>
    %27 = vector.shape_cast %26 : vector<1x16x160xf32> to vector<16x160xf32>
    %cst_30 = arith.constant dense<0.000000e+00> : vector<16x160xf32>
    %28 = tpu.matmul %25, %27, %cst_30 {dimension_numbers = #tpu.dot_dimension_numbers<[1], [0], [0], [1], [0, 0, 1, 1], [], []>} : vector<16x16xf32>, vector<16x160xf32>, vector<16x160xf32> -> vector<16x160xf32>
    %29 = arith.addf %20, %28 : vector<16x160xf32>
    %c2_31 = arith.constant 2 : index
    %c0_32 = arith.constant 0 : index
    %c0_33 = arith.constant 0 : index
    %30 = vector.load %arg3[%c2_31, %c0_32, %c0_33] : memref<7x16x160xf32, #tpu.memory_space<vmem>>, vector<1x16x160xf32>
    %31 = vector.shape_cast %30 : vector<1x16x160xf32> to vector<16x160xf32>
    %cst_34 = arith.constant dense<0.000000e+00> : vector<16x160xf32>
    %32 = tpu.matmul %25, %31, %cst_34 {dimension_numbers = #tpu.dot_dimension_numbers<[1], [0], [0], [1], [0, 0, 1, 1], [], []>} : vector<16x16xf32>, vector<16x160xf32>, vector<16x160xf32> -> vector<16x160xf32>
    %33 = arith.addf %24, %32 : vector<16x160xf32>
    %c3_35 = arith.constant 3 : index
    %c0_36 = arith.constant 0 : index
    %34 = vector.load %arg16[%c3_35, %c0_36] : memref<22x16xf32, #tpu.memory_space<vmem>>, vector<16x16xf32>
    %c3_37 = arith.constant 3 : index
    %c0_38 = arith.constant 0 : index
    %c0_39 = arith.constant 0 : index
    %35 = vector.load %arg2[%c3_37, %c0_38, %c0_39] : memref<7x16x160xf32, #tpu.memory_space<vmem>>, vector<1x16x160xf32>
    %36 = vector.shape_cast %35 : vector<1x16x160xf32> to vector<16x160xf32>
    %cst_40 = arith.constant dense<0.000000e+00> : vector<16x160xf32>
    %37 = tpu.matmul %34, %36, %cst_40 {dimension_numbers = #tpu.dot_dimension_numbers<[1], [0], [0], [1], [0, 0, 1, 1], [], []>} : vector<16x16xf32>, vector<16x160xf32>, vector<16x160xf32> -> vector<16x160xf32>
    %38 = arith.addf %29, %37 : vector<16x160xf32>
    %c3_41 = arith.constant 3 : index
    %c0_42 = arith.constant 0 : index
    %c0_43 = arith.constant 0 : index
    %39 = vector.load %arg3[%c3_41, %c0_42, %c0_43] : memref<7x16x160xf32, #tpu.memory_space<vmem>>, vector<1x16x160xf32>
    %40 = vector.shape_cast %39 : vector<1x16x160xf32> to vector<16x160xf32>
    %cst_44 = arith.constant dense<0.000000e+00> : vector<16x160xf32>
    %41 = tpu.matmul %34, %40, %cst_44 {dimension_numbers = #tpu.dot_dimension_numbers<[1], [0], [0], [1], [0, 0, 1, 1], [], []>} : vector<16x16xf32>, vector<16x160xf32>, vector<16x160xf32> -> vector<16x160xf32>
    %42 = arith.addf %33, %41 : vector<16x160xf32>
    %c4 = arith.constant 4 : index
    %c0_45 = arith.constant 0 : index
    %43 = vector.load %arg16[%c4, %c0_45] : memref<22x16xf32, #tpu.memory_space<vmem>>, vector<16x16xf32>
    %c4_46 = arith.constant 4 : index
    %c0_47 = arith.constant 0 : index
    %c0_48 = arith.constant 0 : index
    %44 = vector.load %arg2[%c4_46, %c0_47, %c0_48] : memref<7x16x160xf32, #tpu.memory_space<vmem>>, vector<1x16x160xf32>
    %45 = vector.shape_cast %44 : vector<1x16x160xf32> to vector<16x160xf32>
    %cst_49 = arith.constant dense<0.000000e+00> : vector<16x160xf32>
    %46 = tpu.matmul %43, %45, %cst_49 {dimension_numbers = #tpu.dot_dimension_numbers<[1], [0], [0], [1], [0, 0, 1, 1], [], []>} : vector<16x16xf32>, vector<16x160xf32>, vector<16x160xf32> -> vector<16x160xf32>
    %47 = arith.addf %38, %46 : vector<16x160xf32>
    %c4_50 = arith.constant 4 : index
    %c0_51 = arith.constant 0 : index
    %c0_52 = arith.constant 0 : index
    %48 = vector.load %arg3[%c4_50, %c0_51, %c0_52] : memref<7x16x160xf32, #tpu.memory_space<vmem>>, vector<1x16x160xf32>
    %49 = vector.shape_cast %48 : vector<1x16x160xf32> to vector<16x160xf32>
    %cst_53 = arith.constant dense<0.000000e+00> : vector<16x160xf32>
    %50 = tpu.matmul %43, %49, %cst_53 {dimension_numbers = #tpu.dot_dimension_numbers<[1], [0], [0], [1], [0, 0, 1, 1], [], []>} : vector<16x16xf32>, vector<16x160xf32>, vector<16x160xf32> -> vector<16x160xf32>
    %51 = arith.addf %42, %50 : vector<16x160xf32>
    %c5 = arith.constant 5 : index
    %c0_54 = arith.constant 0 : index
    %52 = vector.load %arg16[%c5, %c0_54] : memref<22x16xf32, #tpu.memory_space<vmem>>, vector<16x16xf32>
    %c5_55 = arith.constant 5 : index
    %c0_56 = arith.constant 0 : index
    %c0_57 = arith.constant 0 : index
    %53 = vector.load %arg2[%c5_55, %c0_56, %c0_57] : memref<7x16x160xf32, #tpu.memory_space<vmem>>, vector<1x16x160xf32>
    %54 = vector.shape_cast %53 : vector<1x16x160xf32> to vector<16x160xf32>
    %cst_58 = arith.constant dense<0.000000e+00> : vector<16x160xf32>
    %55 = tpu.matmul %52, %54, %cst_58 {dimension_numbers = #tpu.dot_dimension_numbers<[1], [0], [0], [1], [0, 0, 1, 1], [], []>} : vector<16x16xf32>, vector<16x160xf32>, vector<16x160xf32> -> vector<16x160xf32>
    %56 = arith.addf %47, %55 : vector<16x160xf32>
    %c5_59 = arith.constant 5 : index
    %c0_60 = arith.constant 0 : index
    %c0_61 = arith.constant 0 : index
    %57 = vector.load %arg3[%c5_59, %c0_60, %c0_61] : memref<7x16x160xf32, #tpu.memory_space<vmem>>, vector<1x16x160xf32>
    %58 = vector.shape_cast %57 : vector<1x16x160xf32> to vector<16x160xf32>
    %cst_62 = arith.constant dense<0.000000e+00> : vector<16x160xf32>
    %59 = tpu.matmul %52, %58, %cst_62 {dimension_numbers = #tpu.dot_dimension_numbers<[1], [0], [0], [1], [0, 0, 1, 1], [], []>} : vector<16x16xf32>, vector<16x160xf32>, vector<16x160xf32> -> vector<16x160xf32>
    %60 = arith.addf %51, %59 : vector<16x160xf32>
    %c6 = arith.constant 6 : index
    %c0_63 = arith.constant 0 : index
    %61 = vector.load %arg16[%c6, %c0_63] : memref<22x16xf32, #tpu.memory_space<vmem>>, vector<16x16xf32>
    %c6_64 = arith.constant 6 : index
    %c0_65 = arith.constant 0 : index
    %c0_66 = arith.constant 0 : index
    %62 = vector.load %arg2[%c6_64, %c0_65, %c0_66] : memref<7x16x160xf32, #tpu.memory_space<vmem>>, vector<1x16x160xf32>
    %63 = vector.shape_cast %62 : vector<1x16x160xf32> to vector<16x160xf32>
    %cst_67 = arith.constant dense<0.000000e+00> : vector<16x160xf32>
    %64 = tpu.matmul %61, %63, %cst_67 {dimension_numbers = #tpu.dot_dimension_numbers<[1], [0], [0], [1], [0, 0, 1, 1], [], []>} : vector<16x16xf32>, vector<16x160xf32>, vector<16x160xf32> -> vector<16x160xf32>
    %65 = arith.addf %56, %64 : vector<16x160xf32>
    %c6_68 = arith.constant 6 : index
    %c0_69 = arith.constant 0 : index
    %c0_70 = arith.constant 0 : index
    %66 = vector.load %arg3[%c6_68, %c0_69, %c0_70] : memref<7x16x160xf32, #tpu.memory_space<vmem>>, vector<1x16x160xf32>
    %67 = vector.shape_cast %66 : vector<1x16x160xf32> to vector<16x160xf32>
    %cst_71 = arith.constant dense<0.000000e+00> : vector<16x160xf32>
    %68 = tpu.matmul %61, %67, %cst_71 {dimension_numbers = #tpu.dot_dimension_numbers<[1], [0], [0], [1], [0, 0, 1, 1], [], []>} : vector<16x16xf32>, vector<16x160xf32>, vector<16x160xf32> -> vector<16x160xf32>
    %69 = arith.addf %60, %68 : vector<16x160xf32>
    %c0_72 = arith.constant 0 : index
    %c0_73 = arith.constant 0 : index
    %70 = vector.load %arg4[%c0_72, %c0_73] : memref<1x160xf32, #tpu.memory_space<vmem>>, vector<1x160xf32>
    %71 = vector.broadcast %70 : vector<1x160xf32> to vector<16x160xf32>
    %72 = arith.mulf %65, %71 : vector<16x160xf32>
    %c0_74 = arith.constant 0 : index
    %c0_75 = arith.constant 0 : index
    %73 = vector.load %arg5[%c0_74, %c0_75] : memref<1x160xf32, #tpu.memory_space<vmem>>, vector<1x160xf32>
    %74 = vector.broadcast %73 : vector<1x160xf32> to vector<16x160xf32>
    %75 = arith.addf %72, %74 : vector<16x160xf32>
    %cst_76 = arith.constant 0.000000e+00 : f32
    %76 = vector.broadcast %cst_76 : f32 to vector<16x160xf32>
    %77 = arith.maximumf %75, %76 : vector<16x160xf32>
    %c0_77 = arith.constant 0 : index
    %c0_78 = arith.constant 0 : index
    %78 = vector.load %arg4[%c0_77, %c0_78] : memref<1x160xf32, #tpu.memory_space<vmem>>, vector<1x160xf32>
    %79 = vector.broadcast %78 : vector<1x160xf32> to vector<16x160xf32>
    %80 = arith.mulf %69, %79 : vector<16x160xf32>
    %c0_79 = arith.constant 0 : index
    %c0_80 = arith.constant 0 : index
    %81 = vector.load %arg5[%c0_79, %c0_80] : memref<1x160xf32, #tpu.memory_space<vmem>>, vector<1x160xf32>
    %82 = vector.broadcast %81 : vector<1x160xf32> to vector<16x160xf32>
    %83 = arith.addf %80, %82 : vector<16x160xf32>
    %cst_81 = arith.constant 0.000000e+00 : f32
    %84 = vector.broadcast %cst_81 : f32 to vector<16x160xf32>
    %85 = arith.maximumf %83, %84 : vector<16x160xf32>
    %86 = arith.maximumf %77, %85 : vector<16x160xf32>
    %87 = vector.shape_cast %86 : vector<16x160xf32> to vector<8x2x160xf32>
    %88 = vector.extract_strided_slice %87 {offsets = [0, 0, 0], sizes = [8, 1, 160], strides = [1, 1, 1]} : vector<8x2x160xf32> to vector<8x1x160xf32>
    %89 = vector.shape_cast %88 : vector<8x1x160xf32> to vector<8x160xf32>
    %90 = vector.extract_strided_slice %87 {offsets = [0, 1, 0], sizes = [8, 1, 160], strides = [1, 1, 1]} : vector<8x2x160xf32> to vector<8x1x160xf32>
    %91 = vector.shape_cast %90 : vector<8x1x160xf32> to vector<8x160xf32>
    %92 = arith.maximumf %89, %91 : vector<8x160xf32>
    %cst_82 = arith.constant 0.000000e+00 : f32
    %93 = vector.broadcast %cst_82 : f32 to vector<12x160xf32>
    %c0_83 = arith.constant 0 : index
    %c0_84 = arith.constant 0 : index
    %94 = vector.load %arg17[%c0_83, %c0_84] : memref<12x160xf32, #tpu.memory_space<vmem>>, vector<12x160xf32>
    tpu.vector_store %arg17[%c0_83, %c0_84], %93 {strides = array<i32>} : memref<12x160xf32, #tpu.memory_space<vmem>>, vector<12x160xf32>,
    %c2_85 = arith.constant 2 : index
    %c0_86 = arith.constant 0 : index
    %95 = vector.load %arg17[%c2_85, %c0_86] : memref<12x160xf32, #tpu.memory_space<vmem>>, vector<8x160xf32>
    tpu.vector_store %arg17[%c2_85, %c0_86], %92 {strides = array<i32>} : memref<12x160xf32, #tpu.memory_space<vmem>>, vector<8x160xf32>,
    %cst_87 = arith.constant 0.000000e+00 : f32
    %96 = vector.broadcast %cst_87 : f32 to vector<8x160xf32>
    %cst_88 = arith.constant 0.000000e+00 : f32
    %97 = vector.broadcast %cst_88 : f32 to vector<8x160xf32>
    %c0_89 = arith.constant 0 : index
    %c0_90 = arith.constant 0 : index
    %98 = vector.load %arg17[%c0_89, %c0_90] : memref<12x160xf32, #tpu.memory_space<vmem>>, vector<8x160xf32>
    %c0_91 = arith.constant 0 : index
    %c0_92 = arith.constant 0 : index
    %c0_93 = arith.constant 0 : index
    %99 = vector.load %arg6[%c0_91, %c0_92, %c0_93] : memref<5x160x160xf32, #tpu.memory_space<vmem>>, vector<1x160x160xf32>
    %100 = vector.shape_cast %99 : vector<1x160x160xf32> to vector<160x160xf32>
    %cst_94 = arith.constant dense<0.000000e+00> : vector<8x160xf32>
    %101 = tpu.matmul %98, %100, %cst_94 {dimension_numbers = #tpu.dot_dimension_numbers<[1], [0], [0], [1], [0, 0, 1, 1], [], []>} : vector<8x160xf32>, vector<160x160xf32>, vector<8x160xf32> -> vector<8x160xf32>
    %102 = arith.addf %96, %101 : vector<8x160xf32>
    %c0_95 = arith.constant 0 : index
    %c0_96 = arith.constant 0 : index
    %c0_97 = arith.constant 0 : index
    %103 = vector.load %arg7[%c0_95, %c0_96, %c0_97] : memref<5x160x160xf32, #tpu.memory_space<vmem>>, vector<1x160x160xf32>
    %104 = vector.shape_cast %103 : vector<1x160x160xf32> to vector<160x160xf32>
    %cst_98 = arith.constant dense<0.000000e+00> : vector<8x160xf32>
    %105 = tpu.matmul %98, %104, %cst_98 {dimension_numbers = #tpu.dot_dimension_numbers<[1], [0], [0], [1], [0, 0, 1, 1], [], []>} : vector<8x160xf32>, vector<160x160xf32>, vector<8x160xf32> -> vector<8x160xf32>
    %106 = arith.addf %97, %105 : vector<8x160xf32>
    %c1_99 = arith.constant 1 : index
    %c0_100 = arith.constant 0 : index
    %107 = vector.load %arg17[%c1_99, %c0_100] : memref<12x160xf32, #tpu.memory_space<vmem>>, vector<8x160xf32>
    %c1_101 = arith.constant 1 : index
    %c0_102 = arith.constant 0 : index
    %c0_103 = arith.constant 0 : index
    %108 = vector.load %arg6[%c1_101, %c0_102, %c0_103] : memref<5x160x160xf32, #tpu.memory_space<vmem>>, vector<1x160x160xf32>
    %109 = vector.shape_cast %108 : vector<1x160x160xf32> to vector<160x160xf32>
    %cst_104 = arith.constant dense<0.000000e+00> : vector<8x160xf32>
    %110 = tpu.matmul %107, %109, %cst_104 {dimension_numbers = #tpu.dot_dimension_numbers<[1], [0], [0], [1], [0, 0, 1, 1], [], []>} : vector<8x160xf32>, vector<160x160xf32>, vector<8x160xf32> -> vector<8x160xf32>
    %111 = arith.addf %102, %110 : vector<8x160xf32>
    %c1_105 = arith.constant 1 : index
    %c0_106 = arith.constant 0 : index
    %c0_107 = arith.constant 0 : index
    %112 = vector.load %arg7[%c1_105, %c0_106, %c0_107] : memref<5x160x160xf32, #tpu.memory_space<vmem>>, vector<1x160x160xf32>
    %113 = vector.shape_cast %112 : vector<1x160x160xf32> to vector<160x160xf32>
    %cst_108 = arith.constant dense<0.000000e+00> : vector<8x160xf32>
    %114 = tpu.matmul %107, %113, %cst_108 {dimension_numbers = #tpu.dot_dimension_numbers<[1], [0], [0], [1], [0, 0, 1, 1], [], []>} : vector<8x160xf32>, vector<160x160xf32>, vector<8x160xf32> -> vector<8x160xf32>
    %115 = arith.addf %106, %114 : vector<8x160xf32>
    %c2_109 = arith.constant 2 : index
    %c0_110 = arith.constant 0 : index
    %116 = vector.load %arg17[%c2_109, %c0_110] : memref<12x160xf32, #tpu.memory_space<vmem>>, vector<8x160xf32>
    %c2_111 = arith.constant 2 : index
    %c0_112 = arith.constant 0 : index
    %c0_113 = arith.constant 0 : index
    %117 = vector.load %arg6[%c2_111, %c0_112, %c0_113] : memref<5x160x160xf32, #tpu.memory_space<vmem>>, vector<1x160x160xf32>
    %118 = vector.shape_cast %117 : vector<1x160x160xf32> to vector<160x160xf32>
    %cst_114 = arith.constant dense<0.000000e+00> : vector<8x160xf32>
    %119 = tpu.matmul %116, %118, %cst_114 {dimension_numbers = #tpu.dot_dimension_numbers<[1], [0], [0], [1], [0, 0, 1, 1], [], []>} : vector<8x160xf32>, vector<160x160xf32>, vector<8x160xf32> -> vector<8x160xf32>
    %120 = arith.addf %111, %119 : vector<8x160xf32>
    %c2_115 = arith.constant 2 : index
    %c0_116 = arith.constant 0 : index
    %c0_117 = arith.constant 0 : index
    %121 = vector.load %arg7[%c2_115, %c0_116, %c0_117] : memref<5x160x160xf32, #tpu.memory_space<vmem>>, vector<1x160x160xf32>
    %122 = vector.shape_cast %121 : vector<1x160x160xf32> to vector<160x160xf32>
    %cst_118 = arith.constant dense<0.000000e+00> : vector<8x160xf32>
    %123 = tpu.matmul %116, %122, %cst_118 {dimension_numbers = #tpu.dot_dimension_numbers<[1], [0], [0], [1], [0, 0, 1, 1], [], []>} : vector<8x160xf32>, vector<160x160xf32>, vector<8x160xf32> -> vector<8x160xf32>
    %124 = arith.addf %115, %123 : vector<8x160xf32>
    %c3_119 = arith.constant 3 : index
    %c0_120 = arith.constant 0 : index
    %125 = vector.load %arg17[%c3_119, %c0_120] : memref<12x160xf32, #tpu.memory_space<vmem>>, vector<8x160xf32>
    %c3_121 = arith.constant 3 : index
    %c0_122 = arith.constant 0 : index
    %c0_123 = arith.constant 0 : index
    %126 = vector.load %arg6[%c3_121, %c0_122, %c0_123] : memref<5x160x160xf32, #tpu.memory_space<vmem>>, vector<1x160x160xf32>
    %127 = vector.shape_cast %126 : vector<1x160x160xf32> to vector<160x160xf32>
    %cst_124 = arith.constant dense<0.000000e+00> : vector<8x160xf32>
    %128 = tpu.matmul %125, %127, %cst_124 {dimension_numbers = #tpu.dot_dimension_numbers<[1], [0], [0], [1], [0, 0, 1, 1], [], []>} : vector<8x160xf32>, vector<160x160xf32>, vector<8x160xf32> -> vector<8x160xf32>
    %129 = arith.addf %120, %128 : vector<8x160xf32>
    %c3_125 = arith.constant 3 : index
    %c0_126 = arith.constant 0 : index
    %c0_127 = arith.constant 0 : index
    %130 = vector.load %arg7[%c3_125, %c0_126, %c0_127] : memref<5x160x160xf32, #tpu.memory_space<vmem>>, vector<1x160x160xf32>
    %131 = vector.shape_cast %130 : vector<1x160x160xf32> to vector<160x160xf32>
    %cst_128 = arith.constant dense<0.000000e+00> : vector<8x160xf32>
    %132 = tpu.matmul %125, %131, %cst_128 {dimension_numbers = #tpu.dot_dimension_numbers<[1], [0], [0], [1], [0, 0, 1, 1], [], []>} : vector<8x160xf32>, vector<160x160xf32>, vector<8x160xf32> -> vector<8x160xf32>
    %133 = arith.addf %124, %132 : vector<8x160xf32>
    %c4_129 = arith.constant 4 : index
    %c0_130 = arith.constant 0 : index
    %134 = vector.load %arg17[%c4_129, %c0_130] : memref<12x160xf32, #tpu.memory_space<vmem>>, vector<8x160xf32>
    %c4_131 = arith.constant 4 : index
    %c0_132 = arith.constant 0 : index
    %c0_133 = arith.constant 0 : index
    %135 = vector.load %arg6[%c4_131, %c0_132, %c0_133] : memref<5x160x160xf32, #tpu.memory_space<vmem>>, vector<1x160x160xf32>
    %136 = vector.shape_cast %135 : vector<1x160x160xf32> to vector<160x160xf32>
    %cst_134 = arith.constant dense<0.000000e+00> : vector<8x160xf32>
    %137 = tpu.matmul %134, %136, %cst_134 {dimension_numbers = #tpu.dot_dimension_numbers<[1], [0], [0], [1], [0, 0, 1, 1], [], []>} : vector<8x160xf32>, vector<160x160xf32>, vector<8x160xf32> -> vector<8x160xf32>
    %138 = arith.addf %129, %137 : vector<8x160xf32>
    %c4_135 = arith.constant 4 : index
    %c0_136 = arith.constant 0 : index
    %c0_137 = arith.constant 0 : index
    %139 = vector.load %arg7[%c4_135, %c0_136, %c0_137] : memref<5x160x160xf32, #tpu.memory_space<vmem>>, vector<1x160x160xf32>
    %140 = vector.shape_cast %139 : vector<1x160x160xf32> to vector<160x160xf32>
    %cst_138 = arith.constant dense<0.000000e+00> : vector<8x160xf32>
    %141 = tpu.matmul %134, %140, %cst_138 {dimension_numbers = #tpu.dot_dimension_numbers<[1], [0], [0], [1], [0, 0, 1, 1], [], []>} : vector<8x160xf32>, vector<160x160xf32>, vector<8x160xf32> -> vector<8x160xf32>
    %142 = arith.addf %133, %141 : vector<8x160xf32>
    %c0_139 = arith.constant 0 : index
    %c0_140 = arith.constant 0 : index
    %143 = vector.load %arg8[%c0_139, %c0_140] : memref<1x160xf32, #tpu.memory_space<vmem>>, vector<1x160xf32>
    %144 = vector.broadcast %143 : vector<1x160xf32> to vector<8x160xf32>
    %145 = arith.addf %138, %144 : vector<8x160xf32>
    %cst_141 = arith.constant 0.000000e+00 : f32
    %146 = vector.broadcast %cst_141 : f32 to vector<8x160xf32>
    %147 = arith.maximumf %145, %146 : vector<8x160xf32>
    %c0_142 = arith.constant 0 : index
    %c0_143 = arith.constant 0 : index
    %148 = vector.load %arg8[%c0_142, %c0_143] : memref<1x160xf32, #tpu.memory_space<vmem>>, vector<1x160xf32>
    %149 = vector.broadcast %148 : vector<1x160xf32> to vector<8x160xf32>
    %150 = arith.addf %142, %149 : vector<8x160xf32>
    %cst_144 = arith.constant 0.000000e+00 : f32
    %151 = vector.broadcast %cst_144 : f32 to vector<8x160xf32>
    %152 = arith.maximumf %150, %151 : vector<8x160xf32>
    %153 = arith.maximumf %147, %152 : vector<8x160xf32>
    %154 = vector.shape_cast %153 : vector<8x160xf32> to vector<4x2x160xf32>
    %155 = vector.extract_strided_slice %154 {offsets = [0, 0, 0], sizes = [4, 1, 160], strides = [1, 1, 1]} : vector<4x2x160xf32> to vector<4x1x160xf32>
    %156 = vector.shape_cast %155 : vector<4x1x160xf32> to vector<4x160xf32>
    %157 = vector.extract_strided_slice %154 {offsets = [0, 1, 0], sizes = [4, 1, 160], strides = [1, 1, 1]} : vector<4x2x160xf32> to vector<4x1x160xf32>
    %158 = vector.shape_cast %157 : vector<4x1x160xf32> to vector<4x160xf32>
    %159 = arith.maximumf %156, %158 : vector<4x160xf32>
    %cst_145 = arith.constant 0.000000e+00 : f32
    %160 = vector.broadcast %cst_145 : f32 to vector<8x160xf32>
    %c0_146 = arith.constant 0 : index
    %c0_147 = arith.constant 0 : index
    %161 = vector.load %arg18[%c0_146, %c0_147] : memref<8x160xf32, #tpu.memory_space<vmem>>, vector<8x160xf32>
    tpu.vector_store %arg18[%c0_146, %c0_147], %160 {strides = array<i32>} : memref<8x160xf32, #tpu.memory_space<vmem>>, vector<8x160xf32>,
    %c2_148 = arith.constant 2 : index
    %c0_149 = arith.constant 0 : index
    %162 = vector.load %arg18[%c2_148, %c0_149] : memref<8x160xf32, #tpu.memory_space<vmem>>, vector<4x160xf32>
    tpu.vector_store %arg18[%c2_148, %c0_149], %159 {strides = array<i32>} : memref<8x160xf32, #tpu.memory_space<vmem>>, vector<4x160xf32>,
    %cst_150 = arith.constant 0.000000e+00 : f32
    %163 = vector.broadcast %cst_150 : f32 to vector<4x80xf32>
    %c0_151 = arith.constant 0 : index
    %c0_152 = arith.constant 0 : index
    %164 = vector.load %arg18[%c0_151, %c0_152] : memref<8x160xf32, #tpu.memory_space<vmem>>, vector<4x160xf32>
    %c0_153 = arith.constant 0 : index
    %c0_154 = arith.constant 0 : index
    %c0_155 = arith.constant 0 : index
    %165 = vector.load %arg9[%c0_153, %c0_154, %c0_155] : memref<5x160x80xf32, #tpu.memory_space<vmem>>, vector<1x160x80xf32>
    %166 = vector.shape_cast %165 : vector<1x160x80xf32> to vector<160x80xf32>
    %cst_156 = arith.constant dense<0.000000e+00> : vector<4x80xf32>
    %167 = tpu.matmul %164, %166, %cst_156 {dimension_numbers = #tpu.dot_dimension_numbers<[1], [0], [0], [1], [0, 0, 1, 1], [], []>} : vector<4x160xf32>, vector<160x80xf32>, vector<4x80xf32> -> vector<4x80xf32>
    %168 = arith.addf %163, %167 : vector<4x80xf32>
    %c1_157 = arith.constant 1 : index
    %c0_158 = arith.constant 0 : index
    %169 = vector.load %arg18[%c1_157, %c0_158] : memref<8x160xf32, #tpu.memory_space<vmem>>, vector<4x160xf32>
    %c1_159 = arith.constant 1 : index
    %c0_160 = arith.constant 0 : index
    %c0_161 = arith.constant 0 : index
    %170 = vector.load %arg9[%c1_159, %c0_160, %c0_161] : memref<5x160x80xf32, #tpu.memory_space<vmem>>, vector<1x160x80xf32>
    %171 = vector.shape_cast %170 : vector<1x160x80xf32> to vector<160x80xf32>
    %cst_162 = arith.constant dense<0.000000e+00> : vector<4x80xf32>
    %172 = tpu.matmul %169, %171, %cst_162 {dimension_numbers = #tpu.dot_dimension_numbers<[1], [0], [0], [1], [0, 0, 1, 1], [], []>} : vector<4x160xf32>, vector<160x80xf32>, vector<4x80xf32> -> vector<4x80xf32>
    %173 = arith.addf %168, %172 : vector<4x80xf32>
    %c2_163 = arith.constant 2 : index
    %c0_164 = arith.constant 0 : index
    %174 = vector.load %arg18[%c2_163, %c0_164] : memref<8x160xf32, #tpu.memory_space<vmem>>, vector<4x160xf32>
    %c2_165 = arith.constant 2 : index
    %c0_166 = arith.constant 0 : index
    %c0_167 = arith.constant 0 : index
    %175 = vector.load %arg9[%c2_165, %c0_166, %c0_167] : memref<5x160x80xf32, #tpu.memory_space<vmem>>, vector<1x160x80xf32>
    %176 = vector.shape_cast %175 : vector<1x160x80xf32> to vector<160x80xf32>
    %cst_168 = arith.constant dense<0.000000e+00> : vector<4x80xf32>
    %177 = tpu.matmul %174, %176, %cst_168 {dimension_numbers = #tpu.dot_dimension_numbers<[1], [0], [0], [1], [0, 0, 1, 1], [], []>} : vector<4x160xf32>, vector<160x80xf32>, vector<4x80xf32> -> vector<4x80xf32>
    %178 = arith.addf %173, %177 : vector<4x80xf32>
    %c3_169 = arith.constant 3 : index
    %c0_170 = arith.constant 0 : index
    %179 = vector.load %arg18[%c3_169, %c0_170] : memref<8x160xf32, #tpu.memory_space<vmem>>, vector<4x160xf32>
    %c3_171 = arith.constant 3 : index
    %c0_172 = arith.constant 0 : index
    %c0_173 = arith.constant 0 : index
    %180 = vector.load %arg9[%c3_171, %c0_172, %c0_173] : memref<5x160x80xf32, #tpu.memory_space<vmem>>, vector<1x160x80xf32>
    %181 = vector.shape_cast %180 : vector<1x160x80xf32> to vector<160x80xf32>
    %cst_174 = arith.constant dense<0.000000e+00> : vector<4x80xf32>
    %182 = tpu.matmul %179, %181, %cst_174 {dimension_numbers = #tpu.dot_dimension_numbers<[1], [0], [0], [1], [0, 0, 1, 1], [], []>} : vector<4x160xf32>, vector<160x80xf32>, vector<4x80xf32> -> vector<4x80xf32>
    %183 = arith.addf %178, %182 : vector<4x80xf32>
    %c4_175 = arith.constant 4 : index
    %c0_176 = arith.constant 0 : index
    %184 = vector.load %arg18[%c4_175, %c0_176] : memref<8x160xf32, #tpu.memory_space<vmem>>, vector<4x160xf32>
    %c4_177 = arith.constant 4 : index
    %c0_178 = arith.constant 0 : index
    %c0_179 = arith.constant 0 : index
    %185 = vector.load %arg9[%c4_177, %c0_178, %c0_179] : memref<5x160x80xf32, #tpu.memory_space<vmem>>, vector<1x160x80xf32>
    %186 = vector.shape_cast %185 : vector<1x160x80xf32> to vector<160x80xf32>
    %cst_180 = arith.constant dense<0.000000e+00> : vector<4x80xf32>
    %187 = tpu.matmul %184, %186, %cst_180 {dimension_numbers = #tpu.dot_dimension_numbers<[1], [0], [0], [1], [0, 0, 1, 1], [], []>} : vector<4x160xf32>, vector<160x80xf32>, vector<4x80xf32> -> vector<4x80xf32>
    %188 = arith.addf %183, %187 : vector<4x80xf32>
    %c0_181 = arith.constant 0 : index
    %c0_182 = arith.constant 0 : index
    %189 = vector.load %arg10[%c0_181, %c0_182] : memref<1x80xf32, #tpu.memory_space<vmem>>, vector<1x80xf32>
    %190 = vector.broadcast %189 : vector<1x80xf32> to vector<4x80xf32>
    %191 = arith.addf %188, %190 : vector<4x80xf32>
    %cst_183 = arith.constant 0.000000e+00 : f32
    %192 = vector.broadcast %cst_183 : f32 to vector<4x80xf32>
    %193 = arith.maximumf %191, %192 : vector<4x80xf32>
    %cst_184 = arith.constant 0.000000e+00 : f32
    %194 = vector.broadcast %cst_184 : f32 to vector<8x80xf32>
    %c0_185 = arith.constant 0 : index
    %c0_186 = arith.constant 0 : index
    %195 = vector.load %arg19[%c0_185, %c0_186] : memref<8x80xf32, #tpu.memory_space<vmem>>, vector<8x80xf32>
    tpu.vector_store %arg19[%c0_185, %c0_186], %194 {strides = array<i32>} : memref<8x80xf32, #tpu.memory_space<vmem>>, vector<8x80xf32>,
    %c2_187 = arith.constant 2 : index
    %c0_188 = arith.constant 0 : index
    %196 = vector.load %arg19[%c2_187, %c0_188] : memref<8x80xf32, #tpu.memory_space<vmem>>, vector<4x80xf32>
    tpu.vector_store %arg19[%c2_187, %c0_188], %193 {strides = array<i32>} : memref<8x80xf32, #tpu.memory_space<vmem>>, vector<4x80xf32>,
    %cst_189 = arith.constant 0.000000e+00 : f32
    %197 = vector.broadcast %cst_189 : f32 to vector<4x40xf32>
    %c0_190 = arith.constant 0 : index
    %c0_191 = arith.constant 0 : index
    %198 = vector.load %arg19[%c0_190, %c0_191] : memref<8x80xf32, #tpu.memory_space<vmem>>, vector<4x80xf32>
    %c0_192 = arith.constant 0 : index
    %c0_193 = arith.constant 0 : index
    %c0_194 = arith.constant 0 : index
    %199 = vector.load %arg11[%c0_192, %c0_193, %c0_194] : memref<5x80x40xf32, #tpu.memory_space<vmem>>, vector<1x80x40xf32>
    %200 = vector.shape_cast %199 : vector<1x80x40xf32> to vector<80x40xf32>
    %cst_195 = arith.constant dense<0.000000e+00> : vector<4x40xf32>
    %201 = tpu.matmul %198, %200, %cst_195 {dimension_numbers = #tpu.dot_dimension_numbers<[1], [0], [0], [1], [0, 0, 1, 1], [], []>} : vector<4x80xf32>, vector<80x40xf32>, vector<4x40xf32> -> vector<4x40xf32>
    %202 = arith.addf %197, %201 : vector<4x40xf32>
    %c1_196 = arith.constant 1 : index
    %c0_197 = arith.constant 0 : index
    %203 = vector.load %arg19[%c1_196, %c0_197] : memref<8x80xf32, #tpu.memory_space<vmem>>, vector<4x80xf32>
    %c1_198 = arith.constant 1 : index
    %c0_199 = arith.constant 0 : index
    %c0_200 = arith.constant 0 : index
    %204 = vector.load %arg11[%c1_198, %c0_199, %c0_200] : memref<5x80x40xf32, #tpu.memory_space<vmem>>, vector<1x80x40xf32>
    %205 = vector.shape_cast %204 : vector<1x80x40xf32> to vector<80x40xf32>
    %cst_201 = arith.constant dense<0.000000e+00> : vector<4x40xf32>
    %206 = tpu.matmul %203, %205, %cst_201 {dimension_numbers = #tpu.dot_dimension_numbers<[1], [0], [0], [1], [0, 0, 1, 1], [], []>} : vector<4x80xf32>, vector<80x40xf32>, vector<4x40xf32> -> vector<4x40xf32>
    %207 = arith.addf %202, %206 : vector<4x40xf32>
    %c2_202 = arith.constant 2 : index
    %c0_203 = arith.constant 0 : index
    %208 = vector.load %arg19[%c2_202, %c0_203] : memref<8x80xf32, #tpu.memory_space<vmem>>, vector<4x80xf32>
    %c2_204 = arith.constant 2 : index
    %c0_205 = arith.constant 0 : index
    %c0_206 = arith.constant 0 : index
    %209 = vector.load %arg11[%c2_204, %c0_205, %c0_206] : memref<5x80x40xf32, #tpu.memory_space<vmem>>, vector<1x80x40xf32>
    %210 = vector.shape_cast %209 : vector<1x80x40xf32> to vector<80x40xf32>
    %cst_207 = arith.constant dense<0.000000e+00> : vector<4x40xf32>
    %211 = tpu.matmul %208, %210, %cst_207 {dimension_numbers = #tpu.dot_dimension_numbers<[1], [0], [0], [1], [0, 0, 1, 1], [], []>} : vector<4x80xf32>, vector<80x40xf32>, vector<4x40xf32> -> vector<4x40xf32>
    %212 = arith.addf %207, %211 : vector<4x40xf32>
    %c3_208 = arith.constant 3 : index
    %c0_209 = arith.constant 0 : index
    %213 = vector.load %arg19[%c3_208, %c0_209] : memref<8x80xf32, #tpu.memory_space<vmem>>, vector<4x80xf32>
    %c3_210 = arith.constant 3 : index
    %c0_211 = arith.constant 0 : index
    %c0_212 = arith.constant 0 : index
    %214 = vector.load %arg11[%c3_210, %c0_211, %c0_212] : memref<5x80x40xf32, #tpu.memory_space<vmem>>, vector<1x80x40xf32>
    %215 = vector.shape_cast %214 : vector<1x80x40xf32> to vector<80x40xf32>
    %cst_213 = arith.constant dense<0.000000e+00> : vector<4x40xf32>
    %216 = tpu.matmul %213, %215, %cst_213 {dimension_numbers = #tpu.dot_dimension_numbers<[1], [0], [0], [1], [0, 0, 1, 1], [], []>} : vector<4x80xf32>, vector<80x40xf32>, vector<4x40xf32> -> vector<4x40xf32>
    %217 = arith.addf %212, %216 : vector<4x40xf32>
    %c4_214 = arith.constant 4 : index
    %c0_215 = arith.constant 0 : index
    %218 = vector.load %arg19[%c4_214, %c0_215] : memref<8x80xf32, #tpu.memory_space<vmem>>, vector<4x80xf32>
    %c4_216 = arith.constant 4 : index
    %c0_217 = arith.constant 0 : index
    %c0_218 = arith.constant 0 : index
    %219 = vector.load %arg11[%c4_216, %c0_217, %c0_218] : memref<5x80x40xf32, #tpu.memory_space<vmem>>, vector<1x80x40xf32>
    %220 = vector.shape_cast %219 : vector<1x80x40xf32> to vector<80x40xf32>
    %cst_219 = arith.constant dense<0.000000e+00> : vector<4x40xf32>
    %221 = tpu.matmul %218, %220, %cst_219 {dimension_numbers = #tpu.dot_dimension_numbers<[1], [0], [0], [1], [0, 0, 1, 1], [], []>} : vector<4x80xf32>, vector<80x40xf32>, vector<4x40xf32> -> vector<4x40xf32>
    %222 = arith.addf %217, %221 : vector<4x40xf32>
    %c0_220 = arith.constant 0 : index
    %c0_221 = arith.constant 0 : index
    %223 = vector.load %arg12[%c0_220, %c0_221] : memref<1x40xf32, #tpu.memory_space<vmem>>, vector<1x40xf32>
    %224 = vector.broadcast %223 : vector<1x40xf32> to vector<4x40xf32>
    %225 = arith.addf %222, %224 : vector<4x40xf32>
    %cst_222 = arith.constant 0.000000e+00 : f32
    %226 = vector.broadcast %cst_222 : f32 to vector<4x40xf32>
    %227 = arith.maximumf %225, %226 : vector<4x40xf32>
    %c0_223 = arith.constant 0 : index
    %c0_224 = arith.constant 0 : index
    %228 = vector.load %arg13[%c0_223, %c0_224] : memref<40x4xf32, #tpu.memory_space<vmem>>, vector<40x4xf32>
    %cst_225 = arith.constant dense<0.000000e+00> : vector<4x4xf32>
    %229 = tpu.matmul %227, %228, %cst_225 {dimension_numbers = #tpu.dot_dimension_numbers<[1], [0], [0], [1], [0, 0, 1, 1], [], []>} : vector<4x40xf32>, vector<40x4xf32>, vector<4x4xf32> -> vector<4x4xf32>
    %c0_226 = arith.constant 0 : index
    %c0_227 = arith.constant 0 : index
    %230 = vector.load %arg14[%c0_226, %c0_227] : memref<1x4xf32, #tpu.memory_space<vmem>>, vector<1x4xf32>
    %231 = vector.broadcast %230 : vector<1x4xf32> to vector<4x4xf32>
    %232 = arith.addf %229, %231 : vector<4x4xf32>
    %c0_228 = arith.constant 0 : index
    %c0_229 = arith.constant 0 : index
    %c0_230 = arith.constant 0 : index
    %233 = vector.load %arg15[%c0_228, %c0_229, %c0_230] : memref<1x4x4xf32, #tpu.memory_space<vmem>>, vector<1x4x4xf32>
    %234 = vector.shape_cast %233 : vector<1x4x4xf32> to vector<4x4xf32>
    %235 = vector.shape_cast %232 : vector<4x4xf32> to vector<1x4x4xf32>
    tpu.vector_store %arg15[%c0_228, %c0_229, %c0_230], %235 {strides = array<i32>} : memref<1x4x4xf32, #tpu.memory_space<vmem>>, vector<1x4x4xf32>,
    return
  }
  func.func @transform_0(%arg0: i32) -> (i32, i32, i32) {
    %c0_i32 = arith.constant 0 : i32
    %c0_i32_0 = arith.constant 0 : i32
    %c0_i32_1 = arith.constant 0 : i32
    return %arg0, %c0_i32, %c0_i32_0 : i32, i32, i32
  }
  func.func @transform_1(%arg0: i32) -> (i32, i32, i32) {
    %c0_i32 = arith.constant 0 : i32
    %c0_i32_0 = arith.constant 0 : i32
    %c0_i32_1 = arith.constant 0 : i32
    %c0_i32_2 = arith.constant 0 : i32
    return %c0_i32, %c0_i32_0, %c0_i32_1 : i32, i32, i32
  }
  func.func @transform_2(%arg0: i32) -> (i32, i32, i32) {
    %c0_i32 = arith.constant 0 : i32
    %c0_i32_0 = arith.constant 0 : i32
    %c0_i32_1 = arith.constant 0 : i32
    %c0_i32_2 = arith.constant 0 : i32
    return %c0_i32, %c0_i32_0, %c0_i32_1 : i32, i32, i32
  }
  func.func @transform_3(%arg0: i32) -> (i32, i32) {
    %c0_i32 = arith.constant 0 : i32
    %c0_i32_0 = arith.constant 0 : i32
    %c0_i32_1 = arith.constant 0 : i32
    return %c0_i32, %c0_i32_0 : i32, i32
  }
  func.func @transform_4(%arg0: i32) -> (i32, i32) {
    %c0_i32 = arith.constant 0 : i32
    %c0_i32_0 = arith.constant 0 : i32
    %c0_i32_1 = arith.constant 0 : i32
    return %c0_i32, %c0_i32_0 : i32, i32
  }
  func.func @transform_5(%arg0: i32) -> (i32, i32, i32) {
    %c0_i32 = arith.constant 0 : i32
    %c0_i32_0 = arith.constant 0 : i32
    %c0_i32_1 = arith.constant 0 : i32
    %c0_i32_2 = arith.constant 0 : i32
    return %c0_i32, %c0_i32_0, %c0_i32_1 : i32, i32, i32
  }
  func.func @transform_6(%arg0: i32) -> (i32, i32, i32) {
    %c0_i32 = arith.constant 0 : i32
    %c0_i32_0 = arith.constant 0 : i32
    %c0_i32_1 = arith.constant 0 : i32
    %c0_i32_2 = arith.constant 0 : i32
    return %c0_i32, %c0_i32_0, %c0_i32_1 : i32, i32, i32
  }
  func.func @transform_7(%arg0: i32) -> (i32, i32) {
    %c0_i32 = arith.constant 0 : i32
    %c0_i32_0 = arith.constant 0 : i32
    %c0_i32_1 = arith.constant 0 : i32
    return %c0_i32, %c0_i32_0 : i32, i32
  }
  func.func @transform_8(%arg0: i32) -> (i32, i32, i32) {
    %c0_i32 = arith.constant 0 : i32
    %c0_i32_0 = arith.constant 0 : i32
    %c0_i32_1 = arith.constant 0 : i32
    %c0_i32_2 = arith.constant 0 : i32
    return %c0_i32, %c0_i32_0, %c0_i32_1 : i32, i32, i32
  }
  func.func @transform_9(%arg0: i32) -> (i32, i32) {
    %c0_i32 = arith.constant 0 : i32
    %c0_i32_0 = arith.constant 0 : i32
    %c0_i32_1 = arith.constant 0 : i32
    return %c0_i32, %c0_i32_0 : i32, i32
  }
  func.func @transform_10(%arg0: i32) -> (i32, i32, i32) {
    %c0_i32 = arith.constant 0 : i32
    %c0_i32_0 = arith.constant 0 : i32
    %c0_i32_1 = arith.constant 0 : i32
    %c0_i32_2 = arith.constant 0 : i32
    return %c0_i32, %c0_i32_0, %c0_i32_1 : i32, i32, i32
  }
  func.func @transform_11(%arg0: i32) -> (i32, i32) {
    %c0_i32 = arith.constant 0 : i32
    %c0_i32_0 = arith.constant 0 : i32
    %c0_i32_1 = arith.constant 0 : i32
    return %c0_i32, %c0_i32_0 : i32, i32
  }
  func.func @transform_12(%arg0: i32) -> (i32, i32) {
    %c0_i32 = arith.constant 0 : i32
    %c0_i32_0 = arith.constant 0 : i32
    %c0_i32_1 = arith.constant 0 : i32
    return %c0_i32, %c0_i32_0 : i32, i32
  }
  func.func @transform_13(%arg0: i32) -> (i32, i32) {
    %c0_i32 = arith.constant 0 : i32
    %c0_i32_0 = arith.constant 0 : i32
    %c0_i32_1 = arith.constant 0 : i32
    return %c0_i32, %c0_i32_0 : i32, i32
  }
  func.func @transform_14(%arg0: i32) -> (i32, i32, i32) {
    %c0_i32 = arith.constant 0 : i32
    %c0_i32_0 = arith.constant 0 : i32
    %c0_i32_1 = arith.constant 0 : i32
    return %arg0, %c0_i32, %c0_i32_0 : i32, i32, i32
  }
}

</mosaic_0001>

<bundles_post_ra>
// kernel: tile.28
= control target key start
LH: loop header
LB: loop body
LE: loop exit
PB: predicated region body
PF: predicated region fallthrough
CT: control target
= control target key end

     0   :  { %s22_s0 = inlined_call_operand.vmem [shape: f32[20], index: 0, kind: input, shape index: {}]   ;;  %s23_s1 = inlined_call_operand.vmem [shape: f32[8,20], index: 1, kind: output, shape index: {}]  }
   0x1   :  { %v4_v0 = vld [vmem:[%s22_s0] ss:$0 sm:$0xff] }
   0x2   :  { %5 = vst [vmem:[%s23_s1] sm:$0xff] %v4_v0 }

// kernel: tile.29
= control target key start
LH: loop header
LB: loop body
LE: loop exit
PB: predicated region body
PF: predicated region fallthrough
CT: control target
= control target key end

     0   :  { %vm9_vm0 = vcmask 64512   ;;  %s82_s12 = smov 120   ;;  %s83_s13 = smov 80   ;;  %vm3_vm1 = vcmask 162816   ;;  %vm13_vm2 = vcmask 97280   ;;  %vm16_vm3 = vcmask 1048512   ;;  %s132_s0 = inlined_call_operand.vmem [shape: f32[8,20], index: 0, kind: input, shape index: {}]   ;;  %s133_s1 = inlined_call_operand.vmem [shape: f32[1,160], index: 1, kind: output, shape index: {}]  }
   0x1   :  { %v66_v0 = vld [vmem:[%s132_s0 + $0x6] sm:$0x1]   ;;  %v69_v3 = vld [vmem:[%s132_s0 + $0x4] sm:$0x1]   ;;  %v68_v4 = vld [vmem:[%s132_s0 + $0x5] sm:$0x1]  }
   0x2   :  { %v67_v1 = vld [vmem:[%s132_s0 + $0x6] sm:$0x1]   ;;  %26 = vrot.lane.b32.xlu1 %v69_v3, %s83_s13  ;;  %v70_v5 = vld [vmem:[%s132_s0 + $0x3] sm:$0x1]   ;;  %v2_v6 = vld [vmem:[%s132_s0] sm:$0x1]  }
   0x3   :  { %v10_v2 = vsel %vm9_vm0, %v67_v1, %v66_v0  ;;  %4 = vst.msk [vmem:[#allocation0] sm:$0x1] %vm3_vm1, %v2_v6   ;;  %s84_s20 = smov 100   ;;  %s85_s21 = smov 60   ;;  %v71_v7 = vld [vmem:[%s132_s0 + $0x2] sm:$0x1]  }
   0x4   :  { %11 = vrot.lane.b32.xlu0 %v10_v2, %s82_s12  ;;  %v72_v8 = vld [vmem:[%s132_s0 + $0x1] sm:$0x1]   ;;  %s86_s26 = smov 40   ;;  %s87_s27 = smov 20   ;;  %v73_v9 = vld [vmem:[%s132_s0 + $0x7] sm:$0x1]  }
   0x5   :  { %s88_s0 = smov 12   ;;  %vm22_vm4 = vcmask 982816   ;;  %vm28_vm5 = vcmask 818816   ;;  %vm34_vm6 = vcmask 654816   ;;  %vm40_vm7 = vcmask 490816  }
   0x6   :  { %32 = vrot.lane.b32.xlu1 %v70_v5, %s85_s21  ;;  %vm46_vm8 = vcmask 326816   ;;  %vm52_vm9 = vcmask 261216  }
   0x8   :  { %20 = vrot.lane.b32.xlu0 %v68_v4, %s84_s20 }
   0xa   :  { %44 = vrot.lane.b32.xlu1 %v72_v8, %s87_s27 }
   0xc   :  { %38 = vrot.lane.b32.xlu0 %v71_v7, %s86_s26 }
  0x10   :  { %50 = vrot.lane.b32.xlu0 %v73_v9, %s88_s0 }
  0x74   :  { %v27_v11 = vpop.permute.xlu1 %26  }
  0x76   :  { %v12_v10 = vpop.permute.xlu0 %11  }
  0x77   :  { %15 = vst.msk [vmem:[#allocation0 + $0x8] sm:$0x1] %vm13_vm2, %v12_v10  }
  0x78   :  { %17 = vst.msk [vmem:[#allocation0] sm:$0x1] %vm16_vm3, %v12_v10   ;;  %v33_v13 = vpop.permute.xlu1 %32  }
  0x7a   :  { %v21_v12 = vpop.permute.xlu0 %20  }
  0x7b   :  { %23 = vst.msk [vmem:[#allocation0] sm:$0x1] %vm22_vm4, %v21_v12  }
  0x7c   :  { %29 = vst.msk [vmem:[#allocation0] sm:$0x1] %vm28_vm5, %v27_v11   ;;  %v45_v15 = vpop.permute.xlu1 %44  }
  0x7d   :  { %35 = vst.msk [vmem:[#allocation0] sm:$0x1] %vm34_vm6, %v33_v13  }
  0x7e   :  { %v39_v14 = vpop.permute.xlu0 %38  }
  0x7f   :  { %41 = vst.msk [vmem:[#allocation0] sm:$0x1] %vm40_vm7, %v39_v14  }
  0x80   :  { %47 = vst.msk [vmem:[#allocation0] sm:$0x1] %vm46_vm8, %v45_v15  }
  0x82   :  { %v51_v16 = vpop.permute.xlu0 %50  }
  0x83   :  { %54 = vst.msk [vmem:[#allocation0 + $0x8] sm:$0x1] %vm52_vm9, %v51_v16  }
  0x87   :  { %v58_v17 = vld [vmem:[#allocation0] sm:$0x1] }
  0x88   :  { %60 = vst [vmem:[%s133_s1] sm:$0x1] %v58_v17 }
  0x8a   :  { %v62_v18 = vld [vmem:[#allocation0 + $0x8] sm:$0x1] }
  0x8b   :  { %74 = vst [vmem:[%s133_s1 + $0x1] sm:$0x1] %v62_v18 }

// kernel: tile.38
= control target key start
LH: loop header
LB: loop body
LE: loop exit
PB: predicated region body
PF: predicated region fallthrough
CT: control target
= control target key end

     0   :  { %s22_s0 = inlined_call_operand.vmem [shape: f32[40], index: 0, kind: input, shape index: {}]   ;;  %s23_s1 = inlined_call_operand.vmem [shape: f32[4,40], index: 1, kind: output, shape index: {}]  }
   0x1   :  { %v4_v0 = vld [vmem:[%s22_s0] ss:$0 sm:$0xff] }
   0x2   :  { %5 = vst [vmem:[%s23_s1] sm:$0xf] %v4_v0 }

// kernel: tile.39
= control target key start
LH: loop header
LB: loop body
LE: loop exit
PB: predicated region body
PF: predicated region fallthrough
CT: control target
= control target key end

     0   :  { %vm13_vm0 = vcmask 64512   ;;  %vm7_vm1 = vcmask 326656   ;;  %s50_s8 = smov 40   ;;  %s51_s9 = smov 80   ;;  %vm17_vm2 = vcmask 261120   ;;  %vm20_vm3 = vcmask 1048512   ;;  %s71_s0 = inlined_call_operand.vmem [shape: f32[4,40], index: 0, kind: input, shape index: {}]   ;;  %s72_s1 = inlined_call_operand.vmem [shape: f32[1,160], index: 1, kind: output, shape index: {}]  }
   0x1   :  { %v4_v0 = vld [vmem:[%s71_s0] sm:$0xf]  ;;  %s49_s0 = smov 120   ;;  %vm26_vm4 = vcmask 982656   ;;  %vm32_vm5 = vcmask 654656  }
   0x2   :  { %5 = vst [vmem:[#allocation1] sm:$0xf] %v4_v0 }
   0x9   :  { %v10_v1 = vld [vmem:[#allocation1 + $0x3] sm:$0x1]   ;;  %v29_v4 = vld [vmem:[#allocation1 + $0x1] sm:$0x1]   ;;  %v6_v5 = vld [vmem:[#allocation1] sm:$0x1]  }
   0xa   :  { %v12_v2 = vld [vmem:[#allocation1 + $0x3] sm:$0x1]   ;;  %30 = vrot.lane.b32.xlu1 %v29_v4, %s50_s8  ;;  %8 = vst.msk [vmem:[#allocation0] sm:$0x1] %vm7_vm1, %v6_v5   ;;  %v23_v6 = vld [vmem:[#allocation1 + $0x2] sm:$0x1]  }
   0xb   :  { %v14_v3 = vsel %vm13_vm0, %v12_v2, %v10_v1 }
   0xc   :  { %15 = vrot.lane.b32.xlu0 %v14_v3, %s49_s0 }
  0x10   :  { %24 = vrot.lane.b32.xlu0 %v23_v6, %s51_s9 }
  0x7c   :  { %v31_v8 = vpop.permute.xlu1 %30  }
  0x7e   :  { %v16_v7 = vpop.permute.xlu0 %15  }
  0x7f   :  { %19 = vst.msk [vmem:[#allocation0 + $0x8] sm:$0x1] %vm17_vm2, %v16_v7  }
  0x80   :  { %21 = vst.msk [vmem:[#allocation0] sm:$0x1] %vm20_vm3, %v16_v7  }
  0x82   :  { %v25_v9 = vpop.permute.xlu0 %24  }
  0x83   :  { %27 = vst.msk [vmem:[#allocation0] sm:$0x1] %vm26_vm4, %v25_v9  }
  0x84   :  { %33 = vst.msk [vmem:[#allocation0] sm:$0x1] %vm32_vm5, %v31_v8  }
  0x86   :  { %v41_v10 = vld [vmem:[#allocation0 + $0x8] sm:$0x1] }
  0x87   :  { %45 = vst [vmem:[%s72_s1 + $0x1] sm:$0x1] %v41_v10 }
  0x8b   :  { %v37_v11 = vld [vmem:[#allocation0] sm:$0x1] }
  0x8c   :  { %39 = vst [vmem:[%s72_s1] sm:$0x1] %v37_v11 }

// kernel: tile.43
= control target key start
LH: loop header
LB: loop body
LE: loop exit
PB: predicated region body
PF: predicated region fallthrough
CT: control target
= control target key end

     0   :  { %s22_s0 = inlined_call_operand.vmem [shape: f32[20], index: 0, kind: input, shape index: {}]   ;;  %s23_s1 = inlined_call_operand.vmem [shape: f32[4,20], index: 1, kind: output, shape index: {}]  }
   0x1   :  { %v4_v0 = vld [vmem:[%s22_s0] ss:$0 sm:$0xff] }
   0x2   :  { %5 = vst [vmem:[%s23_s1] sm:$0xf] %v4_v0 }

// kernel: tile.44
= control target key start
LH: loop header
LB: loop body
LE: loop exit
PB: predicated region body
PF: predicated region fallthrough
CT: control target
= control target key end

     0   :  { %vm7_vm0 = vcmask 162816   ;;  %s37_s8 = smov 20   ;;  %s38_s9 = smov 40   ;;  %vm13_vm1 = vcmask 654816   ;;  %vm19_vm2 = vcmask 490816   ;;  %vm25_vm3 = vcmask 326816   ;;  %s55_s0 = inlined_call_operand.vmem [shape: f32[4,20], index: 0, kind: input, shape index: {}]   ;;  %s56_s1 = inlined_call_operand.vmem [shape: f32[1,80], index: 1, kind: output, shape index: {}]  }
   0x1   :  { %v4_v0 = vld [vmem:[%s55_s0] sm:$0xf]  ;;  %s36_s0 = smov 60  }
   0x2   :  { %5 = vst [vmem:[#allocation1] sm:$0xf] %v4_v0 }
   0x9   :  { %v10_v1 = vld [vmem:[#allocation1 + $0x3] sm:$0x1]   ;;  %v22_v2 = vld [vmem:[#allocation1 + $0x1] sm:$0x1]   ;;  %v6_v3 = vld [vmem:[#allocation1] sm:$0x1]  }
   0xa   :  { %11 = vrot.lane.b32.xlu0 %v10_v1, %s36_s0  ;;  %23 = vrot.lane.b32.xlu1 %v22_v2, %s37_s8  ;;  %v16_v4 = vld [vmem:[#allocation1 + $0x2] sm:$0x1]   ;;  %8 = vst.msk [vmem:[#allocation0] sm:$0x1] %vm7_vm0, %v6_v3  }
   0xe   :  { %17 = vrot.lane.b32.xlu0 %v16_v4, %s38_s9 }
  0x7c   :  { %v12_v5 = vpop.permute.xlu0 %11   ;;  %v24_v6 = vpop.permute.xlu1 %23  }
  0x7d   :  { %14 = vst.msk [vmem:[#allocation0] sm:$0x1] %vm13_vm1, %v12_v5  }
  0x80   :  { %v18_v7 = vpop.permute.xlu0 %17  }
  0x81   :  { %20 = vst.msk [vmem:[#allocation0] sm:$0x1] %vm19_vm2, %v18_v7  }
  0x82   :  { %26 = vst.msk [vmem:[#allocation0] sm:$0x1] %vm25_vm3, %v24_v6  }
  0x89   :  { %v30_v8 = vld [vmem:[#allocation0] sm:$0x1] }
  0x8a   :  { %32 = vst [vmem:[%s56_s1] sm:$0x1] %v30_v8 }

// kernel: tile.48
= control target key start
LH: loop header
LB: loop body
LE: loop exit
PB: predicated region body
PF: predicated region fallthrough
CT: control target
= control target key end

     0   :  { %s22_s0 = inlined_call_operand.vmem [shape: f32[10], index: 0, kind: input, shape index: {}]   ;;  %s23_s1 = inlined_call_operand.vmem [shape: f32[4,10], index: 1, kind: output, shape index: {}]  }
   0x1   :  { %v4_v0 = vld [vmem:[%s22_s0] ss:$0 sm:$0xff] }
   0x2   :  { %5 = vst [vmem:[%s23_s1] sm:$0xf] %v4_v0 }

// kernel: tile.49
= control target key start
LH: loop header
LB: loop body
LE: loop exit
PB: predicated region body
PF: predicated region fallthrough
CT: control target
= control target key end

     0   :  { %vm7_vm0 = vcmask 80896   ;;  %s37_s8 = smov 10   ;;  %s38_s9 = smov 20   ;;  %vm13_vm1 = vcmask 326896   ;;  %vm19_vm2 = vcmask 244896   ;;  %vm25_vm3 = vcmask 162896   ;;  %s55_s0 = inlined_call_operand.vmem [shape: f32[4,10], index: 0, kind: input, shape index: {}]   ;;  %s56_s1 = inlined_call_operand.vmem [shape: f32[1,40], index: 1, kind: output, shape index: {}]  }
   0x1   :  { %v4_v0 = vld [vmem:[%s55_s0] sm:$0xf]  ;;  %s36_s0 = smov 30  }
   0x2   :  { %5 = vst [vmem:[#allocation1] sm:$0xf] %v4_v0 }
   0x9   :  { %v10_v1 = vld [vmem:[#allocation1 + $0x3] sm:$0x1]   ;;  %v22_v2 = vld [vmem:[#allocation1 + $0x1] sm:$0x1]   ;;  %v6_v3 = vld [vmem:[#allocation1] sm:$0x1]  }
   0xa   :  { %11 = vrot.lane.b32.xlu0 %v10_v1, %s36_s0  ;;  %23 = vrot.lane.b32.xlu1 %v22_v2, %s37_s8  ;;  %v16_v4 = vld [vmem:[#allocation1 + $0x2] sm:$0x1]   ;;  %8 = vst.msk [vmem:[#allocation0] sm:$0x1] %vm7_vm0, %v6_v3  }
   0xe   :  { %17 = vrot.lane.b32.xlu0 %v16_v4, %s38_s9 }
  0x7c   :  { %v12_v5 = vpop.permute.xlu0 %11   ;;  %v24_v6 = vpop.permute.xlu1 %23  }
  0x7d   :  { %14 = vst.msk [vmem:[#allocation0] sm:$0x1] %vm13_vm1, %v12_v5  }
  0x80   :  { %v18_v7 = vpop.permute.xlu0 %17  }
  0x81   :  { %20 = vst.msk [vmem:[#allocation0] sm:$0x1] %vm19_vm2, %v18_v7  }
  0x82   :  { %26 = vst.msk [vmem:[#allocation0] sm:$0x1] %vm25_vm3, %v24_v6  }
  0x89   :  { %v30_v8 = vld [vmem:[#allocation0] sm:$0x1] }
  0x8a   :  { %32 = vst [vmem:[%s56_s1] sm:$0x1] %v30_v8 }

// kernel: mcnn_col2_forward.1
= control target key start
LH: loop header
LB: loop body
LE: loop exit
PB: predicated region body
PF: predicated region fallthrough
CT: control target
= control target key end

     0   :  { %s8282_s0 = inlined_call_operand.vmem [shape: f32[2,16,16], index: 0, kind: input, shape index: {}]   ;;  %s8283_s1 = inlined_call_operand.vmem [shape: f32[7,16,160], index: 1, kind: input, shape index: {}]   ;;  %s8284_s2 = inlined_call_operand.vmem [shape: f32[7,16,160], index: 2, kind: input, shape index: {}]   ;;  %s8285_s3 = inlined_call_operand.vmem [shape: f32[1,160], index: 3, kind: input, shape index: {}]   ;;  %s8286_s4 = inlined_call_operand.vmem [shape: f32[1,160], index: 4, kind: input, shape index: {}]   ;;  %s8287_s5 = inlined_call_operand.vmem [shape: f32[5,160,160], index: 5, kind: input, shape index: {}]   ;;  %s8288_s6 = inlined_call_operand.vmem [shape: f32[5,160,160], index: 6, kind: input, shape index: {}]   ;;  %s8289_s7 = inlined_call_operand.vmem [shape: f32[1,160], index: 7, kind: input, shape index: {}]   ;;  %s8290_s8 = inlined_call_operand.vmem [shape: f32[5,160,80], index: 8, kind: input, shape index: {}]   ;;  %s8291_s9 = inlined_call_operand.vmem [shape: f32[1,80], index: 9, kind: input, shape index: {}]   ;;  %s8292_s10 = inlined_call_operand.vmem [shape: f32[5,80,40], index: 10, kind: input, shape index: {}]   ;;  %s8293_s11 = inlined_call_operand.vmem [shape: f32[1,40], index: 11, kind: input, shape index: {}]   ;;  %s8294_s12 = inlined_call_operand.vmem [shape: f32[40,4], index: 12, kind: input, shape index: {}]   ;;  %s8295_s13 = inlined_call_operand.vmem [shape: f32[1,4], index: 13, kind: input, shape index: {}]   ;;  %s8296_s14 = inlined_call_operand.hbm [shape: f32[2,4,4], index: 14, kind: output, shape index: {}]  }
   0x1   :  { %8301 = sst [smem:[#allocation13_spill]] %s8282_s0 }
   0x2   :  { %19 = vsyncpa [#allocation7], 0 }
   0x3   :  { %21 = vsyncpa [#allocation7 + $0x1], 0  ;;  %s6074_s29 = smov 0   ;;  %s6076_s30 = smov 0  }
   0x4   :  { %s6078_s15 = smov 0   ;;  %s6080_s16 = smov 0  }
   0x5 LB: > { %8302 = sst [smem:[#allocation9_spill]] %s5988_s15  ;;  %s6095_s17 = sadd.s32 4294967295, %s5992_s16   ;;  %s5992_s16 = sphi %s6080_s16, %s8310_s16   ;;  %s5988_s15 = sphi %s6078_s15, %s8312_s15   ;;  %s5984_s30 = sphi %s6076_s30, %s8314_s30   ;;  %s5980_s29 = sphi %s6074_s29, %s8313_s29  }
   0x6   : > { %s4381_s18 = sadd.s32 4294967294, %s5992_s16   ;;  %s6099_s19 = sadd.s32 1, %s5992_s16  }
   0x7   : > { %8303 = sst [smem:[#allocation10_spill]] %s6099_s19  ;;  %s333_s20 = sadd.s32 1, %s5988_s15 }
   0x8   : > { %s330_s21 = ssub.s32 %s5992_s16, %s6099_s19  ;;  %p343_p0 = scmp.ne.s32.totalorder %s5988_s15, %s5984_s30 }
   0x9   : > { %p331_p1 = scmp.eq.s32.totalorder %s330_s21, 0  ;;  %p344_p2 = scmp.eq.s32.totalorder %s6095_s17, 1 }
   0xa   : > { %p349_p3 = scmp.ne.s32.totalorder %s5984_s30, %s5980_s29  ;;  %p350_p4 = scmp.eq.s32.totalorder %s4381_s18, 1 }
   0xb   : > { %s6110_s22 = scalar_select %p331_p1, %s5988_s15, %s333_s20  }
   0xc   : > { %p6112_p5 = por %p344_p2, %p343_p0  ;;  %p6116_p6 = por %p350_p4, %p349_p3 }
   0xd   : > { %8304 = sst [smem:[#allocation11_spill]] %s6110_s22  ;;  %p4384_p7 = scmp.ge.s32.totalorder %s5992_s16, 1 }
   0xe   : > { %s8306_s24 = scalar_select %p6116_p6, 1, 0 }
   0xf   : > { %p415_p8 = scmp.lt.s32.totalorder %s5992_s16, 3 }
  0x10   : > { %8307 = sst [smem:[#allocation12_spill]] %s8306_s24 }
  0x11   : > { %p416_p9 = pnand %p4384_p7, %p415_p8 }
  0x12   : > { %v4389_v0 = vld [vmem:[%s8283_s1 + $0x28] sm:$0xff] (!%p416_p9)  ;;  %v4391_v1 = vld [vmem:[%s8283_s1 + $0x38] sm:$0xff] (!%p416_p9)  ;;  %v4388_v2 = vld [vmem:[%s8283_s1 + $0x20] sm:$0xff] (!%p416_p9)  ;;  %p461_p10 = scmp.lt.s32.totalorder (!%p416_p9), %s6095_s17, 1  ;;  %vm466_vm0 = vcmask (!%p416_p9), 130048   ;;  %v5994_v5 = vmov (!%p416_p9), 0.0  }
  0x13   : > { %419 = sbr.rel (%p416_p9) target bundleno = 1544 (0x608), region = 76  ;;  %v5134_v3 = vpack.c.bf16 (!%p416_p9), %v4391_v1, %v4389_v0  ;;  %v4390_v4 = vld [vmem:[%s8283_s1 + $0x30] sm:$0xff] (!%p416_p9)  ;;  %562 = vmatprep.mubr.f32.mxu0 (!%p416_p9), %v5994_v5  ;;  %1849 = vst [vmem:[#allocation3] sm:$0xff] (!%p416_p9), %v5994_v5  ;;  %1852 = vst [vmem:[#allocation3 + $0x10] sm:$0xf] (!%p416_p9), %v5994_v5  ;;  %568 = vmatprep.mubr.f32.mxu1 (!%p416_p9), %v5994_v5  ;;  %v4397_v6 = vld [vmem:[%s8284_s2 + $0x28] sm:$0xff] (!%p416_p9) }
  0x14   : > { %3224 = vst [vmem:[#allocation4] sm:$0xff] (!%p416_p9), %v5994_v5  ;;  %v4399_v7 = vld [vmem:[%s8284_s2 + $0x38] sm:$0xff] (!%p416_p9)  ;;  %467 = vst.msk [vmem:[#allocation2] sm:$0xff] (!%p416_p9), %vm466_vm0, %v5994_v5  ;;  %vm469_vm1 = vcmask (!%p416_p9), 128000   ;;  %v5136_v8 = vpack.c.bf16 (!%p416_p9), %v4390_v4, %v4388_v2  ;;  %v478_v10 = vld [vmem:[%s8283_s1 + $0x8] sm:$0xff] (!%p416_p9)  ;;  %s8308_s0 = sld [smem:[#allocation13_spill]] (!%p416_p9) }
  0x15   : > { %468 = vst.msk [vmem:[#allocation2 + $0x8] sm:$0xff] (!%p416_p9), %vm466_vm0, %v5994_v5  ;;  %v5142_v9 = vpack.c.bf16 (!%p416_p9), %v4399_v7, %v4397_v6  ;;  %5821 = vmatprep.subr.bf16.mxu1 (!%p416_p9), %v5134_v3  ;;  %5135 = vmatprep.subr.bf16.mxu0 (!%p416_p9), %v5134_v3  ;;  %v480_v11 = vld [vmem:[%s8283_s1 + $0x18] sm:$0xff] (!%p416_p9)  ;;  %v4396_v15 = vld [vmem:[%s8284_s2 + $0x20] sm:$0xff] (!%p416_p9)  ;;  %v4398_v16 = vld [vmem:[%s8284_s2 + $0x30] sm:$0xff] (!%p416_p9)  ;;  %vm1850_vm2 = vcmask (!%p416_p9), 261120   ;;  %vm1853_vm3 = vcmask (!%p416_p9), 257024  }
  0x16   : > { %470 = vst.msk [vmem:[#allocation2 + $0x10] sm:$0x3f] (!%p416_p9), %vm469_vm1, %v5994_v5  ;;  %5822 = vmatpush1.bf16.msra.mxu1 (!%p416_p9), %v5136_v8  ;;  %5137 = vmatpush1.bf16.msra.mxu0 (!%p416_p9), %v5136_v8  ;;  %v5138_v12 = vpack.c.bf16 (!%p416_p9), %v480_v11, %v478_v10  ;;  %v477_v17 = vld [vmem:[%s8283_s1] sm:$0xff] (!%p416_p9)  ;;  %v479_v18 = vld [vmem:[%s8283_s1 + $0x10] sm:$0xff] (!%p416_p9)  ;;  %v482_v19 = vld [vmem:[%s8284_s2 + $0x8] sm:$0xff] (!%p416_p9)  ;;  %v5144_v23 = vpack.c.bf16 (!%p416_p9), %v4398_v16, %v4396_v15  ;;  %vm1927_vm4 = vcmask (!%p416_p9), 1043459  }
  0x17   : > { %5143 = vmatprep.subr.bf16.mxu1 (!%p416_p9), %v5142_v9  ;;  %v484_v20 = vld [vmem:[%s8284_s2 + $0x18] sm:$0xff] (!%p416_p9)  ;;  %v4405_v21 = vld [vmem:[%s8283_s1 + $0x48] sm:$0xff] (!%p416_p9)  ;;  %v5140_v24 = vpack.c.bf16 (!%p416_p9), %v479_v18, %v477_v17  ;;  %v481_v26 = vld [vmem:[%s8284_s2] sm:$0xff] (!%p416_p9)  ;;  %1851 = vst.msk [vmem:[#allocation3 + $0x8] sm:$0xff] (!%p416_p9), %vm1850_vm2, %v5994_v5  ;;  %vm1929_vm5 = vcmask (!%p416_p9), 1044484   ;;  %vm1931_vm6 = vcmask (!%p416_p9), 1045509  }
  0x18   : > { %5139 = vmatprep.subr.bf16.mxu0 (!%p416_p9), %v5138_v12  ;;  %v4407_v22 = vld [vmem:[%s8283_s1 + $0x58] sm:$0xff] (!%p416_p9)  ;;  %v5146_v25 = vpack.c.bf16 (!%p416_p9), %v484_v20, %v482_v19  ;;  %v483_v27 = vld [vmem:[%s8284_s2 + $0x10] sm:$0xff] (!%p416_p9)  ;;  %v4411_v28 = vld [vmem:[%s8284_s2 + $0x48] sm:$0xff] (!%p416_p9)  ;;  %1854 = vst.msk [vmem:[#allocation3 + $0x18] sm:$0xf] (!%p416_p9), %vm1853_vm3, %v5994_v5  ;;  %vm1933_vm7 = vcmask (!%p416_p9), 1046534  }
  0x19   : > { %v5150_v31 = vpack.c.bf16 (!%p416_p9), %v4407_v22, %v4405_v21  ;;  %v4413_v32 = vld [vmem:[%s8284_s2 + $0x58] sm:$0xff] (!%p416_p9)  ;;  %v5148_v33 = vpack.c.bf16 (!%p416_p9), %v483_v27, %v481_v26  ;;  %v4404_v34 = vld [vmem:[%s8283_s1 + $0x40] sm:$0xff] (!%p416_p9)  ;;  %v4406_v35 = vld [vmem:[%s8283_s1 + $0x50] sm:$0xff] (!%p416_p9)  ;;  %3225 = vst.msk [vmem:[#allocation4 + $0x8] sm:$0xff] (!%p416_p9), %vm1850_vm2, %v5994_v5  ;;  %vm1935_vm8 = vcmask (!%p416_p9), 1047559   ;;  %vm1942_vm9 = vcmask (!%p416_p9), 1041409  }
  0x1a   : > { %s462_s22 = scalar_select %p461_p10, %s6095_s17, 1  ;;  %v5154_v36 = vpack.c.bf16 %v4413_v32, %v4411_v28  ;;  %v4417_v37 = vld [vmem:[%s8283_s1 + $0x68] sm:$0xff]  ;;  %v4419_v38 = vld [vmem:[%s8283_s1 + $0x78] sm:$0xff]  ;;  %v5152_v40 = vpack.c.bf16 %v4406_v35, %v4404_v34  ;;  %v4410_v41 = vld [vmem:[%s8284_s2 + $0x40] sm:$0xff]  ;;  %vm1950_vm10 = vcmask 261122   ;;  %vm1953_vm11 = vcmask 254976  }
  0x1b   : > { %v4412_v42 = vld [vmem:[%s8284_s2 + $0x50] sm:$0xff]  ;;  %v5158_v43 = vpack.c.bf16 %v4419_v38, %v4417_v37  ;;  %v4423_v44 = vld [vmem:[%s8284_s2 + $0x68] sm:$0xff]  ;;  %v4425_v45 = vld [vmem:[%s8284_s2 + $0x78] sm:$0xff]  ;;  %vm2086_vm12 = vcmask 1046528   ;;  %vm2473_vm13 = vcmask 1045504   ;;  %vm2719_vm14 = vcmask 1044480  }
  0x1c   : > { %s4944_s26 = sshll.u32 %s462_s22, 4  ;;  %v5156_v47 = vpack.c.bf16 %v4412_v42, %v4410_v41  ;;  %v4416_v48 = vld [vmem:[%s8283_s1 + $0x60] sm:$0xff]  ;;  %v4418_v49 = vld [vmem:[%s8283_s1 + $0x70] sm:$0xff]  ;;  %v5162_v50 = vpack.c.bf16 %v4425_v45, %v4423_v44  ;;  %v4429_v51 = vld [vmem:[%s8283_s1 + $0x88] sm:$0xff]  ;;  %vm2965_vm15 = vcmask 1043456   ;;  %vm3780_vm1 = vcmask 654336  }
  0x1d   : > { %s465_s15 = scalar_lea.vmem %s8308_s0, %s4944_s26  ;;  %v4431_v52 = vld [vmem:[%s8283_s1 + $0x98] sm:$0xff]  ;;  %v5160_v54 = vpack.c.bf16 %v4418_v49, %v4416_v48  ;;  %v4422_v55 = vld [vmem:[%s8284_s2 + $0x60] sm:$0xff]  ;;  %v4424_v56 = vld [vmem:[%s8284_s2 + $0x70] sm:$0xff]  ;;  %3781 = vst.msk [vmem:[#allocation5] sm:$0xff] %vm3780_vm1, %v5994_v5  ;;  %vm3782_vm3 = vcmask 650240   ;;  %s458_s19 = sand.u32 1, %s5984_s30  }
  0x1e   : > { %v471_v13 = vld [vmem:[%s465_s15] sm:$0xff]  ;;  %v472_v14 = vld [vmem:[%s465_s15 + $0x8] sm:$0xff]  ;;  %v5166_v57 = vpack.c.bf16 %v4431_v52, %v4429_v51  ;;  %v4437_v59 = vld [vmem:[%s8284_s2 + $0x98] sm:$0xff]  ;;  %v5164_v61 = vpack.c.bf16 %v4424_v56, %v4422_v55  ;;  %s4385_s22 = sshll.u32 %s458_s19, 2  ;;  %s4941_s0 = sshll.u32 %s6095_s17, 6 }
  0x1f   : > { %473 = vst.msk [vmem:[#allocation2 + $0x3] sm:$0xff] %vm466_vm0, %v471_v13  ;;  %474 = vst.msk [vmem:[#allocation2 + $0xb] sm:$0xff] %vm466_vm0, %v472_v14  ;;  %v4435_v58 = vld [vmem:[%s8284_s2 + $0x88] sm:$0xff]  ;;  %v4428_v62 = vld [vmem:[%s8283_s1 + $0x80] sm:$0xff]  ;;  %s460_s24 = scalar_lea.vmem [#allocation6], %s4385_s22  ;;  %s8240_s20 = scalar_lea.hbm %s8296_s14, %s4941_s0 }
  0x20   : > { %v4430_v63 = vld [vmem:[%s8283_s1 + $0x90] sm:$0xff]  ;;  %v5170_v0 = vpack.c.bf16 %v4437_v59, %v4435_v58  ;;  %v4441_v1 = vld [vmem:[%s8283_s1 + $0xa8] sm:$0xff]  ;;  %v4443_v2 = vld [vmem:[%s8283_s1 + $0xb8] sm:$0xff]  ;;  %s4322_s15 = sshll.u32 %s460_s24, 4  ;;  %s4309_s21 = scalar_lea.sflag [#allocation7], %s458_s19  ;;  %s8242_s15 = int_to_ptr.vmem [resolvable:$true] %s4322_s15 }
  0x21   : > { %v5168_v4 = vpack.c.bf16 %v4430_v63, %v4428_v62  ;;  %v4434_v6 = vld [vmem:[%s8284_s2 + $0x80] sm:$0xff]  ;;  %v4436_v7 = vld [vmem:[%s8284_s2 + $0x90] sm:$0xff]  ;;  %v5174_v8 = vpack.c.bf16 %v4443_v2, %v4441_v1  ;;  %v4447_v9 = vld [vmem:[%s8284_s2 + $0xa8] sm:$0xff]  ;;  %s5930_s25 = scalar_lea.vmem %s8242_s15, 64  ;;  %s5998_s17 = smov [#allocation6]  }
  0x22   : > { %v4449_v10 = vld [vmem:[%s8284_s2 + $0xb8] sm:$0xff]  ;;  %v5172_v12 = vpack.c.bf16 %v4436_v7, %v4434_v6  ;;  %v4440_v13 = vld [vmem:[%s8283_s1 + $0xa0] sm:$0xff]  ;;  %v4442_v14 = vld [vmem:[%s8283_s1 + $0xb0] sm:$0xff]  ;;  %p5931_p11 = scmp.ne.s32.totalorder %s8242_s15, %s5930_s25  ;;  %s5934_s22 = sshll.u32 %s5998_s17, 4  ;;  %s5935_s22 = int_to_ptr.vmem [resolvable:$false] %s5934_s22 }
  0x23   : > { %v5178_v15 = vpack.c.bf16 %v4449_v10, %v4447_v9  ;;  %v4453_v16 = vld [vmem:[%s8283_s1 + $0xc8] sm:$0xff]  ;;  %v4455_v17 = vld [vmem:[%s8283_s1 + $0xd8] sm:$0xff]  ;;  %v5176_v19 = vpack.c.bf16 %v4442_v14, %v4440_v13  ;;  %v4446_v20 = vld [vmem:[%s8284_s2 + $0xa0] sm:$0xff]  ;;  %s5936_s26 = scalar_lea.vmem %s5935_s22, 128  ;;  %p5937_p0 = scmp.lt.s32.totalorder %s8242_s15, %s5935_s22 }
  0x24   : > { %v4448_v21 = vld [vmem:[%s8284_s2 + $0xb0] sm:$0xff]  ;;  %v5182_v22 = vpack.c.bf16 %v4455_v17, %v4453_v16  ;;  %v4452_v27 = vld [vmem:[%s8283_s1 + $0xc0] sm:$0xff]  ;;  %v4473_v38 = vld [vmem:[%s8287_s5 + $0x148] sm:$0xff]  ;;  %p5932_p12 = pnand %p5931_p11, %p6112_p5  ;;  %p5938_p1 = scmp.lt.s32.totalorder %s5936_s26, %s5930_s25 }
  0x25   : > { %v5180_v26 = vpack.c.bf16 %v4448_v21, %v4446_v20  ;;  %v4454_v28 = vld [vmem:[%s8283_s1 + $0xd0] sm:$0xff]  ;;  %v4458_v32 = vld [vmem:[%s8284_s2 + $0xc0] sm:$0xff]  ;;  %v4517_v42 = vld [vmem:[%s8288_s6 + $0x158] sm:$0xff] }
  0x26   : > { %v485_v29 = vld [vmem:[#allocation2 + $0x1] sm:$0xff]  ;;  %v486_v30 = vld [vmem:[#allocation2 + $0x9] sm:$0xff]  ;;  %v4479_v51 = vld [vmem:[%s8287_s5 + $0x178] sm:$0xff]  ;;  %p5933_p13 = pneg %p5932_p12  ;;  %p5939_p2 = por %p5938_p1, %p5937_p0 }
  0x27   : > { %4392 = vmatmul.mubr.msk.f32.vlgmr.msra.gmra.mrb[0].mxu0 %vm466_vm0, %v485_v29  ;;  %4393 = vmatmul.mubr.msk.f32.vlgmr.msra.gmra.mrb[0].mxu1 %vm466_vm0, %v486_v30  ;;  %v475_v39 = vld [vmem:[#allocation2] sm:$0xff]  ;;  %v476_v46 = vld [vmem:[#allocation2 + $0x8] sm:$0xff]  ;;  %v4474_v45 = vld [vmem:[%s8287_s5 + $0x150] sm:$0xff] }
  0x28   : > { %5145 = vmatpush1.bf16.msra.mxu1 %v5144_v23  ;;  %5141 = vmatpush1.bf16.msra.mxu0 %v5140_v24  ;;  %v817_v53 = vld [vmem:[#allocation2 + $0x2] sm:$0xff]  ;;  %v818_v60 = vld [vmem:[#allocation2 + $0xa] sm:$0xff]  ;;  %v4461_v24 = vld [vmem:[%s8284_s2 + $0xd8] sm:$0xff]  ;;  %p5940_p3 = pnand %p5939_p2, %p5933_p13 }
  0x29   : > { %727 = vmatprep.mubr.f32.mxu1 %v5994_v5  ;;  %5147 = vmatprep.subr.bf16.mxu1 %v5146_v25  ;;  %v997_v3 = vld [vmem:[#allocation2 + $0x3] sm:$0xff]  ;;  %v998_v11 = vld [vmem:[#allocation2 + $0xb] sm:$0xff]  ;;  %v4483_v63 = vld [vmem:[%s8287_s5 + $0x198] sm:$0xff] }
  0x2a   : > { %645 = vmatprep.mubr.f32.mxu0 %v5994_v5  ;;  %5151 = vmatprep.subr.bf16.mxu0 %v5150_v31  ;;  %v1177_v18 = vld [vmem:[#allocation2 + $0x4] sm:$0xff]  ;;  %v1178_v25 = vld [vmem:[#allocation2 + $0xc] sm:$0xff]  ;;  %v5184_v31 = vpack.c.bf16 %v4454_v28, %v4452_v27  ;;  %v4525_v2 = vld [vmem:[%s8288_s6 + $0x198] sm:$0xff] }
  0x2b   : > { %4400 = vmatmul.mubr.msk.f32.vlgmr.msra.gmra.mrb[2].mxu1 %vm466_vm0, %v485_v29  ;;  %v4459_v23 = vld [vmem:[%s8284_s2 + $0xc8] sm:$0xff]  ;;  %v4476_v55 = vld [vmem:[%s8287_s5 + $0x160] sm:$0xff]  ;;  %v4478_v56 = vld [vmem:[%s8287_s5 + $0x170] sm:$0xff] }
  0x2c   : > { %5149 = vmatpush1.bf16.msra.mxu1 %v5148_v33  ;;  %733 = vmatprep.mubr.f32.mxu1 %v5994_v5  ;;  %v5186_v29 = vpack.c.bf16 %v4461_v24, %v4459_v23  ;;  %v4460_v33 = vld [vmem:[%s8284_s2 + $0xd0] sm:$0xff]  ;;  %v4519_v52 = vld [vmem:[%s8288_s6 + $0x168] sm:$0xff]  ;;  %v5196_v58 = vpack.c.bf16 %v4478_v56, %v4476_v55  ;;  %v4518_v59 = vld [vmem:[%s8288_s6 + $0x160] sm:$0xff] }
  0x2d   : > { %5155 = vmatprep.subr.bf16.mxu1 %v5154_v36  ;;  %v1358_v34 = vld [vmem:[#allocation2 + $0xd] sm:$0xff]  ;;  %v5188_v35 = vpack.c.bf16 %v4460_v33, %v4458_v32  ;;  %v4484_v16 = vld [vmem:[%s8287_s5 + $0x1a0] sm:$0xff]  ;;  %v4491_v24 = vld [vmem:[%s8287_s5 + $0x1d8] sm:$0xff] }
  0x2e   : > { %v1537_v36 = vld [vmem:[#allocation2 + $0x6] sm:$0xff]  ;;  %v1538_v37 = vld [vmem:[#allocation2 + $0xe] sm:$0xff]  ;;  %v4533_v27 = vld [vmem:[%s8288_s6 + $0x1d8] sm:$0xff] }
  0x2f   : > { %4394 = vmatmul.mubr.msk.f32.vlgmr.msra.gmra.mrb[0].mxu0 %vm466_vm0, %v475_v39  ;;  %4401 = vmatmul.mubr.msk.f32.gmra.mrb[4].mxu1 %vm466_vm0, %v486_v30  ;;  %v1357_v30 = vld [vmem:[#allocation2 + $0x5] sm:$0xff]  ;;  %v4524_v9 = vld [vmem:[%s8288_s6 + $0x190] sm:$0xff] }
  0x30   : > { %5153 = vmatpush1.bf16.msra.mxu0 %v5152_v40  ;;  %651 = vmatprep.mubr.f32.mxu0 %v5994_v5  ;;  %v4515_v40 = vld [vmem:[%s8288_s6 + $0x148] sm:$0xff]  ;;  %v4486_v17 = vld [vmem:[%s8287_s5 + $0x1b0] sm:$0xff]  ;;  %v4526_v20 = vld [vmem:[%s8288_s6 + $0x1a0] sm:$0xff] }
  0x31   : > { %804 = vmatprep.mubr.f32.mxu1 %v5994_v5  ;;  %5159 = vmatprep.subr.bf16.mxu0 %v5158_v43  ;;  %v4472_v43 = vld [vmem:[%s8287_s5 + $0x140] sm:$0xff]  ;;  %v5270_v44 = vpack.c.bf16 %v4517_v42, %v4515_v40  ;;  %v4481_v62 = vld [vmem:[%s8287_s5 + $0x188] sm:$0xff]  ;;  %v4528_v21 = vld [vmem:[%s8288_s6 + $0x1b0] sm:$0xff] }
  0x32   : > { %v5192_v48 = vpack.c.bf16 %v4474_v45, %v4472_v43  ;;  %v5198_v1 = vpack.c.bf16 %v4483_v63, %v4481_v62  ;;  %v4527_v13 = vld [vmem:[%s8288_s6 + $0x1a8] sm:$0xff]  ;;  %v4488_v28 = vld [vmem:[%s8287_s5 + $0x1c0] sm:$0xff]  ;;  %v4532_v33 = vld [vmem:[%s8288_s6 + $0x1d0] sm:$0xff] }
  0x33   : > { %4395 = vmatmul.mubr.msk.f32.gmra.mrb[2].mxu0 %vm466_vm0, %v476_v46  ;;  %4402 = vmatmul.mubr.msk.f32.vlgmr.msra.gmra.mrb[2].mxu1 %vm466_vm0, %v475_v39  ;;  %v4475_v39 = vld [vmem:[%s8287_s5 + $0x158] sm:$0xff]  ;;  %v4489_v23 = vld [vmem:[%s8287_s5 + $0x1c8] sm:$0xff]  ;;  %v4530_v32 = vld [vmem:[%s8288_s6 + $0x1c0] sm:$0xff] }
  0x34   : > { %5157 = vmatpush1.bf16.msra.mxu1 %v5156_v47  ;;  %810 = vmatprep.mubr.f32.mxu1 %v5994_v5  ;;  %v5190_v41 = vpack.c.bf16 %v4475_v39, %v4473_v38  ;;  %v4516_v47 = vld [vmem:[%s8288_s6 + $0x150] sm:$0xff]  ;;  %v4537_v39 = vld [vmem:[%s8288_s6 + $0x1f8] sm:$0xff]  ;;  %v4492_v40 = vld [vmem:[%s8287_s5 + $0x1e0] sm:$0xff] }
  0x35   : > { %894 = vmatprep.mubr.f32.mxu0 %v5994_v5  ;;  %5163 = vmatprep.subr.bf16.mxu1 %v5162_v50  ;;  %v4477_v50 = vld [vmem:[%s8287_s5 + $0x168] sm:$0xff]  ;;  %v4536_v45 = vld [vmem:[%s8288_s6 + $0x1f0] sm:$0xff]  ;;  %v4538_v56 = vld [vmem:[%s8288_s6 + $0x200] sm:$0xff] }
  0x36   : > { %v4545_v63 = vld [vmem:[%s8288_s6 + $0x238] sm:$0xff] }
  0x37   : > { %4403 = vmatmul.mubr.msk.f32.gmra.mrb[4].mxu1 %vm466_vm0, %v476_v46  ;;  %4408 = vmatmul.mubr.msk.f32.vlgmr.msra.gmra.mrb[0].mxu0 %vm466_vm0, %v817_v53  ;;  %v4514_v46 = vld [vmem:[%s8288_s6 + $0x140] sm:$0xff] }
  0x38   : > { %5161 = vmatpush1.bf16.msra.mxu0 %v5160_v54  ;;  %900 = vmatprep.mubr.f32.mxu0 %v5994_v5  ;;  %v5272_v49 = vpack.c.bf16 %v4516_v47, %v4514_v46  ;;  %v4521_v54 = vld [vmem:[%s8288_s6 + $0x178] sm:$0xff]  ;;  %v4497_v47 = vld [vmem:[%s8287_s5 + $0x208] sm:$0xff] }
  0x39   : > { %980 = vmatprep.mubr.f32.mxu1 %v5994_v5  ;;  %5167 = vmatprep.subr.bf16.mxu0 %v5166_v57  ;;  %v5274_v57 = vpack.c.bf16 %v4521_v54, %v4519_v52  ;;  %v4496_v52 = vld [vmem:[%s8287_s5 + $0x200] sm:$0xff] }
  0x3b   : > { %4409 = vmatmul.mubr.msk.f32.gmra.mrb[2].mxu0 %vm466_vm0, %v818_v60  ;;  %4414 = vmatmul.mubr.msk.f32.vlgmr.msra.gmra.mrb[2].mxu1 %vm466_vm0, %v817_v53  ;;  %v5194_v53 = vpack.c.bf16 %v4479_v51, %v4477_v50  ;;  %v4541_v51 = vld [vmem:[%s8288_s6 + $0x218] sm:$0xff] }
  0x3c   : > { %5165 = vmatpush1.bf16.msra.mxu1 %v5164_v61  ;;  %986 = vmatprep.mubr.f32.mxu1 %v5994_v5 }
  0x3d   : > { %1074 = vmatprep.mubr.f32.mxu0 %v5994_v5  ;;  %5171 = vmatprep.subr.bf16.mxu1 %v5170_v0  ;;  %v4523_v0 = vld [vmem:[%s8288_s6 + $0x188] sm:$0xff] }
  0x3e   : > { %v5278_v6 = vpack.c.bf16 %v4525_v2, %v4523_v0  ;;  %v4500_v0 = vld [vmem:[%s8287_s5 + $0x220] sm:$0xff] }
  0x3f   : > { %4415 = vmatmul.mubr.msk.f32.gmra.mrb[4].mxu1 %vm466_vm0, %v818_v60  ;;  %4420 = vmatmul.mubr.msk.f32.vlgmr.msra.gmra.mrb[0].mxu0 %vm466_vm0, %v997_v3  ;;  %v4520_v60 = vld [vmem:[%s8288_s6 + $0x170] sm:$0xff] }
  0x40   : > { %5169 = vmatpush1.bf16.msra.mxu0 %v5168_v4  ;;  %1080 = vmatprep.mubr.f32.mxu0 %v5994_v5  ;;  %v5276_v61 = vpack.c.bf16 %v4520_v60, %v4518_v59  ;;  %v4482_v4 = vld [vmem:[%s8287_s5 + $0x190] sm:$0xff]  ;;  %v4501_v59 = vld [vmem:[%s8287_s5 + $0x228] sm:$0xff]  ;;  %v4503_v60 = vld [vmem:[%s8287_s5 + $0x238] sm:$0xff] }
  0x41   : > { %1160 = vmatprep.mubr.f32.mxu1 %v5994_v5  ;;  %5175 = vmatprep.subr.bf16.mxu0 %v5174_v8  ;;  %v4522_v8 = vld [vmem:[%s8288_s6 + $0x180] sm:$0xff]  ;;  %v5218_v62 = vpack.c.bf16 %v4503_v60, %v4501_v59 }
  0x42   : > { %v5280_v10 = vpack.c.bf16 %v4524_v9, %v4522_v8  ;;  %v4507_v9 = vld [vmem:[%s8287_s5 + $0x258] sm:$0xff] }
  0x43   : > { %4421 = vmatmul.mubr.msk.f32.gmra.mrb[2].mxu0 %vm466_vm0, %v998_v11  ;;  %4426 = vmatmul.mubr.msk.f32.vlgmr.msra.gmra.mrb[2].mxu1 %vm466_vm0, %v997_v3  ;;  %v4480_v3 = vld [vmem:[%s8287_s5 + $0x180] sm:$0xff] }
  0x44   : > { %5173 = vmatpush1.bf16.msra.mxu1 %v5172_v12  ;;  %1166 = vmatprep.mubr.f32.mxu1 %v5994_v5  ;;  %v5200_v7 = vpack.c.bf16 %v4482_v4, %v4480_v3  ;;  %v4487_v12 = vld [vmem:[%s8287_s5 + $0x1b8] sm:$0xff]  ;;  %v4542_v4 = vld [vmem:[%s8288_s6 + $0x220] sm:$0xff] }
  0x45   : > { %1254 = vmatprep.mubr.f32.mxu0 %v5994_v5  ;;  %5179 = vmatprep.subr.bf16.mxu1 %v5178_v15  ;;  %v4529_v15 = vld [vmem:[%s8288_s6 + $0x1b8] sm:$0xff] }
  0x47   : > { %4427 = vmatmul.mubr.msk.f32.gmra.mrb[4].mxu1 %vm466_vm0, %v998_v11  ;;  %4432 = vmatmul.mubr.msk.f32.vlgmr.msra.gmra.mrb[0].mxu0 %vm466_vm0, %v1177_v18  ;;  %v4485_v11 = vld [vmem:[%s8287_s5 + $0x1a8] sm:$0xff] }
  0x48   : > { %5177 = vmatpush1.bf16.msra.mxu0 %v5176_v19  ;;  %1260 = vmatprep.mubr.f32.mxu0 %v5994_v5  ;;  %v5202_v14 = vpack.c.bf16 %v4487_v12, %v4485_v11  ;;  %v5204_v19 = vpack.c.bf16 %v4486_v17, %v4484_v16  ;;  %v4549_v11 = vld [vmem:[%s8288_s6 + $0x258] sm:$0xff]  ;;  %v4546_v16 = vld [vmem:[%s8288_s6 + $0x240] sm:$0xff] }
  0x49   : > { %1340 = vmatprep.mubr.f32.mxu1 %v5994_v5  ;;  %5183 = vmatprep.subr.bf16.mxu0 %v5182_v22  ;;  %v5284_v22 = vpack.c.bf16 %v4528_v21, %v4526_v20  ;;  %v4511_v20 = vld [vmem:[%s8287_s5 + $0x278] sm:$0xff] }
  0x4b   : > { %4433 = vmatmul.mubr.msk.f32.gmra.mrb[2].mxu0 %vm466_vm0, %v1178_v25  ;;  %4438 = vmatmul.mubr.msk.f32.vlgmr.msra.gmra.mrb[2].mxu1 %vm466_vm0, %v1177_v18  ;;  %v5282_v18 = vpack.c.bf16 %v4529_v15, %v4527_v13  ;;  %v4506_v15 = vld [vmem:[%s8287_s5 + $0x250] sm:$0xff] }
  0x4c   : > { %5181 = vmatpush1.bf16.msra.mxu1 %v5180_v26  ;;  %1346 = vmatprep.mubr.f32.mxu1 %v5994_v5  ;;  %v5206_v26 = vpack.c.bf16 %v4491_v24, %v4489_v23  ;;  %v4551_v23 = vld [vmem:[%s8288_s6 + $0x268] sm:$0xff]  ;;  %v4553_v24 = vld [vmem:[%s8288_s6 + $0x278] sm:$0xff] }
  0x4d   : > { %1434 = vmatprep.mubr.f32.mxu0 %v5994_v5  ;;  %5187 = vmatprep.subr.bf16.mxu1 %v5186_v29  ;;  %v4490_v29 = vld [vmem:[%s8287_s5 + $0x1d0] sm:$0xff] }
  0x4f   : > { %4439 = vmatmul.mubr.msk.f32.gmra.mrb[4].mxu1 %vm466_vm0, %v1178_v25  ;;  %4444 = vmatmul.mubr.msk.f32.vlgmr.msra.gmra.mrb[0].mxu0 %vm466_vm0, %v1357_v30  ;;  %v4531_v25 = vld [vmem:[%s8288_s6 + $0x1c8] sm:$0xff] }
  0x50   : > { %5185 = vmatpush1.bf16.msra.mxu0 %v5184_v31  ;;  %1440 = vmatprep.mubr.f32.mxu0 %v5994_v5  ;;  %v5208_v31 = vpack.c.bf16 %v4490_v29, %v4488_v28  ;;  %v4550_v28 = vld [vmem:[%s8288_s6 + $0x260] sm:$0xff]  ;;  %v4552_v29 = vld [vmem:[%s8288_s6 + $0x270] sm:$0xff] }
  0x51   : > { %1520 = vmatprep.mubr.f32.mxu1 %v5994_v5  ;;  %5191 = vmatprep.subr.bf16.mxu0 %v5190_v41  ;;  %v4494_v41 = vld [vmem:[%s8287_s5 + $0x1f0] sm:$0xff] }
  0x52   : > { %v5212_v43 = vpack.c.bf16 %v4494_v41, %v4492_v40  ;;  %v1719_v40 = vlaneseq }
  0x53   : > { %4445 = vmatmul.mubr.msk.f32.gmra.mrb[2].mxu0 %vm466_vm0, %v1358_v34  ;;  %4450 = vmatmul.mubr.msk.f32.vlgmr.msra.gmra.mrb[2].mxu1 %vm466_vm0, %v1357_v30  ;;  %v5286_v30 = vpack.c.bf16 %v4533_v27, %v4531_v25  ;;  %v4508_v25 = vld [vmem:[%s8287_s5 + $0x260] sm:$0xff]  ;;  %v4510_v27 = vld [vmem:[%s8287_s5 + $0x270] sm:$0xff] }
  0x54   : > { %5189 = vmatpush1.bf16.msra.mxu1 %v5188_v35  ;;  %1526 = vmatprep.mubr.f32.mxu1 %v5994_v5  ;;  %v4493_v35 = vld [vmem:[%s8287_s5 + $0x1e8] sm:$0xff]  ;;  %v1720_v41 = vshrl.u32 %v1719_v40, 7 }
  0x55   : > { %1614 = vmatprep.mubr.f32.mxu0 %v5994_v5  ;;  %5271 = vmatprep.subr.bf16.mxu1 %v5270_v44  ;;  %v4534_v44 = vld [vmem:[%s8288_s6 + $0x1e0] sm:$0xff] }
  0x56   : > { %v5292_v46 = vpack.c.bf16 %v4536_v45, %v4534_v44  ;;  %v6625_v44 = vsub.s32 1, %v1720_v41 }
  0x57   : > { %4451 = vmatmul.mubr.msk.f32.gmra.mrb[4].mxu1 %vm466_vm0, %v1358_v34  ;;  %4456 = vmatmul.mubr.msk.f32.vlgmr.msra.gmra.mrb[0].mxu0 %vm466_vm0, %v1537_v36  ;;  %v5288_v34 = vpack.c.bf16 %v4532_v33, %v4530_v32  ;;  %v1958_v32 = vld [vmem:[%s8287_s5 + $0x8] sm:$0xff]  ;;  %v1960_v33 = vld [vmem:[%s8287_s5 + $0x18] sm:$0xff] }
  0x58   : > { %1620 = vmatprep.mubr.f32.mxu0 %v5994_v5  ;;  %1700 = vmatprep.mubr.f32.mxu1 %v5994_v5 }
  0x59   : > { %5193 = vmatpush1.bf16.msra.mxu0 %v5192_v48  ;;  %v4499_v48 = vld [vmem:[%s8287_s5 + $0x218] sm:$0xff] }
  0x5a   : > { %5195 = vmatprep.subr.bf16.mxu0 %v5194_v53  ;;  %v5214_v50 = vpack.c.bf16 %v4499_v48, %v4497_v47  ;;  %v4498_v53 = vld [vmem:[%s8287_s5 + $0x210] sm:$0xff] }
  0x5b   : > { %4457 = vmatmul.mubr.msk.f32.gmra.mrb[2].mxu0 %vm466_vm0, %v1538_v37  ;;  %4462 = vmatmul.mubr.msk.f32.vlgmr.msra.gmra.mrb[2].mxu1 %vm466_vm0, %v1537_v36  ;;  %v4495_v36 = vld [vmem:[%s8287_s5 + $0x1f8] sm:$0xff]  ;;  %v5216_v55 = vpack.c.bf16 %v4498_v53, %v4496_v52 }
  0x5c   : > { %1706 = vmatprep.mubr.f32.mxu1 %v5994_v5  ;;  %5273 = vmatpush1.bf16.msra.mxu1 %v5272_v49  ;;  %v5210_v38 = vpack.c.bf16 %v4495_v36, %v4493_v35  ;;  %v4539_v49 = vld [vmem:[%s8288_s6 + $0x208] sm:$0xff]  ;;  %v5230_v35 = vpack.c.bf16 %v1960_v33, %v1958_v32  ;;  %v2000_v36 = vld [vmem:[%s8288_s6 + $0x18] sm:$0xff]  ;;  %v6638_v33 = vsub.s32 2, %v1720_v41 }
  0x5d   : > { %5275 = vmatprep.subr.bf16.mxu1 %v5274_v57  ;;  %5197 = vmatpush1.bf16.msra.mxu0 %v5196_v58  ;;  %v5294_v54 = vpack.c.bf16 %v4541_v51, %v4539_v49  ;;  %v4540_v57 = vld [vmem:[%s8288_s6 + $0x210] sm:$0xff] }
  0x5e   : > { %5199 = vmatprep.subr.bf16.mxu0 %v5198_v1  ;;  %v5296_v58 = vpack.c.bf16 %v4540_v57, %v4538_v56  ;;  %v4502_v1 = vld [vmem:[%s8287_s5 + $0x230] sm:$0xff]  ;;  %v5995_v56 = vmov 1983009808  }
  0x5f   : > { %4463 = vmatmul.mubr.msk.f32.gmra.mrb[4].mxu1 %vm466_vm0, %v1538_v37  ;;  %v4535_v37 = vld [vmem:[%s8288_s6 + $0x1e8] sm:$0xff]  ;;  %v5220_v3 = vpack.c.bf16 %v4502_v1, %v4500_v0  ;;  %v1776_v57 = vunpack.c.l.s4 %v5995_v56  ;;  %vm3271_vm0 = vcmask 259074  }
  0x60   : > { %5277 = vmatpush1.bf16.msra.mxu1 %v5276_v61  ;;  %v5290_v42 = vpack.c.bf16 %v4537_v39, %v4535_v37  ;;  %v4543_v61 = vld [vmem:[%s8288_s6 + $0x228] sm:$0xff] }
  0x61   : > { %5279 = vmatprep.subr.bf16.mxu1 %v5278_v6  ;;  %5201 = vmatpush1.bf16.msra.mxu0 %v5200_v7  ;;  %v5298_v2 = vpack.c.bf16 %v4545_v63, %v4543_v61  ;;  %v4544_v6 = vld [vmem:[%s8288_s6 + $0x230] sm:$0xff]  ;;  %v4505_v7 = vld [vmem:[%s8287_s5 + $0x248] sm:$0xff] }
  0x62   : > { %5203 = vmatprep.subr.bf16.mxu0 %v5202_v14  ;;  %v5300_v8 = vpack.c.bf16 %v4544_v6, %v4542_v4  ;;  %v5222_v12 = vpack.c.bf16 %v4507_v9, %v4505_v7  ;;  %v4504_v14 = vld [vmem:[%s8287_s5 + $0x240] sm:$0xff]  ;;  %v1777_v7 = vunpack.c.0.s8 %v1776_v57 }
  0x63   : > { %v5224_v17 = vpack.c.bf16 %v4506_v15, %v4504_v14 }
  0x64   : > { %5281 = vmatpush1.bf16.msra.mxu1 %v5280_v10  ;;  %v4547_v10 = vld [vmem:[%s8288_s6 + $0x248] sm:$0xff] }
  0x65   : > { %5283 = vmatprep.subr.bf16.mxu1 %v5282_v18  ;;  %5205 = vmatpush1.bf16.msra.mxu0 %v5204_v19  ;;  %v5302_v13 = vpack.c.bf16 %v4549_v11, %v4547_v10  ;;  %v4548_v18 = vld [vmem:[%s8288_s6 + $0x250] sm:$0xff]  ;;  %v4509_v19 = vld [vmem:[%s8287_s5 + $0x268] sm:$0xff] }
  0x66   : > { %5207 = vmatprep.subr.bf16.mxu0 %v5206_v26  ;;  %v5304_v21 = vpack.c.bf16 %v4548_v18, %v4546_v16  ;;  %v5306_v26 = vpack.c.bf16 %v4553_v24, %v4551_v23 }
  0x68   : > { %5285 = vmatpush1.bf16.msra.mxu1 %v5284_v22  ;;  %v5226_v22 = vpack.c.bf16 %v4511_v20, %v4509_v19 }
  0x69   : > { %5287 = vmatprep.subr.bf16.mxu1 %v5286_v30  ;;  %5209 = vmatpush1.bf16.msra.mxu0 %v5208_v31  ;;  %v5228_v30 = vpack.c.bf16 %v4510_v27, %v4508_v25  ;;  %v5308_v31 = vpack.c.bf16 %v4552_v29, %v4550_v28 }
  0x6a   : > { %5211 = vmatprep.subr.bf16.mxu0 %v5210_v38 }
  0x6c   : > { %5289 = vmatpush1.bf16.msra.mxu1 %v5288_v34  ;;  %v1998_v34 = vld [vmem:[%s8288_s6 + $0x8] sm:$0xff] }
  0x6d   : > { %5291 = vmatprep.subr.bf16.mxu1 %v5290_v42  ;;  %5213 = vmatpush1.bf16.msra.mxu0 %v5212_v43  ;;  %v5310_v37 = vpack.c.bf16 %v2000_v36, %v1998_v34  ;;  %v6620_v42 = vsub.s32 0, %v1720_v41  ;;  %v1717_v43 = vld [vmem:[%s8285_s3] sm:$0x3] }
  0x6e   : > { %5215 = vmatprep.subr.bf16.mxu0 %v5214_v50  ;;  %v1726_v47 = vrot.slane %v1717_v43, %v6625_v44 }
  0x6f   : > { %v1722_v45 = vrot.slane %v1717_v43, %v6620_v42 }
  0x70   : > { %5293 = vmatpush1.bf16.msra.mxu1 %v5292_v46  ;;  %v1733_v46 = vld [vmem:[%s8286_s4] sm:$0x3] }
  0x71   : > { %5295 = vmatprep.subr.bf16.mxu1 %v5294_v54  ;;  %5217 = vmatpush1.bf16.msra.mxu0 %v5216_v55  ;;  %v1738_v50 = vrot.slane %v1733_v46, %v6620_v42  ;;  %v1742_v53 = vrot.slane %v1733_v46, %v6625_v44 }
  0x72   : > { %5219 = vmatprep.subr.bf16.mxu0 %v5218_v62 }
  0x74   : > { %5297 = vmatpush1.bf16.msra.mxu1 %v5296_v58 }
  0x75   : > { %5299 = vmatprep.subr.bf16.mxu1 %v5298_v2  ;;  %5221 = vmatpush1.bf16.msra.mxu0 %v5220_v3 }
  0x76   : > { %5223 = vmatprep.subr.bf16.mxu0 %v5222_v12 }
  0x78   : > { %5301 = vmatpush1.bf16.msra.mxu1 %v5300_v8 }
  0x79   : > { %5303 = vmatprep.subr.bf16.mxu1 %v5302_v13  ;;  %5225 = vmatpush1.bf16.msra.mxu0 %v5224_v17 }
  0x7a   : > { %5227 = vmatprep.subr.bf16.mxu0 %v5226_v22 }
  0x7c   : > { %5305 = vmatpush1.bf16.msra.mxu1 %v5304_v21  ;;  %v6634_v21 = vsub.s32 %v1777_v7, %v1720_v41 }
  0x7d   : > { %5307 = vmatprep.subr.bf16.mxu1 %v5306_v26  ;;  %5229 = vmatpush1.bf16.msra.mxu0 %v5228_v30 }
  0x7e   : > { %5231 = vmatprep.subr.bf16.mxu0 %v5230_v35 }
  0x80   : > { %5309 = vmatpush1.bf16.msra.mxu1 %v5308_v31 }
  0x81   : > { %5311 = vmatprep.subr.bf16.mxu1 %v5310_v37 }
  0xfa   : > { %v570_v38 = vpop.f32.mrb[0].mxu1 }
  0xfb   : > { %v572_v39 = vpop.f32.mrb[1].mxu1 }
 0x12a   : > { %v1616_v48 = vpop.f32.mrb[0].mxu0 }
 0x12b   : > { %v1729_v49 = vmul.f32 %v1722_v45, %v1616_v48  ;;  %v1618_v51 = vpop.f32.mrb[1].mxu0 }
 0x12c   : > { %v1730_v52 = vmul.f32 %v1726_v47, %v1618_v51 }
 0x12d   : > { %v1745_v58 = vadd.f32 %v1738_v50, %v1729_v49 }
 0x12e   : > { %v1622_v54 = vpop.f32.mrb[2].mxu0  ;;  %v1702_v55 = vpop.f32.mrb[2].mxu1  ;;  %v1746_v63 = vadd.f32 %v1742_v53, %v1730_v52 }
 0x12f   : > { %v5823_v59 = vadd.f32 %v1622_v54, %v570_v38  ;;  %v1753_v60 = vmul.f32 %v1722_v45, %v1702_v55  ;;  %v1624_v61 = vpop.f32.mrb[3].mxu0  ;;  %v1704_v62 = vpop.f32.mrb[3].mxu1  ;;  %v1749_v9 = vmax.f32 %v1745_v58, 0.0 }
 0x130   : > { %v5824_v0 = vadd.f32 %v1624_v61, %v572_v39  ;;  %v1754_v1 = vmul.f32 %v1726_v47, %v1704_v62  ;;  %v1750_v14 = vmax.f32 %v1746_v63, 0.0 }
 0x131   : > { %v1731_v2 = vmul.f32 %v5823_v59, %v1722_v45  ;;  %v1757_v3 = vadd.f32 %v1753_v60, %v1738_v50 }
 0x132   : > { %v1732_v4 = vmul.f32 %v5824_v0, %v1726_v47  ;;  %v1758_v6 = vadd.f32 %v1754_v1, %v1742_v53  ;;  %v1708_v8 = vpop.f32.mrb[4].mxu1 }
 0x133   : > { %v1747_v10 = vadd.f32 %v1738_v50, %v1731_v2  ;;  %v1761_v11 = vmax.f32 %v1757_v3, 0.0  ;;  %v1755_v12 = vmul.f32 %v1722_v45, %v1708_v8  ;;  %v1710_v13 = vpop.f32.mrb[5].mxu1 }
 0x134   : > { %v1748_v15 = vadd.f32 %v1742_v53, %v1732_v4  ;;  %v1762_v16 = vmax.f32 %v1758_v6, 0.0  ;;  %v1756_v17 = vmul.f32 %v1726_v47, %v1710_v13 }
 0x135   : > { %v1765_v18 = vmax.f32 %v1749_v9, %v1761_v11  ;;  %v1759_v19 = vadd.f32 %v1755_v12, %v1738_v50  ;;  %v1751_v23 = vmax.f32 %v1747_v10, 0.0 }
 0x136   : > { %v1766_v20 = vmax.f32 %v1750_v14, %v1762_v16  ;;  %v1760_v22 = vadd.f32 %v1756_v17, %v1742_v53  ;;  %v1752_v25 = vmax.f32 %v1748_v15, 0.0 }
 0x137   : > { %v1763_v24 = vmax.f32 %v1759_v19, 0.0 }
 0x138   : > { %v1773_v26 = vcombine.low %v1765_v18, %v1766_v20  ;;  %v1774_v27 = vcombine.high %v1765_v18, %v1766_v20  ;;  %v1764_v28 = vmax.f32 %v1760_v22, 0.0 }
 0x139   : > { %v1767_v29 = vmax.f32 %v1751_v23, %v1763_v24 }
 0x13a   : > { %v1781_v30 = vrot.slane %v1773_v26, %v6634_v21  ;;  %v1788_v31 = vrot.slane %v1774_v27, %v6634_v21  ;;  %v1768_v32 = vmax.f32 %v1752_v25, %v1764_v28  ;;  %v1957_v26 = vld [vmem:[%s8287_s5] sm:$0xff]  ;;  %v1959_v27 = vld [vmem:[%s8287_s5 + $0x10] sm:$0xff] }
 0x13b   : > { %v1997_v28 = vld [vmem:[%s8288_s6] sm:$0xff] }
 0x13c   : > { %v1789_v34 = vcombine.high %v1781_v30, %v1781_v30  ;;  %v1790_v35 = vcombine.high %v1788_v31, %v1788_v31  ;;  %v4464_v36 = vrot.slane %v1781_v30, 9  ;;  %v4466_v37 = vrot.slane %v1788_v31, 9 }
 0x13d   : > { %v1791_v38 = vcombine.low %v1767_v29, %v1768_v32  ;;  %v1792_v39 = vcombine.high %v1767_v29, %v1768_v32  ;;  %v1999_v29 = vld [vmem:[%s8288_s6 + $0x10] sm:$0xff]  ;;  %v2002_v32 = vld [vmem:[%s8288_s6 + $0x28] sm:$0xff] }
 0x13e   : > { %v4465_v40 = vrot.slane %v1789_v34, 9  ;;  %v4467_v43 = vrot.slane %v1790_v35, 9  ;;  %v1841_v45 = vmax.f32 %v1781_v30, %v4464_v36  ;;  %v1843_v46 = vmax.f32 %v1788_v31, %v4466_v37  ;;  %v1962_v30 = vld [vmem:[%s8287_s5 + $0x28] sm:$0xff]  ;;  %v1964_v31 = vld [vmem:[%s8287_s5 + $0x38] sm:$0xff] }
 0x13f   : > { %v1799_v47 = vrot.slane %v1791_v38, %v6634_v21  ;;  %v1806_v48 = vrot.slane %v1792_v39, %v6634_v21 }
 0x140   : > { %v1842_v41 = vmax.f32 %v1789_v34, %v4465_v40  ;;  %v1844_v49 = vmax.f32 %v1790_v35, %v4467_v43  ;;  %v1866_v50 = vrot.slane %v1841_v45, %v6620_v42  ;;  %v1870_v51 = vrot.slane %v1841_v45, %v6638_v33  ;;  %v2004_v43 = vld [vmem:[%s8288_s6 + $0x38] sm:$0xff] }
 0x141   : > { %v1807_v52 = vcombine.high %v1799_v47, %v1799_v47  ;;  %v1808_v53 = vcombine.high %v1806_v48, %v1806_v48  ;;  %v1882_v56 = vrot.slane %v1843_v46, %v6620_v42  ;;  %v1886_v57 = vrot.slane %v1843_v46, %v6638_v33 }
 0x142   : > { %v1874_v54 = vrot.slane %v1842_v41, %v6620_v42  ;;  %v1878_v55 = vrot.slane %v1842_v41, %v6638_v33  ;;  %v4468_v58 = vrot.slane %v1799_v47, 9  ;;  %v4470_v60 = vrot.slane %v1806_v48, 9  ;;  %v1963_v41 = vld [vmem:[%s8287_s5 + $0x30] sm:$0xff] }
 0x143   : > { %v4469_v59 = vrot.slane %v1807_v52, 9  ;;  %v4471_v61 = vrot.slane %v1808_v53, 9  ;;  %v1890_v62 = vrot.slane %v1844_v49, %v6620_v42  ;;  %v1894_v63 = vrot.slane %v1844_v49, %v6638_v33 }
 0x144   : > { %v1928_v0 = vsel %vm1927_vm4, %v1874_v54, %v1866_v50  ;;  %v1937_v1 = vsel %vm1927_vm4, %v1878_v55, %v1870_v51  ;;  %v1845_v4 = vmax.f32 %v1799_v47, %v4468_v58  ;;  %v1847_v9 = vmax.f32 %v1806_v48, %v4470_v60  ;;  %v1961_v48 = vld [vmem:[%s8287_s5 + $0x20] sm:$0xff]  ;;  %v2003_v51 = vld [vmem:[%s8288_s6 + $0x30] sm:$0xff]  ;;  %v2008_v58 = vld [vmem:[%s8288_s6 + $0x58] sm:$0xff] }
 0x145   : > { %v1930_v2 = vsel %vm1929_vm5, %v1882_v56, %v1928_v0  ;;  %v1938_v3 = vsel %vm1929_vm5, %v1886_v57, %v1937_v1  ;;  %v1846_v6 = vmax.f32 %v1807_v52, %v4469_v59  ;;  %v1848_v10 = vmax.f32 %v1808_v53, %v4471_v61  ;;  %v2001_v50 = vld [vmem:[%s8288_s6 + $0x20] sm:$0xff]  ;;  %v1966_v52 = vld [vmem:[%s8287_s5 + $0x48] sm:$0xff]  ;;  %v1968_v56 = vld [vmem:[%s8287_s5 + $0x58] sm:$0xff] }
 0x146   : > { %v1932_v7 = vsel %vm1931_vm6, %v1890_v62, %v1930_v2  ;;  %v1939_v8 = vsel %vm1931_vm6, %v1894_v63, %v1938_v3  ;;  %v1898_v11 = vrot.slane %v1845_v4, %v6620_v42  ;;  %v1902_v12 = vrot.slane %v1845_v4, %v6638_v33  ;;  %v2006_v57 = vld [vmem:[%s8288_s6 + $0x48] sm:$0xff]  ;;  %v1965_v62 = vld [vmem:[%s8287_s5 + $0x40] sm:$0xff]  ;;  %v1967_v63 = vld [vmem:[%s8287_s5 + $0x50] sm:$0xff] }
 0x147   : > { %v1906_v13 = vrot.slane %v1846_v6, %v6620_v42  ;;  %v1910_v14 = vrot.slane %v1846_v6, %v6638_v33  ;;  %v1914_v15 = vrot.slane %v1847_v9, %v6620_v42  ;;  %v1918_v16 = vrot.slane %v1847_v9, %v6638_v33  ;;  %v2005_v2 = vld [vmem:[%s8288_s6 + $0x40] sm:$0xff]  ;;  %v2007_v3 = vld [vmem:[%s8288_s6 + $0x50] sm:$0xff]  ;;  %v1970_v4 = vld [vmem:[%s8287_s5 + $0x68] sm:$0xff] }
 0x148   : > { %v1922_v17 = vrot.slane %v1848_v10, %v6620_v42  ;;  %v1926_v18 = vrot.slane %v1848_v10, %v6638_v33  ;;  %v1934_v19 = vsel %vm1933_vm7, %v1898_v11, %v1932_v7  ;;  %v1940_v20 = vsel %vm1933_vm7, %v1902_v12, %v1939_v8  ;;  %v1972_v6 = vld [vmem:[%s8287_s5 + $0x78] sm:$0xff]  ;;  %v2010_v7 = vld [vmem:[%s8288_s6 + $0x68] sm:$0xff]  ;;  %v1969_v11 = vld [vmem:[%s8287_s5 + $0x60] sm:$0xff] }
 0x149   : > { %v1936_v22 = vsel %vm1935_vm8, %v1906_v13, %v1934_v19  ;;  %v1941_v23 = vsel %vm1935_vm8, %v1910_v14, %v1940_v20  ;;  %v5232_v46 = vpack.c.bf16 %v1959_v27, %v1957_v26  ;;  %v5312_v47 = vpack.c.bf16 %v1999_v29, %v1997_v28  ;;  %v2012_v8 = vld [vmem:[%s8288_s6 + $0x78] sm:$0xff]  ;;  %v1971_v12 = vld [vmem:[%s8287_s5 + $0x70] sm:$0xff]  ;;  %v2014_v19 = vld [vmem:[%s8288_s6 + $0x88] sm:$0xff] }
 0x14a   : > { %v1943_v24 = vsel %vm1942_vm9, %v1922_v17, %v1914_v15  ;;  %v1944_v25 = vsel %vm1942_vm9, %v1926_v18, %v1918_v16  ;;  %1949 = vst [vmem:[#allocation3] sm:$0xfc] %v1936_v22  ;;  %1951 = vst.msk [vmem:[#allocation3 + $0x8] sm:$0xfc] %vm1950_vm10, %v1941_v23  ;;  %v5234_v54 = vpack.c.bf16 %v1964_v31, %v1962_v30  ;;  %v2009_v15 = vld [vmem:[%s8288_s6 + $0x60] sm:$0xff]  ;;  %v2011_v16 = vld [vmem:[%s8288_s6 + $0x70] sm:$0xff] }
 0x14b   : > { %1952 = vst [vmem:[#allocation3 + $0x10] sm:$0x3] %v1943_v24  ;;  %1954 = vst.msk [vmem:[#allocation3 + $0x18] sm:$0x3] %vm1953_vm11, %v1944_v25  ;;  %v5314_v55 = vpack.c.bf16 %v2004_v43, %v2002_v32  ;;  %v5236_v60 = vpack.c.bf16 %v1963_v41, %v1961_v48  ;;  %v5316_v61 = vpack.c.bf16 %v2003_v51, %v2001_v50  ;;  %v1974_v17 = vld [vmem:[%s8287_s5 + $0x88] sm:$0xff]  ;;  %v1976_v18 = vld [vmem:[%s8287_s5 + $0x98] sm:$0xff] }
 0x14c   : > { %v5238_v0 = vpack.c.bf16 %v1968_v56, %v1966_v52  ;;  %v5318_v1 = vpack.c.bf16 %v2008_v58, %v2006_v57  ;;  %v5240_v9 = vpack.c.bf16 %v1967_v63, %v1965_v62  ;;  %v5320_v10 = vpack.c.bf16 %v2007_v3, %v2005_v2  ;;  %v2016_v20 = vld [vmem:[%s8288_s6 + $0x98] sm:$0xff]  ;;  %v1973_v24 = vld [vmem:[%s8287_s5 + $0x80] sm:$0xff]  ;;  %v1975_v25 = vld [vmem:[%s8287_s5 + $0x90] sm:$0xff] }
 0x14d   : > { %v5242_v13 = vpack.c.bf16 %v1972_v6, %v1970_v4  ;;  %v5322_v14 = vpack.c.bf16 %v2012_v8, %v2010_v7  ;;  %v5244_v22 = vpack.c.bf16 %v1971_v12, %v1969_v11  ;;  %v5324_v23 = vpack.c.bf16 %v2011_v16, %v2009_v15  ;;  %v2013_v28 = vld [vmem:[%s8288_s6 + $0x80] sm:$0xff]  ;;  %v2015_v29 = vld [vmem:[%s8288_s6 + $0x90] sm:$0xff]  ;;  %v1978_v30 = vld [vmem:[%s8287_s5 + $0xa8] sm:$0xff] }
 0x14e   : > { %v5246_v26 = vpack.c.bf16 %v1976_v18, %v1974_v17  ;;  %v5326_v27 = vpack.c.bf16 %v2016_v20, %v2014_v19  ;;  %v1980_v31 = vld [vmem:[%s8287_s5 + $0xb8] sm:$0xff]  ;;  %v2018_v32 = vld [vmem:[%s8288_s6 + $0xa8] sm:$0xff]  ;;  %v2017_v43 = vld [vmem:[%s8288_s6 + $0xa0] sm:$0xff] }
 0x14f   : > { %v2022_v48 = vld [vmem:[%s8288_s6 + $0xc8] sm:$0xff]  ;;  %v2024_v41 = vld [vmem:[%s8288_s6 + $0xd8] sm:$0xff]  ;;  %v1981_v51 = vld [vmem:[%s8287_s5 + $0xc0] sm:$0xff] }
 0x150   : > { %v1983_v52 = vld [vmem:[%s8287_s5 + $0xd0] sm:$0xff]  ;;  %v1986_v57 = vld [vmem:[%s8287_s5 + $0xe8] sm:$0xff]  ;;  %v1988_v58 = vld [vmem:[%s8287_s5 + $0xf8] sm:$0xff] }
 0x151   : > { %v2038_v34 = vld [vmem:[#allocation3 + $0x8] sm:$0xfe]  ;;  %v2037_v36 = vld [vmem:[#allocation3] sm:$0xfe]  ;;  %v2023_v56 = vld [vmem:[%s8288_s6 + $0xd0] sm:$0xff] }
 0x152   : > { %v2040_v35 = vld [vmem:[#allocation3 + $0x18] sm:$0x1]  ;;  %v2090_v37 = vrot.slane %v2038_v34, 1  ;;  %v2039_v39 = vld [vmem:[#allocation3 + $0x10] sm:$0x1]  ;;  %v2087_v40 = vrot.slane %v2037_v36, 1  ;;  %v5328_v36 = vpack.c.bf16 %v2015_v29, %v2013_v28 }
 0x153   : > { %v2091_v38 = vrot.slane %v2040_v35, 1  ;;  %v2088_v45 = vrot.slane %v2039_v39, 1  ;;  %v1956_v59 = vld [vmem:[#allocation3 + $0x8] sm:$0xff]  ;;  %v2020_v34 = vld [vmem:[%s8288_s6 + $0xb8] sm:$0xff]  ;;  %v5248_v35 = vpack.c.bf16 %v1975_v25, %v1973_v24  ;;  %v5250_v39 = vpack.c.bf16 %v1980_v31, %v1978_v30  ;;  %v2027_v4 = vld [vmem:[%s8288_s6 + $0xf0] sm:$0xff] }
 0x154   : > { %v1985_v63 = vld [vmem:[%s8287_s5 + $0xe0] sm:$0xff]  ;;  %v1990_v6 = vld [vmem:[%s8287_s5 + $0x108] sm:$0xff]  ;;  %v1992_v7 = vld [vmem:[%s8287_s5 + $0x118] sm:$0xff] }
 0x155   : > { %v2092_v49 = vsel %vm2086_vm12, %v2090_v37, %v2091_v38  ;;  %v2089_v53 = vsel %vm2086_vm12, %v2087_v40, %v2088_v45  ;;  %v1977_v37 = vld [vmem:[%s8287_s5 + $0xa0] sm:$0xff]  ;;  %v1979_v38 = vld [vmem:[%s8287_s5 + $0xb0] sm:$0xff]  ;;  %v5330_v40 = vpack.c.bf16 %v2020_v34, %v2018_v32  ;;  %v2030_v8 = vld [vmem:[%s8288_s6 + $0x108] sm:$0xff] }
 0x156   : > { %4512 = vmatprep.mubr.msk.f32.mxu0 %vm1850_vm2, %v2092_v49  ;;  %4554 = vmatprep.mubr.msk.f32.mxu1 %vm1850_vm2, %v2092_v49  ;;  %v2019_v45 = vld [vmem:[%s8288_s6 + $0xb0] sm:$0xff]  ;;  %v5252_v49 = vpack.c.bf16 %v1979_v38, %v1977_v37  ;;  %v2025_v3 = vld [vmem:[%s8288_s6 + $0xe0] sm:$0xff]  ;;  %v1994_v18 = vld [vmem:[%s8287_s5 + $0x128] sm:$0xff] }
 0x157   : > { %2161 = vmatmul.mubr.f32.vlgmr.msra.gmra.mrb[4].mxu0 %v2089_v53  ;;  %2347 = vmatmul.mubr.f32.vlgmr.msra.gmra.mrb[6].mxu1 %v2089_v53  ;;  %v5332_v50 = vpack.c.bf16 %v2019_v45, %v2017_v43  ;;  %v5340_v11 = vpack.c.bf16 %v2027_v4, %v2025_v3  ;;  %v1989_v12 = vld [vmem:[%s8287_s5 + $0x100] sm:$0xff]  ;;  %v2031_v17 = vld [vmem:[%s8288_s6 + $0x110] sm:$0xff]  ;;  %v1996_v19 = vld [vmem:[%s8287_s5 + $0x138] sm:$0xff] }
 0x158   : > { %5233 = vmatpush1.bf16.msra.mxu0 %v5232_v46  ;;  %5313 = vmatpush1.bf16.msra.mxu1 %v5312_v47  ;;  %v1982_v46 = vld [vmem:[%s8287_s5 + $0xc8] sm:$0xff]  ;;  %v1984_v47 = vld [vmem:[%s8287_s5 + $0xd8] sm:$0xff]  ;;  %v2029_v16 = vld [vmem:[%s8288_s6 + $0x100] sm:$0xff] }
 0x159   : > { %4513 = vmatprep.mubr.msk.f32.mxu0 %vm1850_vm2, %v1956_v59  ;;  %4555 = vmatprep.mubr.msk.f32.mxu1 %vm1850_vm2, %v1956_v59  ;;  %v5254_v53 = vpack.c.bf16 %v1984_v47, %v1982_v46  ;;  %v2026_v59 = vld [vmem:[%s8288_s6 + $0xe8] sm:$0xff]  ;;  %v5344_v24 = vpack.c.bf16 %v2031_v17, %v2029_v16  ;;  %v1993_v25 = vld [vmem:[%s8287_s5 + $0x120] sm:$0xff]  ;;  %v2035_v30 = vld [vmem:[%s8288_s6 + $0x130] sm:$0xff] }
 0x15a   : > { %5235 = vmatprep.subr.bf16.mxu0 %v5234_v54  ;;  %5315 = vmatprep.subr.bf16.mxu1 %v5314_v55  ;;  %v5334_v54 = vpack.c.bf16 %v2024_v41, %v2022_v48  ;;  %v2021_v55 = vld [vmem:[%s8288_s6 + $0xc0] sm:$0xff]  ;;  %v2034_v20 = vld [vmem:[%s8288_s6 + $0x128] sm:$0xff]  ;;  %v4559_v32 = vld [vmem:[%s8287_s5 + $0x298] sm:$0xff] }
 0x15b   : > { %v5336_v62 = vpack.c.bf16 %v2023_v56, %v2021_v55  ;;  %v2033_v29 = vld [vmem:[%s8288_s6 + $0x120] sm:$0xff]  ;;  %v4557_v31 = vld [vmem:[%s8287_s5 + $0x288] sm:$0xff]  ;;  %v4558_v46 = vld [vmem:[%s8287_s5 + $0x290] sm:$0xff] }
 0x15c   : > { %5237 = vmatpush1.bf16.msra.mxu0 %v5236_v60  ;;  %5317 = vmatpush1.bf16.msra.mxu1 %v5316_v61  ;;  %v2028_v60 = vld [vmem:[%s8288_s6 + $0xf8] sm:$0xff]  ;;  %v5256_v61 = vpack.c.bf16 %v1983_v52, %v1981_v51  ;;  %v4598_v34 = vld [vmem:[%s8288_s6 + $0x288] sm:$0xff]  ;;  %v5348_v37 = vpack.c.bf16 %v2035_v30, %v2033_v29  ;;  %v2425_v38 = vld [vmem:[#allocation3 + $0x8] sm:$0xfc] }
 0x15d   : > { %5239 = vmatprep.subr.bf16.mxu0 %v5238_v0  ;;  %5319 = vmatprep.subr.bf16.mxu1 %v5318_v1  ;;  %v1987_v0 = vld [vmem:[%s8287_s5 + $0xf0] sm:$0xff]  ;;  %v5258_v1 = vpack.c.bf16 %v1988_v58, %v1986_v57  ;;  %v5338_v2 = vpack.c.bf16 %v2028_v60, %v2026_v59  ;;  %v4556_v45 = vld [vmem:[%s8287_s5 + $0x280] sm:$0xff]  ;;  %v4561_v41 = vld [vmem:[%s8287_s5 + $0x2a8] sm:$0xff] }
 0x15e   : > { %v4597_v47 = vld [vmem:[%s8288_s6 + $0x280] sm:$0xff]  ;;  %v4599_v48 = vld [vmem:[%s8288_s6 + $0x290] sm:$0xff]  ;;  %v4563_v51 = vld [vmem:[%s8287_s5 + $0x2b8] sm:$0xff] }
 0x15f   : > { %v4602_v52 = vld [vmem:[%s8288_s6 + $0x2a8] sm:$0xff]  ;;  %v4560_v55 = vld [vmem:[%s8287_s5 + $0x2a0] sm:$0xff]  ;;  %v5392_v56 = vpack.c.bf16 %v4599_v48, %v4597_v47  ;;  %v4562_v57 = vld [vmem:[%s8287_s5 + $0x2b0] sm:$0xff] }
 0x160   : > { %5241 = vmatpush1.bf16.msra.mxu0 %v5240_v9  ;;  %5321 = vmatpush1.bf16.msra.mxu1 %v5320_v10  ;;  %v2032_v9 = vld [vmem:[%s8288_s6 + $0x118] sm:$0xff]  ;;  %v5260_v10 = vpack.c.bf16 %v1987_v0, %v1985_v63  ;;  %v4601_v58 = vld [vmem:[%s8288_s6 + $0x2a0] sm:$0xff]  ;;  %v4603_v59 = vld [vmem:[%s8288_s6 + $0x2b0] sm:$0xff]  ;;  %v5356_v4 = vpack.c.bf16 %v4562_v57, %v4560_v55 }
 0x161   : > { %5243 = vmatprep.subr.bf16.mxu0 %v5242_v13  ;;  %5323 = vmatprep.subr.bf16.mxu1 %v5322_v14  ;;  %v1991_v13 = vld [vmem:[%s8287_s5 + $0x110] sm:$0xff]  ;;  %v5262_v14 = vpack.c.bf16 %v1992_v7, %v1990_v6  ;;  %v5342_v15 = vpack.c.bf16 %v2032_v9, %v2030_v8  ;;  %v1955_v60 = vld [vmem:[#allocation3] sm:$0xff]  ;;  %v4565_v63 = vld [vmem:[%s8287_s5 + $0x2c8] sm:$0xff]  ;;  %v5396_v6 = vpack.c.bf16 %v4603_v59, %v4601_v58 }
 0x162   : > { %v4567_v0 = vld [vmem:[%s8287_s5 + $0x2d8] sm:$0xff]  ;;  %v4564_v8 = vld [vmem:[%s8287_s5 + $0x2c0] sm:$0xff]  ;;  %v4566_v9 = vld [vmem:[%s8287_s5 + $0x2d0] sm:$0xff] }
 0x163   : > { %v4608_v3 = vld [vmem:[%s8288_s6 + $0x2d8] sm:$0xff]  ;;  %v5358_v7 = vpack.c.bf16 %v4567_v0, %v4565_v63  ;;  %v5360_v17 = vpack.c.bf16 %v4566_v9, %v4564_v8  ;;  %v4622_v55 = vld [vmem:[%s8288_s6 + $0x348] sm:$0xff]  ;;  %v4623_v0 = vld [vmem:[%s8288_s6 + $0x350] sm:$0xff] }
 0x164   : > { %5245 = vmatpush1.bf16.msra.mxu0 %v5244_v22  ;;  %5325 = vmatpush1.bf16.msra.mxu1 %v5324_v23  ;;  %v2036_v22 = vld [vmem:[%s8288_s6 + $0x138] sm:$0xff]  ;;  %v5264_v23 = vpack.c.bf16 %v1991_v13, %v1989_v12  ;;  %v4607_v12 = vld [vmem:[%s8288_s6 + $0x2d0] sm:$0xff]  ;;  %v4569_v13 = vld [vmem:[%s8287_s5 + $0x2e8] sm:$0xff] }
 0x165   : > { %5247 = vmatprep.subr.bf16.mxu0 %v5246_v26  ;;  %5327 = vmatprep.subr.bf16.mxu1 %v5326_v27  ;;  %v1995_v26 = vld [vmem:[%s8287_s5 + $0x130] sm:$0xff]  ;;  %v5266_v27 = vpack.c.bf16 %v1996_v19, %v1994_v18  ;;  %v5346_v28 = vpack.c.bf16 %v2036_v22, %v2034_v20  ;;  %v4612_v16 = vld [vmem:[%s8288_s6 + $0x2f8] sm:$0xff]  ;;  %v4568_v20 = vld [vmem:[%s8287_s5 + $0x2e0] sm:$0xff] }
 0x166   : > { %v4570_v22 = vld [vmem:[%s8287_s5 + $0x2f0] sm:$0xff]  ;;  %v4616_v29 = vld [vmem:[%s8288_s6 + $0x318] sm:$0xff]  ;;  %v4584_v9 = vld [vmem:[%s8287_s5 + $0x360] sm:$0xff] }
 0x167   : > { %v5364_v30 = vpack.c.bf16 %v4570_v22, %v4568_v20  ;;  %v4588_v22 = vld [vmem:[%s8287_s5 + $0x380] sm:$0xff] }
 0x168   : > { %5249 = vmatpush1.bf16.msra.mxu0 %v5248_v35  ;;  %5329 = vmatpush1.bf16.msra.mxu1 %v5328_v36  ;;  %v4600_v35 = vld [vmem:[%s8288_s6 + $0x298] sm:$0xff]  ;;  %v5268_v36 = vpack.c.bf16 %v1995_v26, %v1993_v25  ;;  %v4611_v25 = vld [vmem:[%s8288_s6 + $0x2f0] sm:$0xff]  ;;  %v4573_v26 = vld [vmem:[%s8287_s5 + $0x308] sm:$0xff] }
 0x169   : > { %5251 = vmatprep.subr.bf16.mxu0 %v5250_v39  ;;  %5331 = vmatprep.subr.bf16.mxu1 %v5330_v40  ;;  %v2427_v39 = vld [vmem:[#allocation3 + $0x18] sm:$0x3]  ;;  %v5350_v40 = vpack.c.bf16 %v4559_v32, %v4557_v31  ;;  %v5390_v43 = vpack.c.bf16 %v4600_v35, %v4598_v34  ;;  %v4572_v34 = vld [vmem:[%s8287_s5 + $0x300] sm:$0xff] }
 0x16a   : > { %v4574_v35 = vld [vmem:[%s8287_s5 + $0x310] sm:$0xff] }
 0x16c   : > { %5253 = vmatpush1.bf16.msra.mxu0 %v5252_v49  ;;  %5333 = vmatpush1.bf16.msra.mxu1 %v5332_v50  ;;  %v2477_v49 = vrot.slane %v2425_v38, 2  ;;  %v2478_v50 = vrot.slane %v2427_v39, 2  ;;  %v4615_v38 = vld [vmem:[%s8288_s6 + $0x310] sm:$0xff]  ;;  %v4577_v39 = vld [vmem:[%s8287_s5 + $0x328] sm:$0xff] }
 0x16d   : > { %5255 = vmatprep.subr.bf16.mxu0 %v5254_v53  ;;  %5335 = vmatprep.subr.bf16.mxu1 %v5334_v54  ;;  %v4604_v53 = vld [vmem:[%s8288_s6 + $0x2b8] sm:$0xff]  ;;  %v5352_v54 = vpack.c.bf16 %v4558_v46, %v4556_v45  ;;  %v5368_v46 = vpack.c.bf16 %v4574_v35, %v4572_v34 }
 0x16e   : > { %v4620_v45 = vld [vmem:[%s8288_s6 + $0x338] sm:$0xff] }
 0x170   : > { %5257 = vmatpush1.bf16.msra.mxu0 %v5256_v61  ;;  %5337 = vmatpush1.bf16.msra.mxu1 %v5336_v62  ;;  %v5354_v61 = vpack.c.bf16 %v4563_v51, %v4561_v41  ;;  %v5394_v62 = vpack.c.bf16 %v4604_v53, %v4602_v52  ;;  %v4576_v41 = vld [vmem:[%s8287_s5 + $0x320] sm:$0xff]  ;;  %v4619_v52 = vld [vmem:[%s8288_s6 + $0x330] sm:$0xff]  ;;  %v4581_v53 = vld [vmem:[%s8287_s5 + $0x348] sm:$0xff] }
 0x171   : > { %5259 = vmatprep.subr.bf16.mxu0 %v5258_v1  ;;  %5339 = vmatprep.subr.bf16.mxu1 %v5338_v2  ;;  %v2479_v1 = vsel %vm2473_vm13, %v2477_v49, %v2478_v50  ;;  %v4606_v2 = vld [vmem:[%s8288_s6 + $0x2c8] sm:$0xff]  ;;  %v4578_v49 = vld [vmem:[%s8287_s5 + $0x330] sm:$0xff]  ;;  %v4617_v50 = vld [vmem:[%s8288_s6 + $0x320] sm:$0xff] }
 0x172   : > { %v5372_v57 = vpack.c.bf16 %v4578_v49, %v4576_v41  ;;  %v5412_v58 = vpack.c.bf16 %v4619_v52, %v4617_v50  ;;  %v4638_v49 = vld [vmem:[%s8287_s5 + $0x3c0] sm:$0xff]  ;;  %v4640_v52 = vld [vmem:[%s8287_s5 + $0x3d0] sm:$0xff] }
 0x174   : > { %5261 = vmatpush1.bf16.msra.mxu0 %v5260_v10  ;;  %5341 = vmatpush1.bf16.msra.mxu1 %v5340_v11  ;;  %v4605_v10 = vld [vmem:[%s8288_s6 + $0x2c0] sm:$0xff]  ;;  %v5398_v11 = vpack.c.bf16 %v4608_v3, %v4606_v2  ;;  %v4587_v2 = vld [vmem:[%s8287_s5 + $0x378] sm:$0xff]  ;;  %v4626_v3 = vld [vmem:[%s8288_s6 + $0x368] sm:$0xff] }
 0x175   : > { %5263 = vmatprep.subr.bf16.mxu0 %v5262_v14  ;;  %5343 = vmatprep.subr.bf16.mxu1 %v5342_v15  ;;  %v4571_v14 = vld [vmem:[%s8287_s5 + $0x2f8] sm:$0xff]  ;;  %v4610_v15 = vld [vmem:[%s8288_s6 + $0x2e8] sm:$0xff]  ;;  %v5400_v18 = vpack.c.bf16 %v4607_v12, %v4605_v10  ;;  %v4586_v10 = vld [vmem:[%s8287_s5 + $0x370] sm:$0xff] }
 0x176   : > { %v5362_v19 = vpack.c.bf16 %v4571_v14, %v4569_v13  ;;  %v4627_v13 = vld [vmem:[%s8288_s6 + $0x370] sm:$0xff]  ;;  %v4589_v14 = vld [vmem:[%s8287_s5 + $0x388] sm:$0xff] }
 0x178   : > { %5265 = vmatpush1.bf16.msra.mxu0 %v5264_v23  ;;  %5345 = vmatpush1.bf16.msra.mxu1 %v5344_v24  ;;  %v4609_v23 = vld [vmem:[%s8288_s6 + $0x2e0] sm:$0xff]  ;;  %v5402_v24 = vpack.c.bf16 %v4612_v16, %v4610_v15  ;;  %v4591_v15 = vld [vmem:[%s8287_s5 + $0x398] sm:$0xff]  ;;  %v4630_v16 = vld [vmem:[%s8288_s6 + $0x388] sm:$0xff] }
 0x179   : > { %5267 = vmatprep.subr.bf16.mxu0 %v5266_v27  ;;  %5347 = vmatprep.subr.bf16.mxu1 %v5346_v28  ;;  %v4575_v27 = vld [vmem:[%s8287_s5 + $0x318] sm:$0xff]  ;;  %v4614_v28 = vld [vmem:[%s8288_s6 + $0x308] sm:$0xff]  ;;  %v5404_v31 = vpack.c.bf16 %v4611_v25, %v4609_v23  ;;  %v5382_v20 = vpack.c.bf16 %v4591_v15, %v4589_v14  ;;  %v4590_v23 = vld [vmem:[%s8287_s5 + $0x390] sm:$0xff] }
 0x17a   : > { %v5366_v32 = vpack.c.bf16 %v4575_v27, %v4573_v26  ;;  %v4631_v26 = vld [vmem:[%s8288_s6 + $0x390] sm:$0xff]  ;;  %v4593_v27 = vld [vmem:[%s8287_s5 + $0x3a8] sm:$0xff]  ;;  %v4690_v15 = vld [vmem:[%s8288_s6 + $0x418] sm:$0xff] }
 0x17b   : > { %v4688_v14 = vld [vmem:[%s8288_s6 + $0x408] sm:$0xff] }
 0x17c   : > { %5269 = vmatpush1.bf16.msra.mxu0 %v5268_v36  ;;  %5349 = vmatpush1.bf16.msra.mxu1 %v5348_v37  ;;  %v4613_v36 = vld [vmem:[%s8288_s6 + $0x300] sm:$0xff]  ;;  %v5406_v37 = vpack.c.bf16 %v4616_v29, %v4614_v28  ;;  %v4595_v28 = vld [vmem:[%s8287_s5 + $0x3b8] sm:$0xff]  ;;  %v4634_v29 = vld [vmem:[%s8288_s6 + $0x3a8] sm:$0xff] }
 0x17d   : > { %5351 = vmatprep.subr.bf16.mxu0 %v5350_v40  ;;  %5391 = vmatprep.subr.bf16.mxu1 %v5390_v43  ;;  %v4579_v40 = vld [vmem:[%s8287_s5 + $0x338] sm:$0xff]  ;;  %v4618_v43 = vld [vmem:[%s8288_s6 + $0x328] sm:$0xff]  ;;  %v5408_v47 = vpack.c.bf16 %v4615_v38, %v4613_v36  ;;  %v5386_v35 = vpack.c.bf16 %v4595_v28, %v4593_v27  ;;  %v4594_v36 = vld [vmem:[%s8287_s5 + $0x3b0] sm:$0xff] }
 0x17e   : > { %v5370_v48 = vpack.c.bf16 %v4579_v40, %v4577_v39  ;;  %v5410_v51 = vpack.c.bf16 %v4620_v45, %v4618_v43  ;;  %v4635_v38 = vld [vmem:[%s8288_s6 + $0x3b0] sm:$0xff]  ;;  %v4639_v40 = vld [vmem:[%s8287_s5 + $0x3c8] sm:$0xff]  ;;  %v4641_v43 = vld [vmem:[%s8287_s5 + $0x3d8] sm:$0xff] }
 0x17f   : > { %2235 = vmatmul.mubr.f32.vlgmr.msra.gmra.mrb[4].mxu0 %v1955_v60  ;;  %2418 = vmatmul.mubr.f32.vlgmr.msra.gmra.mrb[6].mxu1 %v1955_v60  ;;  %v4580_v60 = vld [vmem:[%s8287_s5 + $0x340] sm:$0xff]  ;;  %v4680_v45 = vld [vmem:[%s8288_s6 + $0x3c8] sm:$0xff]  ;;  %v4653_v27 = vld [vmem:[%s8287_s5 + $0x438] sm:$0xff] }
 0x180   : > { %5353 = vmatpush1.bf16.msra.mxu0 %v5352_v54  ;;  %4596 = vmatprep.mubr.msk.f32.mxu0 %vm1850_vm2, %v2479_v1  ;;  %v4583_v54 = vld [vmem:[%s8287_s5 + $0x358] sm:$0xff]  ;;  %v4692_v28 = vld [vmem:[%s8288_s6 + $0x428] sm:$0xff] }
 0x181   : > { %5393 = vmatpush1.bf16.msra.mxu1 %v5392_v56  ;;  %4637 = vmatprep.mubr.msk.f32.mxu1 %vm1850_vm2, %v2479_v1  ;;  %v4624_v56 = vld [vmem:[%s8288_s6 + $0x358] sm:$0xff]  ;;  %v5374_v59 = vpack.c.bf16 %v4583_v54, %v4581_v53  ;;  %v4585_v1 = vld [vmem:[%s8287_s5 + $0x368] sm:$0xff]  ;;  %v2671_v53 = vld [vmem:[#allocation3 + $0x8] sm:$0xf8] }
 0x182   : > { %5355 = vmatprep.subr.bf16.mxu0 %v5354_v61  ;;  %5395 = vmatprep.subr.bf16.mxu1 %v5394_v62  ;;  %v4582_v61 = vld [vmem:[%s8287_s5 + $0x350] sm:$0xff]  ;;  %v4621_v62 = vld [vmem:[%s8288_s6 + $0x340] sm:$0xff]  ;;  %v5414_v63 = vpack.c.bf16 %v4624_v56, %v4622_v55  ;;  %v5378_v8 = vpack.c.bf16 %v4587_v2, %v4585_v1  ;;  %v4684_v1 = vld [vmem:[%s8288_s6 + $0x3e8] sm:$0xff] }
 0x183   : > { %v2673_v54 = vld [vmem:[#allocation3 + $0x18] sm:$0x7]  ;;  %v4686_v2 = vld [vmem:[%s8288_s6 + $0x3f8] sm:$0xff] }
 0x184   : > { %5357 = vmatpush1.bf16.msra.mxu0 %v5356_v4  ;;  %v4628_v4 = vld [vmem:[%s8288_s6 + $0x378] sm:$0xff] }
 0x185   : > { %5397 = vmatpush1.bf16.msra.mxu1 %v5396_v6  ;;  %5359 = vmatprep.subr.bf16.mxu0 %v5358_v7  ;;  %v5376_v6 = vpack.c.bf16 %v4582_v61, %v4580_v60  ;;  %v5416_v7 = vpack.c.bf16 %v4623_v0, %v4621_v62  ;;  %v5418_v12 = vpack.c.bf16 %v4628_v4, %v4626_v3  ;;  %v4643_v60 = vld [vmem:[%s8287_s5 + $0x3e8] sm:$0xff]  ;;  %v4645_v61 = vld [vmem:[%s8287_s5 + $0x3f8] sm:$0xff]  ;;  %v2724_v0 = vrot.slane %v2673_v54, 3  ;;  %v4642_v4 = vld [vmem:[%s8287_s5 + $0x3e0] sm:$0xff] }
 0x186   : > { %5399 = vmatprep.subr.bf16.mxu1 %v5398_v11  ;;  %v4625_v11 = vld [vmem:[%s8288_s6 + $0x360] sm:$0xff]  ;;  %v5432_v62 = vpack.c.bf16 %v4640_v52, %v4638_v49  ;;  %v4656_v49 = vld [vmem:[%s8287_s5 + $0x450] sm:$0xff]  ;;  %v4661_v54 = vld [vmem:[%s8287_s5 + $0x478] sm:$0xff] }
 0x187   : > { %v4697_v52 = vld [vmem:[%s8288_s6 + $0x450] sm:$0xff] }
 0x188   : > { %5361 = vmatpush1.bf16.msra.mxu0 %v5360_v17  ;;  %v4632_v17 = vld [vmem:[%s8288_s6 + $0x398] sm:$0xff] }
 0x189   : > { %5401 = vmatpush1.bf16.msra.mxu1 %v5400_v18  ;;  %5363 = vmatprep.subr.bf16.mxu0 %v5362_v19  ;;  %v5380_v18 = vpack.c.bf16 %v4586_v10, %v4584_v9  ;;  %v5420_v19 = vpack.c.bf16 %v4627_v13, %v4625_v11  ;;  %v5422_v25 = vpack.c.bf16 %v4632_v17, %v4630_v16  ;;  %v4685_v10 = vld [vmem:[%s8288_s6 + $0x3f0] sm:$0xff]  ;;  %v4647_v11 = vld [vmem:[%s8287_s5 + $0x408] sm:$0xff] }
 0x18a   : > { %5403 = vmatprep.subr.bf16.mxu1 %v5402_v24  ;;  %v4629_v24 = vld [vmem:[%s8288_s6 + $0x380] sm:$0xff]  ;;  %v5434_v9 = vpack.c.bf16 %v4645_v61, %v4643_v60  ;;  %v5474_v13 = vpack.c.bf16 %v4686_v2, %v4684_v1  ;;  %v4660_v61 = vld [vmem:[%s8287_s5 + $0x470] sm:$0xff]  ;;  %v4663_v1 = vld [vmem:[%s8287_s5 + $0x488] sm:$0xff] }
 0x18b   : > { %v5424_v34 = vpack.c.bf16 %v4631_v26, %v4629_v24  ;;  %v5478_v24 = vpack.c.bf16 %v4690_v15, %v4688_v14  ;;  %v4651_v26 = vld [vmem:[%s8287_s5 + $0x428] sm:$0xff]  ;;  %v4658_v60 = vld [vmem:[%s8287_s5 + $0x460] sm:$0xff]  ;;  %v4665_v2 = vld [vmem:[%s8287_s5 + $0x498] sm:$0xff] }
 0x18c   : > { %5365 = vmatpush1.bf16.msra.mxu0 %v5364_v30  ;;  %v4636_v30 = vld [vmem:[%s8288_s6 + $0x3b8] sm:$0xff]  ;;  %v4667_v14 = vld [vmem:[%s8287_s5 + $0x4a8] sm:$0xff] }
 0x18d   : > { %5405 = vmatpush1.bf16.msra.mxu1 %v5404_v31  ;;  %5367 = vmatprep.subr.bf16.mxu0 %v5366_v32  ;;  %v5384_v31 = vpack.c.bf16 %v4590_v23, %v4588_v22  ;;  %v4592_v32 = vld [vmem:[%s8287_s5 + $0x3a0] sm:$0xff]  ;;  %v5426_v39 = vpack.c.bf16 %v4636_v30, %v4634_v29  ;;  %v4648_v22 = vld [vmem:[%s8287_s5 + $0x410] sm:$0xff]  ;;  %v4694_v29 = vld [vmem:[%s8288_s6 + $0x438] sm:$0xff] }
 0x18e   : > { %5407 = vmatprep.subr.bf16.mxu1 %v5406_v37  ;;  %v4633_v37 = vld [vmem:[%s8288_s6 + $0x3a0] sm:$0xff]  ;;  %v5388_v41 = vpack.c.bf16 %v4594_v36, %v4592_v32  ;;  %v5442_v32 = vpack.c.bf16 %v4653_v27, %v4651_v26  ;;  %v4669_v15 = vld [vmem:[%s8287_s5 + $0x4b8] sm:$0xff]  ;;  %v4709_v26 = vld [vmem:[%s8288_s6 + $0x4b0] sm:$0xff] }
 0x18f   : > { %v5428_v50 = vpack.c.bf16 %v4635_v38, %v4633_v37  ;;  %v4687_v23 = vld [vmem:[%s8288_s6 + $0x400] sm:$0xff]  ;;  %v5482_v37 = vpack.c.bf16 %v4694_v29, %v4692_v28  ;;  %v4693_v38 = vld [vmem:[%s8288_s6 + $0x430] sm:$0xff]  ;;  %v4671_v27 = vld [vmem:[%s8287_s5 + $0x4c8] sm:$0xff] }
 0x190   : > { %5369 = vmatpush1.bf16.msra.mxu0 %v5368_v46  ;;  %v2424_v46 = vld [vmem:[#allocation3] sm:$0xfc]  ;;  %v4691_v36 = vld [vmem:[%s8288_s6 + $0x420] sm:$0xff]  ;;  %v4712_v29 = vld [vmem:[%s8288_s6 + $0x4c8] sm:$0xff] }
 0x191   : > { %5409 = vmatpush1.bf16.msra.mxu1 %v5408_v47  ;;  %5371 = vmatprep.subr.bf16.mxu0 %v5370_v48  ;;  %v2426_v47 = vld [vmem:[#allocation3 + $0x10] sm:$0x3]  ;;  %v4682_v48 = vld [vmem:[%s8288_s6 + $0x3d8] sm:$0xff]  ;;  %v2474_v55 = vrot.slane %v2424_v46, 2 }
 0x192   : > { %5411 = vmatprep.subr.bf16.mxu1 %v5410_v51  ;;  %v5430_v51 = vpack.c.bf16 %v4641_v43, %v4639_v40  ;;  %v2475_v56 = vrot.slane %v2426_v47, 2  ;;  %v4657_v40 = vld [vmem:[%s8287_s5 + $0x458] sm:$0xff]  ;;  %v4696_v43 = vld [vmem:[%s8288_s6 + $0x448] sm:$0xff]  ;;  %v5484_v47 = vpack.c.bf16 %v4693_v38, %v4691_v36  ;;  %v4672_v36 = vld [vmem:[%s8287_s5 + $0x4d0] sm:$0xff] }
 0x193   : > { %v4673_v28 = vld [vmem:[%s8287_s5 + $0x4d8] sm:$0xff] }
 0x194   : > { %5373 = vmatpush1.bf16.msra.mxu0 %v5372_v57  ;;  %v5470_v57 = vpack.c.bf16 %v4682_v48, %v4680_v45  ;;  %v4698_v45 = vld [vmem:[%s8288_s6 + $0x458] sm:$0xff] }
 0x195   : > { %5413 = vmatpush1.bf16.msra.mxu1 %v5412_v58  ;;  %5375 = vmatprep.subr.bf16.mxu0 %v5374_v59  ;;  %v4679_v58 = vld [vmem:[%s8288_s6 + $0x3c0] sm:$0xff]  ;;  %v4681_v59 = vld [vmem:[%s8288_s6 + $0x3d0] sm:$0xff] }
 0x196   : > { %5415 = vmatprep.subr.bf16.mxu1 %v5414_v63  ;;  %v2723_v63 = vrot.slane %v2671_v53, 3  ;;  %v5472_v3 = vpack.c.bf16 %v4681_v59, %v4679_v58  ;;  %v4659_v53 = vld [vmem:[%s8287_s5 + $0x468] sm:$0xff] }
 0x197   : > { %v5450_v59 = vpack.c.bf16 %v4661_v54, %v4659_v53  ;;  %v4721_v54 = vld [vmem:[%s8287_s5 + $0x508] sm:$0xff] }
 0x198   : > { %5377 = vmatpush1.bf16.msra.mxu0 %v5376_v6  ;;  %v4644_v6 = vld [vmem:[%s8287_s5 + $0x3f0] sm:$0xff]  ;;  %v2725_v16 = vsel %vm2719_vm14, %v2723_v63, %v2724_v0 }
 0x199   : > { %5417 = vmatpush1.bf16.msra.mxu1 %v5416_v7  ;;  %5379 = vmatprep.subr.bf16.mxu0 %v5378_v8  ;;  %v4683_v7 = vld [vmem:[%s8288_s6 + $0x3e0] sm:$0xff]  ;;  %v2476_v8 = vsel %vm2473_vm13, %v2474_v55, %v2475_v56  ;;  %v5436_v17 = vpack.c.bf16 %v4644_v6, %v4642_v4  ;;  %v4700_v55 = vld [vmem:[%s8288_s6 + $0x468] sm:$0xff]  ;;  %v4702_v56 = vld [vmem:[%s8288_s6 + $0x478] sm:$0xff]  ;;  %v5452_v6 = vpack.c.bf16 %v4660_v61, %v4658_v60 }
 0x19a   : > { %5419 = vmatprep.subr.bf16.mxu1 %v5418_v12  ;;  %v4649_v12 = vld [vmem:[%s8287_s5 + $0x418] sm:$0xff]  ;;  %v5490_v63 = vpack.c.bf16 %v4702_v56, %v4700_v55  ;;  %v4701_v0 = vld [vmem:[%s8288_s6 + $0x470] sm:$0xff]  ;;  %v4762_v56 = vld [vmem:[%s8288_s6 + $0x508] sm:$0xff] }
 0x19b   : > { %v4706_v4 = vld [vmem:[%s8288_s6 + $0x498] sm:$0xff]  ;;  %v4720_v61 = vld [vmem:[%s8287_s5 + $0x500] sm:$0xff] }
 0x19c   : > { %5381 = vmatpush1.bf16.msra.mxu0 %v5380_v18  ;;  %v5476_v18 = vpack.c.bf16 %v4685_v10, %v4683_v7  ;;  %v4664_v10 = vld [vmem:[%s8287_s5 + $0x490] sm:$0xff]  ;;  %v4723_v55 = vld [vmem:[%s8287_s5 + $0x518] sm:$0xff] }
 0x19d   : > { %5421 = vmatpush1.bf16.msra.mxu1 %v5420_v19  ;;  %5383 = vmatprep.subr.bf16.mxu0 %v5382_v20  ;;  %v5438_v19 = vpack.c.bf16 %v4649_v12, %v4647_v11  ;;  %v4646_v20 = vld [vmem:[%s8287_s5 + $0x400] sm:$0xff] }
 0x19e   : > { %5423 = vmatprep.subr.bf16.mxu1 %v5422_v25  ;;  %v4689_v25 = vld [vmem:[%s8288_s6 + $0x410] sm:$0xff]  ;;  %v5440_v30 = vpack.c.bf16 %v4648_v22, %v4646_v20  ;;  %v4703_v11 = vld [vmem:[%s8288_s6 + $0x480] sm:$0xff]  ;;  %v5458_v20 = vpack.c.bf16 %v4669_v15, %v4667_v14  ;;  %v4766_v14 = vld [vmem:[%s8288_s6 + $0x528] sm:$0xff] }
 0x19f   : > { %v4666_v22 = vld [vmem:[%s8287_s5 + $0x4a0] sm:$0xff]  ;;  %v4768_v15 = vld [vmem:[%s8288_s6 + $0x538] sm:$0xff] }
 0x1a0   : > { %5385 = vmatpush1.bf16.msra.mxu0 %v5384_v31  ;;  %v5480_v31 = vpack.c.bf16 %v4689_v25, %v4687_v23  ;;  %v4668_v23 = vld [vmem:[%s8287_s5 + $0x4b0] sm:$0xff] }
 0x1a1   : > { %5425 = vmatpush1.bf16.msra.mxu1 %v5424_v34  ;;  %5387 = vmatprep.subr.bf16.mxu0 %v5386_v35  ;;  %v4650_v34 = vld [vmem:[%s8287_s5 + $0x420] sm:$0xff]  ;;  %v4652_v35 = vld [vmem:[%s8287_s5 + $0x430] sm:$0xff] }
 0x1a2   : > { %5427 = vmatprep.subr.bf16.mxu1 %v5426_v39  ;;  %v4655_v39 = vld [vmem:[%s8287_s5 + $0x448] sm:$0xff]  ;;  %v5444_v46 = vpack.c.bf16 %v4652_v35, %v4650_v34  ;;  %v5462_v34 = vpack.c.bf16 %v4673_v28, %v4671_v27  ;;  %v4670_v35 = vld [vmem:[%s8287_s5 + $0x4c0] sm:$0xff]  ;;  %v4772_v28 = vld [vmem:[%s8288_s6 + $0x558] sm:$0xff] }
 0x1a3   : > { %v5446_v48 = vpack.c.bf16 %v4657_v40, %v4655_v39  ;;  %v4713_v39 = vld [vmem:[%s8288_s6 + $0x4d0] sm:$0xff]  ;;  %v4675_v40 = vld [vmem:[%s8287_s5 + $0x4e8] sm:$0xff] }
 0x1a4   : > { %5389 = vmatpush1.bf16.msra.mxu0 %v5388_v41  ;;  %v4654_v41 = vld [vmem:[%s8287_s5 + $0x440] sm:$0xff]  ;;  %v4770_v27 = vld [vmem:[%s8288_s6 + $0x548] sm:$0xff] }
 0x1a5   : > { %5429 = vmatpush1.bf16.msra.mxu1 %v5428_v50  ;;  %5431 = vmatprep.subr.bf16.mxu0 %v5430_v51  ;;  %v4695_v50 = vld [vmem:[%s8288_s6 + $0x440] sm:$0xff]  ;;  %v5486_v51 = vpack.c.bf16 %v4698_v45, %v4696_v43  ;;  %v4677_v43 = vld [vmem:[%s8287_s5 + $0x4f8] sm:$0xff]  ;;  %v4716_v45 = vld [vmem:[%s8288_s6 + $0x4e8] sm:$0xff] }
 0x1a6   : > { %5471 = vmatprep.subr.bf16.mxu1 %v5470_v57  ;;  %v5448_v57 = vpack.c.bf16 %v4656_v49, %v4654_v41  ;;  %v5488_v58 = vpack.c.bf16 %v4697_v52, %v4695_v50  ;;  %v5466_v49 = vpack.c.bf16 %v4677_v43, %v4675_v40  ;;  %v4676_v50 = vld [vmem:[%s8287_s5 + $0x4f0] sm:$0xff]  ;;  %v4735_v40 = vld [vmem:[%s8287_s5 + $0x578] sm:$0xff]  ;;  %v4774_v43 = vld [vmem:[%s8288_s6 + $0x568] sm:$0xff] }
 0x1a7   : > { %2548 = vmatmul.mubr.f32.vlgmr.msra.gmra.mrb[4].mxu0 %v2476_v8  ;;  %v4717_v52 = vld [vmem:[%s8288_s6 + $0x4f0] sm:$0xff] }
 0x1a8   : > { %2662 = vmatmul.mubr.f32.vlgmr.msra.gmra.mrb[6].mxu1 %v2476_v8  ;;  %5433 = vmatpush1.bf16.msra.mxu0 %v5432_v62  ;;  %v4699_v62 = vld [vmem:[%s8288_s6 + $0x460] sm:$0xff]  ;;  %v5454_v8 = vpack.c.bf16 %v4665_v2, %v4663_v1  ;;  %v2919_v2 = vld [vmem:[#allocation3 + $0x18] sm:$0xf] }
 0x1a9   : > { %4678 = vmatprep.mubr.msk.f32.mxu0 %vm1850_vm2, %v2725_v16  ;;  %5473 = vmatpush1.bf16.msra.mxu1 %v5472_v3  ;;  %v4704_v3 = vld [vmem:[%s8288_s6 + $0x488] sm:$0xff]  ;;  %v5492_v7 = vpack.c.bf16 %v4701_v0, %v4699_v62  ;;  %v4722_v0 = vld [vmem:[%s8287_s5 + $0x510] sm:$0xff]  ;;  %v2917_v1 = vld [vmem:[#allocation3 + $0x8] sm:$0xf0] }
 0x1aa   : > { %4719 = vmatprep.mubr.msk.f32.mxu1 %vm1850_vm2, %v2725_v16  ;;  %5435 = vmatprep.subr.bf16.mxu0 %v5434_v9  ;;  %v4662_v9 = vld [vmem:[%s8287_s5 + $0x480] sm:$0xff]  ;;  %v5494_v12 = vpack.c.bf16 %v4706_v4, %v4704_v3  ;;  %v4708_v16 = vld [vmem:[%s8288_s6 + $0x4a8] sm:$0xff] }
 0x1ab   : > { %5475 = vmatprep.subr.bf16.mxu1 %v5474_v13  ;;  %v4705_v13 = vld [vmem:[%s8288_s6 + $0x490] sm:$0xff] }
 0x1ac   : > { %5437 = vmatpush1.bf16.msra.mxu0 %v5436_v17  ;;  %v4710_v17 = vld [vmem:[%s8288_s6 + $0x4b8] sm:$0xff] }
 0x1ad   : > { %5477 = vmatpush1.bf16.msra.mxu1 %v5476_v18  ;;  %5439 = vmatprep.subr.bf16.mxu0 %v5438_v19  ;;  %v5456_v18 = vpack.c.bf16 %v4664_v10, %v4662_v9  ;;  %v5496_v19 = vpack.c.bf16 %v4705_v13, %v4703_v11  ;;  %v5498_v25 = vpack.c.bf16 %v4710_v17, %v4708_v16  ;;  %v4725_v9 = vld [vmem:[%s8287_s5 + $0x528] sm:$0xff]  ;;  %v4727_v10 = vld [vmem:[%s8287_s5 + $0x538] sm:$0xff]  ;;  %v2970_v13 = vrot.slane %v2919_v2, 4  ;;  %v4724_v17 = vld [vmem:[%s8287_s5 + $0x520] sm:$0xff] }
 0x1ae   : > { %5479 = vmatprep.subr.bf16.mxu1 %v5478_v24  ;;  %v4707_v24 = vld [vmem:[%s8288_s6 + $0x4a0] sm:$0xff]  ;;  %v5512_v11 = vpack.c.bf16 %v4722_v0, %v4720_v61  ;;  %v4738_v61 = vld [vmem:[%s8287_s5 + $0x590] sm:$0xff]  ;;  %v4743_v2 = vld [vmem:[%s8287_s5 + $0x5b8] sm:$0xff] }
 0x1af   : > { %v4779_v0 = vld [vmem:[%s8288_s6 + $0x590] sm:$0xff] }
 0x1b0   : > { %5441 = vmatpush1.bf16.msra.mxu0 %v5440_v30  ;;  %v4714_v30 = vld [vmem:[%s8288_s6 + $0x4d8] sm:$0xff] }
 0x1b1   : > { %5481 = vmatpush1.bf16.msra.mxu1 %v5480_v31  ;;  %5443 = vmatprep.subr.bf16.mxu0 %v5442_v32  ;;  %v5460_v31 = vpack.c.bf16 %v4668_v23, %v4666_v22  ;;  %v5500_v32 = vpack.c.bf16 %v4709_v26, %v4707_v24  ;;  %v5502_v38 = vpack.c.bf16 %v4714_v30, %v4712_v29  ;;  %v4767_v23 = vld [vmem:[%s8288_s6 + $0x530] sm:$0xff]  ;;  %v4729_v24 = vld [vmem:[%s8287_s5 + $0x548] sm:$0xff] }
 0x1b2   : > { %5483 = vmatprep.subr.bf16.mxu1 %v5482_v37  ;;  %v4711_v37 = vld [vmem:[%s8288_s6 + $0x4c0] sm:$0xff]  ;;  %v5514_v22 = vpack.c.bf16 %v4727_v10, %v4725_v9  ;;  %v5554_v26 = vpack.c.bf16 %v4768_v15, %v4766_v14  ;;  %v4742_v10 = vld [vmem:[%s8287_s5 + $0x5b0] sm:$0xff]  ;;  %v4745_v14 = vld [vmem:[%s8287_s5 + $0x5c8] sm:$0xff] }
 0x1b3   : > { %v5504_v41 = vpack.c.bf16 %v4713_v39, %v4711_v37  ;;  %v5558_v37 = vpack.c.bf16 %v4772_v28, %v4770_v27  ;;  %v4733_v39 = vld [vmem:[%s8287_s5 + $0x568] sm:$0xff]  ;;  %v4740_v9 = vld [vmem:[%s8287_s5 + $0x5a0] sm:$0xff]  ;;  %v4747_v15 = vld [vmem:[%s8287_s5 + $0x5d8] sm:$0xff] }
 0x1b4   : > { %5445 = vmatpush1.bf16.msra.mxu0 %v5444_v46  ;;  %v4718_v46 = vld [vmem:[%s8288_s6 + $0x4f8] sm:$0xff]  ;;  %v4749_v27 = vld [vmem:[%s8287_s5 + $0x5e8] sm:$0xff] }
 0x1b5   : > { %5485 = vmatpush1.bf16.msra.mxu1 %v5484_v47  ;;  %5447 = vmatprep.subr.bf16.mxu0 %v5446_v48  ;;  %v5464_v47 = vpack.c.bf16 %v4672_v36, %v4670_v35  ;;  %v4674_v48 = vld [vmem:[%s8287_s5 + $0x4e0] sm:$0xff]  ;;  %v5506_v53 = vpack.c.bf16 %v4718_v46, %v4716_v45  ;;  %v4730_v35 = vld [vmem:[%s8287_s5 + $0x550] sm:$0xff]  ;;  %v4776_v45 = vld [vmem:[%s8288_s6 + $0x578] sm:$0xff] }
 0x1b6   : > { %5487 = vmatprep.subr.bf16.mxu1 %v5486_v51  ;;  %v4715_v51 = vld [vmem:[%s8288_s6 + $0x4e0] sm:$0xff]  ;;  %v5468_v60 = vpack.c.bf16 %v4676_v50, %v4674_v48  ;;  %v5522_v48 = vpack.c.bf16 %v4735_v40, %v4733_v39  ;;  %v4751_v28 = vld [vmem:[%s8287_s5 + $0x5f8] sm:$0xff]  ;;  %v4791_v39 = vld [vmem:[%s8288_s6 + $0x5f0] sm:$0xff] }
 0x1b7   : > { %v5508_v62 = vpack.c.bf16 %v4717_v52, %v4715_v51  ;;  %v4769_v36 = vld [vmem:[%s8288_s6 + $0x540] sm:$0xff]  ;;  %v5562_v51 = vpack.c.bf16 %v4776_v45, %v4774_v43  ;;  %v4775_v52 = vld [vmem:[%s8288_s6 + $0x570] sm:$0xff]  ;;  %v4753_v40 = vld [vmem:[%s8287_s5 + $0x608] sm:$0xff] }
 0x1b8   : > { %5449 = vmatpush1.bf16.msra.mxu0 %v5448_v57  ;;  %v2670_v57 = vld [vmem:[#allocation3] sm:$0xf8]  ;;  %v4773_v50 = vld [vmem:[%s8288_s6 + $0x560] sm:$0xff]  ;;  %v4794_v45 = vld [vmem:[%s8288_s6 + $0x608] sm:$0xff] }
 0x1b9   : > { %5489 = vmatpush1.bf16.msra.mxu1 %v5488_v58  ;;  %5451 = vmatprep.subr.bf16.mxu0 %v5450_v59  ;;  %v2672_v58 = vld [vmem:[#allocation3 + $0x10] sm:$0x7]  ;;  %v4764_v59 = vld [vmem:[%s8288_s6 + $0x518] sm:$0xff]  ;;  %v2720_v3 = vrot.slane %v2670_v57, 3 }
 0x1ba   : > { %5491 = vmatprep.subr.bf16.mxu1 %v5490_v63  ;;  %v5510_v63 = vpack.c.bf16 %v4723_v55, %v4721_v54  ;;  %v2721_v4 = vrot.slane %v2672_v58, 3  ;;  %v4739_v54 = vld [vmem:[%s8287_s5 + $0x598] sm:$0xff]  ;;  %v4778_v55 = vld [vmem:[%s8288_s6 + $0x588] sm:$0xff]  ;;  %v5564_v58 = vpack.c.bf16 %v4775_v52, %v4773_v50  ;;  %v4754_v50 = vld [vmem:[%s8287_s5 + $0x610] sm:$0xff] }
 0x1bb   : > { %v4755_v43 = vld [vmem:[%s8287_s5 + $0x618] sm:$0xff] }
 0x1bc   : > { %5453 = vmatpush1.bf16.msra.mxu0 %v5452_v6  ;;  %v5550_v6 = vpack.c.bf16 %v4764_v59, %v4762_v56  ;;  %v4780_v56 = vld [vmem:[%s8288_s6 + $0x598] sm:$0xff] }
 0x1bd   : > { %5493 = vmatpush1.bf16.msra.mxu1 %v5492_v7  ;;  %5455 = vmatprep.subr.bf16.mxu0 %v5454_v8  ;;  %v4761_v7 = vld [vmem:[%s8288_s6 + $0x500] sm:$0xff]  ;;  %v4763_v8 = vld [vmem:[%s8288_s6 + $0x510] sm:$0xff] }
 0x1be   : > { %5495 = vmatprep.subr.bf16.mxu1 %v5494_v12  ;;  %v2969_v12 = vrot.slane %v2917_v1, 4  ;;  %v5552_v16 = vpack.c.bf16 %v4763_v8, %v4761_v7  ;;  %v4741_v1 = vld [vmem:[%s8287_s5 + $0x5a8] sm:$0xff] }
 0x1bf   : > { %v5530_v8 = vpack.c.bf16 %v4743_v2, %v4741_v1  ;;  %v4799_v1 = vld [vmem:[%s8288_s6 + $0x630] sm:$0xff]  ;;  %v2916_v2 = vld [vmem:[#allocation3] sm:$0xf0] }
 0x1c0   : > { %5457 = vmatpush1.bf16.msra.mxu0 %v5456_v18  ;;  %v4726_v18 = vld [vmem:[%s8287_s5 + $0x530] sm:$0xff]  ;;  %v2971_v29 = vsel %vm2965_vm15, %v2969_v12, %v2970_v13 }
 0x1c1   : > { %5497 = vmatpush1.bf16.msra.mxu1 %v5496_v19  ;;  %5459 = vmatprep.subr.bf16.mxu0 %v5458_v20  ;;  %v4765_v19 = vld [vmem:[%s8288_s6 + $0x520] sm:$0xff]  ;;  %v2722_v20 = vsel %vm2719_vm14, %v2720_v3, %v2721_v4  ;;  %v5516_v30 = vpack.c.bf16 %v4726_v18, %v4724_v17  ;;  %v4782_v3 = vld [vmem:[%s8288_s6 + $0x5a8] sm:$0xff]  ;;  %v4784_v4 = vld [vmem:[%s8288_s6 + $0x5b8] sm:$0xff]  ;;  %v5532_v18 = vpack.c.bf16 %v4742_v10, %v4740_v9  ;;  %v2966_v9 = vrot.slane %v2916_v2, 4 }
 0x1c2   : > { %5499 = vmatprep.subr.bf16.mxu1 %v5498_v25  ;;  %v4731_v25 = vld [vmem:[%s8287_s5 + $0x558] sm:$0xff]  ;;  %v5570_v12 = vpack.c.bf16 %v4784_v4, %v4782_v3  ;;  %v4783_v13 = vld [vmem:[%s8288_s6 + $0x5b0] sm:$0xff]  ;;  %v2918_v3 = vld [vmem:[#allocation3 + $0x10] sm:$0xf] }
 0x1c3   : > { %v4788_v17 = vld [vmem:[%s8288_s6 + $0x5d8] sm:$0xff]  ;;  %v2967_v10 = vrot.slane %v2918_v3, 4  ;;  %v4822_v2 = vld [vmem:[%s8290_s8 + $0x120] sm:$0xff]  ;;  %v4823_v3 = vld [vmem:[%s8290_s8 + $0x128] sm:$0xff] }
 0x1c4   : > { %5461 = vmatpush1.bf16.msra.mxu0 %v5460_v31  ;;  %v5556_v31 = vpack.c.bf16 %v4767_v23, %v4765_v19  ;;  %v4746_v23 = vld [vmem:[%s8287_s5 + $0x5d0] sm:$0xff] }
 0x1c5   : > { %5501 = vmatpush1.bf16.msra.mxu1 %v5500_v32  ;;  %5463 = vmatprep.subr.bf16.mxu0 %v5462_v34  ;;  %v5518_v32 = vpack.c.bf16 %v4731_v25, %v4729_v24  ;;  %v4728_v34 = vld [vmem:[%s8287_s5 + $0x540] sm:$0xff] }
 0x1c6   : > { %5503 = vmatprep.subr.bf16.mxu1 %v5502_v38  ;;  %v4771_v38 = vld [vmem:[%s8288_s6 + $0x550] sm:$0xff]  ;;  %v5520_v46 = vpack.c.bf16 %v4730_v35, %v4728_v34  ;;  %v4785_v24 = vld [vmem:[%s8288_s6 + $0x5c0] sm:$0xff]  ;;  %v5538_v34 = vpack.c.bf16 %v4751_v28, %v4749_v27  ;;  %v4811_v28 = vld [vmem:[%s8290_s8 + $0xc8] sm:$0xff] }
 0x1c7   : > { %v4748_v35 = vld [vmem:[%s8287_s5 + $0x5e0] sm:$0xff] }
 0x1c8   : > { %5465 = vmatpush1.bf16.msra.mxu0 %v5464_v47  ;;  %v5560_v47 = vpack.c.bf16 %v4771_v38, %v4769_v36  ;;  %v4750_v36 = vld [vmem:[%s8287_s5 + $0x5f0] sm:$0xff]  ;;  %v4810_v27 = vld [vmem:[%s8290_s8 + $0xc0] sm:$0xff] }
 0x1c9   : > { %5505 = vmatpush1.bf16.msra.mxu1 %v5504_v41  ;;  %5467 = vmatprep.subr.bf16.mxu0 %v5466_v49  ;;  %v4732_v41 = vld [vmem:[%s8287_s5 + $0x560] sm:$0xff]  ;;  %v4734_v49 = vld [vmem:[%s8287_s5 + $0x570] sm:$0xff] }
 0x1ca   : > { %5507 = vmatprep.subr.bf16.mxu1 %v5506_v53  ;;  %v4737_v53 = vld [vmem:[%s8287_s5 + $0x588] sm:$0xff]  ;;  %v5524_v57 = vpack.c.bf16 %v4734_v49, %v4732_v41  ;;  %v5542_v41 = vpack.c.bf16 %v4755_v43, %v4753_v40  ;;  %v4752_v49 = vld [vmem:[%s8287_s5 + $0x600] sm:$0xff] }
 0x1cb   : > { %v5526_v59 = vpack.c.bf16 %v4739_v54, %v4737_v53  ;;  %v4795_v53 = vld [vmem:[%s8288_s6 + $0x610] sm:$0xff]  ;;  %v4757_v54 = vld [vmem:[%s8287_s5 + $0x628] sm:$0xff]  ;;  %v4814_v40 = vld [vmem:[%s8290_s8 + $0xe0] sm:$0xff] }
 0x1cc   : > { %5469 = vmatpush1.bf16.msra.mxu0 %v5468_v60  ;;  %v4736_v60 = vld [vmem:[%s8287_s5 + $0x580] sm:$0xff]  ;;  %v4815_v43 = vld [vmem:[%s8290_s8 + $0xe8] sm:$0xff] }
 0x1cd   : > { %5509 = vmatpush1.bf16.msra.mxu1 %v5508_v62  ;;  %5511 = vmatprep.subr.bf16.mxu0 %v5510_v63  ;;  %v4777_v62 = vld [vmem:[%s8288_s6 + $0x580] sm:$0xff]  ;;  %v5566_v63 = vpack.c.bf16 %v4780_v56, %v4778_v55  ;;  %v4759_v55 = vld [vmem:[%s8287_s5 + $0x638] sm:$0xff]  ;;  %v4798_v56 = vld [vmem:[%s8288_s6 + $0x628] sm:$0xff] }
 0x1ce   : > { %5551 = vmatprep.subr.bf16.mxu1 %v5550_v6  ;;  %v5528_v6 = vpack.c.bf16 %v4738_v61, %v4736_v60  ;;  %v5568_v7 = vpack.c.bf16 %v4779_v0, %v4777_v62  ;;  %v5546_v60 = vpack.c.bf16 %v4759_v55, %v4757_v54  ;;  %v4756_v61 = vld [vmem:[%s8287_s5 + $0x620] sm:$0xff]  ;;  %v4758_v62 = vld [vmem:[%s8287_s5 + $0x630] sm:$0xff]  ;;  %v4819_v55 = vld [vmem:[%s8290_s8 + $0x108] sm:$0xff] }
 0x1cf   : > { %2794 = vmatmul.mubr.f32.vlgmr.msra.gmra.mrb[4].mxu0 %v2722_v20  ;;  %v4797_v0 = vld [vmem:[%s8288_s6 + $0x620] sm:$0xff]  ;;  %v5548_v4 = vpack.c.bf16 %v4758_v62, %v4756_v61  ;;  %v4821_v61 = vld [vmem:[%s8290_s8 + $0x118] sm:$0xff] }
 0x1d0   : > { %2908 = vmatmul.mubr.f32.vlgmr.msra.gmra.mrb[6].mxu1 %v2722_v20  ;;  %5513 = vmatpush1.bf16.msra.mxu0 %v5512_v11  ;;  %v4781_v11 = vld [vmem:[%s8288_s6 + $0x5a0] sm:$0xff]  ;;  %v5534_v20 = vpack.c.bf16 %v4747_v15, %v4745_v14  ;;  %v5996_v15 = vmov 0.0|0.0  }
 0x1d1   : > { %4760 = vmatprep.mubr.msk.f32.mxu0 %vm1850_vm2, %v2971_v29  ;;  %5553 = vmatpush1.bf16.msra.mxu1 %v5552_v16  ;;  %v4786_v16 = vld [vmem:[%s8288_s6 + $0x5c8] sm:$0xff]  ;;  %v5572_v19 = vpack.c.bf16 %v4783_v13, %v4781_v11  ;;  %v3275_v11 = vld [vmem:[%s8290_s8] sm:$0xff] }
 0x1d2   : > { %4801 = vmatprep.mubr.msk.f32.mxu1 %vm1850_vm2, %v2971_v29  ;;  %5515 = vmatprep.subr.bf16.mxu0 %v5514_v22  ;;  %v4744_v22 = vld [vmem:[%s8287_s5 + $0x5c0] sm:$0xff]  ;;  %v5574_v25 = vpack.c.bf16 %v4788_v17, %v4786_v16  ;;  %v4790_v29 = vld [vmem:[%s8288_s6 + $0x5e8] sm:$0xff]  ;;  %v4808_v16 = vld [vmem:[%s8290_s8 + $0xb0] sm:$0xff] }
 0x1d3   : > { %5555 = vmatprep.subr.bf16.mxu1 %v5554_v26  ;;  %v4787_v26 = vld [vmem:[%s8288_s6 + $0x5d0] sm:$0xff]  ;;  %v4809_v17 = vld [vmem:[%s8290_s8 + $0xb8] sm:$0xff]  ;;  %v4818_v54 = vld [vmem:[%s8290_s8 + $0x100] sm:$0xff] }
 0x1d4   : > { %5517 = vmatpush1.bf16.msra.mxu0 %v5516_v30  ;;  %v4792_v30 = vld [vmem:[%s8288_s6 + $0x5f8] sm:$0xff]  ;;  %v3291_v62 = vld [vmem:[%s8290_s8 + $0x80] sm:$0xff] }
 0x1d5   : > { %5557 = vmatpush1.bf16.msra.mxu1 %v5556_v31  ;;  %5519 = vmatprep.subr.bf16.mxu0 %v5518_v32  ;;  %v5536_v31 = vpack.c.bf16 %v4746_v23, %v4744_v22  ;;  %v5576_v32 = vpack.c.bf16 %v4787_v26, %v4785_v24  ;;  %v5578_v38 = vpack.c.bf16 %v4792_v30, %v4790_v29  ;;  %v3279_v24 = vld [vmem:[%s8290_s8 + $0x20] sm:$0xff]  ;;  %v3281_v29 = vld [vmem:[%s8290_s8 + $0x30] sm:$0xff] }
 0x1d6   : > { %5559 = vmatprep.subr.bf16.mxu1 %v5558_v37  ;;  %v4789_v37 = vld [vmem:[%s8288_s6 + $0x5e0] sm:$0xff]  ;;  %v5594_v22 = vpack.c.bf16 %v4809_v17, %v4808_v16  ;;  %v5597_v30 = vpack.c.bf16 %v4811_v28, %v4810_v27 }
 0x1d8   : > { %5521 = vmatpush1.bf16.msra.mxu0 %v5520_v46  ;;  %v4796_v46 = vld [vmem:[%s8288_s6 + $0x618] sm:$0xff] }
 0x1d9   : > { %5561 = vmatpush1.bf16.msra.mxu1 %v5560_v47  ;;  %5523 = vmatprep.subr.bf16.mxu0 %v5522_v48  ;;  %v5540_v47 = vpack.c.bf16 %v4750_v36, %v4748_v35  ;;  %v5580_v48 = vpack.c.bf16 %v4791_v39, %v4789_v37  ;;  %v5582_v52 = vpack.c.bf16 %v4796_v46, %v4794_v45  ;;  %v3283_v36 = vld [vmem:[%s8290_s8 + $0x40] sm:$0xff]  ;;  %v3284_v37 = vld [vmem:[%s8290_s8 + $0x48] sm:$0xff]  ;;  %v3285_v45 = vld [vmem:[%s8290_s8 + $0x50] sm:$0xff] }
 0x1da   : > { %5563 = vmatprep.subr.bf16.mxu1 %v5562_v51  ;;  %v4793_v51 = vld [vmem:[%s8288_s6 + $0x600] sm:$0xff]  ;;  %v5633_v39 = vpack.c.bf16 %v3284_v37, %v3283_v36  ;;  %v3286_v46 = vld [vmem:[%s8290_s8 + $0x58] sm:$0xff] }
 0x1dc   : > { %5525 = vmatpush1.bf16.msra.mxu0 %v5524_v57  ;;  %v4800_v57 = vld [vmem:[%s8288_s6 + $0x638] sm:$0xff] }
 0x1dd   : > { %5565 = vmatpush1.bf16.msra.mxu1 %v5564_v58  ;;  %5527 = vmatprep.subr.bf16.mxu0 %v5526_v59  ;;  %v5544_v58 = vpack.c.bf16 %v4754_v50, %v4752_v49  ;;  %v5584_v59 = vpack.c.bf16 %v4795_v53, %v4793_v51  ;;  %v4817_v49 = vld [vmem:[%s8290_s8 + $0xf8] sm:$0xff]  ;;  %v3287_v50 = vld [vmem:[%s8290_s8 + $0x60] sm:$0xff]  ;;  %v3288_v51 = vld [vmem:[%s8290_s8 + $0x68] sm:$0xff] }
 0x1de   : > { %5567 = vmatprep.subr.bf16.mxu1 %v5566_v63  ;;  %v5586_v63 = vpack.c.bf16 %v4800_v57, %v4798_v56  ;;  %v5639_v53 = vpack.c.bf16 %v3288_v51, %v3287_v50  ;;  %v3289_v56 = vld [vmem:[%s8290_s8 + $0x70] sm:$0xff]  ;;  %v3290_v57 = vld [vmem:[%s8290_s8 + $0x78] sm:$0xff] }
 0x1e0   : > { %5529 = vmatpush1.bf16.msra.mxu0 %v5528_v6  ;;  %v5588_v6 = vpack.c.bf16 %v4799_v1, %v4797_v0 }
 0x1e1   : > { %5569 = vmatpush1.bf16.msra.mxu1 %v5568_v7  ;;  %5531 = vmatprep.subr.bf16.mxu0 %v5530_v8  ;;  %v4806_v7 = vld [vmem:[%s8290_s8 + $0xa0] sm:$0xff]  ;;  %v4807_v8 = vld [vmem:[%s8290_s8 + $0xa8] sm:$0xff] }
 0x1e2   : > { %5571 = vmatprep.subr.bf16.mxu1 %v5570_v12  ;;  %v3276_v12 = vld [vmem:[%s8290_s8 + $0x8] sm:$0xff]  ;;  %v5591_v13 = vpack.c.bf16 %v4807_v8, %v4806_v7  ;;  %v5615_v7 = vpack.c.bf16 %v4823_v3, %v4822_v2 }
 0x1e3   : > { %v5621_v14 = vpack.c.bf16 %v3276_v12, %v3275_v11  ;;  %v3162_v12 = vld [vmem:[%s8289_s7] sm:$0x3] }
 0x1e4   : > { %5533 = vmatpush1.bf16.msra.mxu0 %v5532_v18  ;;  %v2968_v18 = vsel %vm2965_vm15, %v2966_v9, %v2967_v10  ;;  %v4824_v9 = vld [vmem:[%s8290_s8 + $0x130] sm:$0xff]  ;;  %v4825_v10 = vld [vmem:[%s8290_s8 + $0x138] sm:$0xff] }
 0x1e5   : > { %5573 = vmatpush1.bf16.msra.mxu1 %v5572_v19  ;;  %5535 = vmatprep.subr.bf16.mxu0 %v5534_v20  ;;  %v3277_v19 = vld [vmem:[%s8290_s8 + $0x10] sm:$0xff]  ;;  %v3278_v20 = vld [vmem:[%s8290_s8 + $0x18] sm:$0xff]  ;;  %v5618_v11 = vpack.c.bf16 %v4825_v10, %v4824_v9 }
 0x1e6   : > { %5575 = vmatprep.subr.bf16.mxu1 %v5574_v25  ;;  %v5624_v23 = vpack.c.bf16 %v3278_v20, %v3277_v19  ;;  %v3280_v25 = vld [vmem:[%s8290_s8 + $0x28] sm:$0xff] }
 0x1e7   : > { %v5627_v26 = vpack.c.bf16 %v3280_v25, %v3279_v24 }
 0x1e8   : > { %5537 = vmatpush1.bf16.msra.mxu0 %v5536_v31  ;;  %v3282_v31 = vld [vmem:[%s8290_s8 + $0x38] sm:$0xff] }
 0x1e9   : > { %5577 = vmatpush1.bf16.msra.mxu1 %v5576_v32  ;;  %5539 = vmatprep.subr.bf16.mxu0 %v5538_v34  ;;  %v4812_v32 = vld [vmem:[%s8290_s8 + $0xd0] sm:$0xff]  ;;  %v4813_v34 = vld [vmem:[%s8290_s8 + $0xd8] sm:$0xff]  ;;  %v5630_v35 = vpack.c.bf16 %v3282_v31, %v3281_v29 }
 0x1ea   : > { %5579 = vmatprep.subr.bf16.mxu1 %v5578_v38  ;;  %v5600_v38 = vpack.c.bf16 %v4813_v34, %v4812_v32 }
 0x1ec   : > { %5541 = vmatpush1.bf16.msra.mxu0 %v5540_v47  ;;  %v5603_v47 = vpack.c.bf16 %v4815_v43, %v4814_v40 }
 0x1ed   : > { %5581 = vmatpush1.bf16.msra.mxu1 %v5580_v48  ;;  %5543 = vmatprep.subr.bf16.mxu0 %v5542_v41  ;;  %v5636_v48 = vpack.c.bf16 %v3286_v46, %v3285_v45  ;;  %v4816_v41 = vld [vmem:[%s8290_s8 + $0xf0] sm:$0xff] }
 0x1ee   : > { %5583 = vmatprep.subr.bf16.mxu1 %v5582_v52  ;;  %v5606_v52 = vpack.c.bf16 %v4817_v49, %v4816_v41 }
 0x1f0   : > { %5545 = vmatpush1.bf16.msra.mxu0 %v5544_v58  ;;  %v5609_v58 = vpack.c.bf16 %v4819_v55, %v4818_v54 }
 0x1f1   : > { %5585 = vmatpush1.bf16.msra.mxu1 %v5584_v59  ;;  %5547 = vmatprep.subr.bf16.mxu0 %v5546_v60  ;;  %v5642_v59 = vpack.c.bf16 %v3290_v57, %v3289_v56  ;;  %v4820_v60 = vld [vmem:[%s8290_s8 + $0x110] sm:$0xff] }
 0x1f2   : > { %5587 = vmatprep.subr.bf16.mxu1 %v5586_v63  ;;  %v3292_v63 = vld [vmem:[%s8290_s8 + $0x88] sm:$0xff]  ;;  %v5612_v0 = vpack.c.bf16 %v4821_v61, %v4820_v60  ;;  %v4828_v60 = vld [vmem:[%s8290_s8 + $0x140] sm:$0xff] }
 0x1f3   : > { %v5645_v1 = vpack.c.bf16 %v3292_v63, %v3291_v62  ;;  %v4829_v61 = vld [vmem:[%s8290_s8 + $0x148] sm:$0xff]  ;;  %v4851_v63 = vld [vmem:[%s8290_s8 + $0x1f0] sm:$0xff] }
 0x1f4   : > { %5549 = vmatpush1.bf16.msra.mxu0 %v5548_v4  ;;  %v3293_v4 = vld [vmem:[%s8290_s8 + $0x90] sm:$0xff] }
 0x1f5   : > { %5589 = vmatpush1.bf16.msra.mxu1 %v5588_v6  ;;  %5590 = vmatprep.subr.bf16.mxu0 %v5996_v15  ;;  %v3294_v6 = vld [vmem:[%s8290_s8 + $0x98] sm:$0xff] }
 0x1f6   : > { %5620 = vmatprep.subr.bf16.mxu1 %v5996_v15  ;;  %v5648_v8 = vpack.c.bf16 %v3294_v6, %v3293_v4 }
 0x1f7   : > { %3040 = vmatmul.mubr.f32.vlgmr.msra.gmra.mrb[4].mxu0 %v2968_v18 }
 0x1f8   : > { %3154 = vmatmul.mubr.f32.vlgmr.msra.gmra.mrb[6].mxu1 %v2968_v18  ;;  %5592 = vmatpush1.bf16.msra.mxu0 %v5591_v13  ;;  %v3167_v13 = vrot.slane %v3162_v12, %v6620_v42 }
 0x1f9   : > { %5622 = vmatpush1.bf16.msra.mxu1 %v5621_v14  ;;  %5593 = vmatprep.subr.bf16.mxu0 %v5996_v15  ;;  %v3171_v14 = vrot.slane %v3162_v12, %v6625_v44  ;;  %v4830_v12 = vld [vmem:[%s8290_s8 + $0x150] sm:$0xff] }
 0x1fa   : > { %5623 = vmatprep.subr.bf16.mxu1 %v5996_v15 }
 0x1fc   : > { %5595 = vmatpush1.bf16.msra.mxu0 %v5594_v22 }
 0x1fd   : > { %5625 = vmatpush1.bf16.msra.mxu1 %v5624_v23  ;;  %5596 = vmatprep.subr.bf16.mxu0 %v5996_v15 }
 0x1fe   : > { %5626 = vmatprep.subr.bf16.mxu1 %v5996_v15 }
 0x200   : > { %5598 = vmatpush1.bf16.msra.mxu0 %v5597_v30 }
 0x201   : > { %5628 = vmatpush1.bf16.msra.mxu1 %v5627_v26  ;;  %5599 = vmatprep.subr.bf16.mxu0 %v5996_v15 }
 0x202   : > { %5629 = vmatprep.subr.bf16.mxu1 %v5996_v15 }
 0x204   : > { %5601 = vmatpush1.bf16.msra.mxu0 %v5600_v38 }
 0x205   : > { %5631 = vmatpush1.bf16.msra.mxu1 %v5630_v35  ;;  %5602 = vmatprep.subr.bf16.mxu0 %v5996_v15 }
 0x206   : > { %5632 = vmatprep.subr.bf16.mxu1 %v5996_v15 }
 0x208   : > { %5604 = vmatpush1.bf16.msra.mxu0 %v5603_v47 }
 0x209   : > { %5634 = vmatpush1.bf16.msra.mxu1 %v5633_v39  ;;  %5605 = vmatprep.subr.bf16.mxu0 %v5996_v15 }
 0x20a   : > { %5635 = vmatprep.subr.bf16.mxu1 %v5996_v15 }
 0x20c   : > { %5607 = vmatpush1.bf16.msra.mxu0 %v5606_v52 }
 0x20d   : > { %5637 = vmatpush1.bf16.msra.mxu1 %v5636_v48  ;;  %5608 = vmatprep.subr.bf16.mxu0 %v5996_v15 }
 0x20e   : > { %5638 = vmatprep.subr.bf16.mxu1 %v5996_v15 }
 0x210   : > { %5610 = vmatpush1.bf16.msra.mxu0 %v5609_v58 }
 0x211   : > { %5640 = vmatpush1.bf16.msra.mxu1 %v5639_v53  ;;  %5611 = vmatprep.subr.bf16.mxu0 %v5996_v15 }
 0x212   : > { %5641 = vmatprep.subr.bf16.mxu1 %v5996_v15 }
 0x214   : > { %5613 = vmatpush1.bf16.msra.mxu0 %v5612_v0  ;;  %v4852_v0 = vld [vmem:[%s8290_s8 + $0x1f8] sm:$0xff] }
 0x215   : > { %5643 = vmatpush1.bf16.msra.mxu1 %v5642_v59  ;;  %5614 = vmatprep.subr.bf16.mxu0 %v5996_v15 }
 0x216   : > { %5644 = vmatprep.subr.bf16.mxu1 %v5996_v15 }
 0x218   : > { %5616 = vmatpush1.bf16.msra.mxu0 %v5615_v7 }
 0x219   : > { %5646 = vmatpush1.bf16.msra.mxu1 %v5645_v1  ;;  %5617 = vmatprep.subr.bf16.mxu0 %v5996_v15 }
 0x21a   : > { %5647 = vmatprep.subr.bf16.mxu1 %v5996_v15 }
 0x21c   : > { %5619 = vmatpush1.bf16.msra.mxu0 %v5618_v11 }
 0x21d   : > { %5649 = vmatpush1.bf16.msra.mxu1 %v5648_v8  ;;  %5650 = vmatprep.subr.bf16.mxu0 %v5996_v15  ;;  %v5651_v8 = vpack.c.bf16 %v4829_v61, %v4828_v60  ;;  %v4868_v60 = vld [vmem:[%s8290_s8 + $0x278] sm:$0xff] }
 0x21e   : > { %5680 = vmatprep.subr.bf16.mxu1 %v5996_v15 }
 0x2ca   : > { %v3041_v16 = vpop.f32.mrb[4].mxu0 }
 0x2cb   : > { %v3174_v17 = vadd.f32 %v3167_v13, %v3041_v16  ;;  %v3155_v18 = vpop.f32.mrb[6].mxu1  ;;  %v3043_v19 = vpop.f32.mrb[5].mxu0  ;;  %v5684_v16 = vpack.c.bf16 %v4852_v0, %v4851_v63  ;;  %v4847_v63 = vld [vmem:[%s8290_s8 + $0x1d8] sm:$0xff] }
 0x2cc   : > { %v3178_v20 = vadd.f32 %v3167_v13, %v3155_v18  ;;  %v3175_v22 = vadd.f32 %v3171_v14, %v3043_v19  ;;  %v3157_v23 = vpop.f32.mrb[7].mxu1  ;;  %v4831_v13 = vld [vmem:[%s8290_s8 + $0x158] sm:$0xff]  ;;  %v4854_v18 = vld [vmem:[%s8290_s8 + $0x208] sm:$0xff] }
 0x2cd   : > { %v3176_v24 = vmax.f32 %v3174_v17, 0.0  ;;  %v3179_v25 = vadd.f32 %v3171_v14, %v3157_v23  ;;  %v4853_v17 = vld [vmem:[%s8290_s8 + $0x200] sm:$0xff]  ;;  %v5654_v19 = vpack.c.bf16 %v4831_v13, %v4830_v12  ;;  %v4873_v12 = vld [vmem:[%s8290_s8 + $0x298] sm:$0xff] }
 0x2ce   : > { %v3180_v26 = vmax.f32 %v3178_v20, 0.0  ;;  %v3177_v27 = vmax.f32 %v3175_v22, 0.0  ;;  %v4832_v20 = vld [vmem:[%s8290_s8 + $0x160] sm:$0xff]  ;;  %v4833_v22 = vld [vmem:[%s8290_s8 + $0x168] sm:$0xff]  ;;  %v5687_v23 = vpack.c.bf16 %v4854_v18, %v4853_v17 }
 0x2cf   : > { %v3181_v28 = vmax.f32 %v3179_v25, 0.0  ;;  %v4856_v25 = vld [vmem:[%s8290_s8 + $0x218] sm:$0xff]  ;;  %v4875_v17 = vld [vmem:[%s8290_s8 + $0x2a8] sm:$0xff] }
 0x2d0   : > { %v3182_v29 = vmax.f32 %v3176_v24, %v3180_v26  ;;  %v4855_v24 = vld [vmem:[%s8290_s8 + $0x210] sm:$0xff]  ;;  %v5657_v26 = vpack.c.bf16 %v4833_v22, %v4832_v20  ;;  %v4877_v20 = vld [vmem:[%s8290_s8 + $0x2b8] sm:$0xff] }
 0x2d1   : > { %v3183_v30 = vmax.f32 %v3177_v27, %v3181_v28  ;;  %v4834_v27 = vld [vmem:[%s8290_s8 + $0x170] sm:$0xff]  ;;  %v4835_v28 = vld [vmem:[%s8290_s8 + $0x178] sm:$0xff] }
 0x2d3   : > { %v3186_v31 = vcombine.low %v3182_v29, %v3183_v30  ;;  %v3187_v32 = vcombine.high %v3182_v29, %v3183_v30  ;;  %v5690_v29 = vpack.c.bf16 %v4856_v25, %v4855_v24  ;;  %v4857_v30 = vld [vmem:[%s8290_s8 + $0x220] sm:$0xff]  ;;  %v4879_v24 = vld [vmem:[%s8290_s8 + $0x2c8] sm:$0xff] }
 0x2d5   : > { %v3194_v34 = vrot.slane %v3186_v31, %v6634_v21  ;;  %v3201_v44 = vrot.slane %v3187_v32, %v6634_v21  ;;  %v4858_v31 = vld [vmem:[%s8290_s8 + $0x228] sm:$0xff]  ;;  %v5660_v32 = vpack.c.bf16 %v4835_v28, %v4834_v27  ;;  %v4881_v27 = vld [vmem:[%s8290_s8 + $0x2d8] sm:$0xff] }
 0x2d7   : > { %v3202_v35 = vcombine.high %v3194_v34, %v3194_v34  ;;  %v3203_v36 = vcombine.high %v3201_v44, %v3201_v44  ;;  %v4802_v37 = vrot.slane %v3194_v34, 9  ;;  %v4804_v38 = vrot.slane %v3201_v44, 9 }
 0x2d9   : > { %v4803_v39 = vrot.slane %v3202_v35, 9  ;;  %v4805_v40 = vrot.slane %v3203_v36, 9  ;;  %v3220_v43 = vmax.f32 %v3194_v34, %v4802_v37  ;;  %v3222_v45 = vmax.f32 %v3201_v44, %v4804_v38  ;;  %v4836_v34 = vld [vmem:[%s8290_s8 + $0x180] sm:$0xff]  ;;  %v4837_v44 = vld [vmem:[%s8290_s8 + $0x188] sm:$0xff]  ;;  %v4860_v37 = vld [vmem:[%s8290_s8 + $0x238] sm:$0xff] }
 0x2da   : > { %v5663_v38 = vpack.c.bf16 %v4837_v44, %v4836_v34  ;;  %v4885_v34 = vld [vmem:[%s8290_s8 + $0x2f8] sm:$0xff] }
 0x2db   : > { %v3221_v46 = vmax.f32 %v3202_v35, %v4803_v39  ;;  %v3223_v47 = vmax.f32 %v3203_v36, %v4805_v40  ;;  %v3233_v48 = vrot.slane %v3220_v43, %v6620_v42  ;;  %v3237_v41 = vrot.slane %v3220_v43, %v6638_v33  ;;  %v4859_v36 = vld [vmem:[%s8290_s8 + $0x230] sm:$0xff]  ;;  %v4839_v40 = vld [vmem:[%s8290_s8 + $0x198] sm:$0xff] }
 0x2dc   : > { %v3249_v21 = vrot.slane %v3222_v45, %v6620_v42  ;;  %v3253_v51 = vrot.slane %v3222_v45, %v6638_v33  ;;  %v5693_v35 = vpack.c.bf16 %v4858_v31, %v4857_v30  ;;  %v4838_v39 = vld [vmem:[%s8290_s8 + $0x190] sm:$0xff]  ;;  %v5696_v43 = vpack.c.bf16 %v4860_v37, %v4859_v36  ;;  %v4861_v45 = vld [vmem:[%s8290_s8 + $0x240] sm:$0xff]  ;;  %v4883_v30 = vld [vmem:[%s8290_s8 + $0x2e8] sm:$0xff] }
 0x2dd   : > { %v3241_v49 = vrot.slane %v3221_v46, %v6620_v42  ;;  %v3245_v50 = vrot.slane %v3221_v46, %v6638_v33  ;;  %v3257_v52 = vrot.slane %v3223_v47, %v6620_v42  ;;  %v3261_v53 = vrot.slane %v3223_v47, %v6638_v33  ;;  %v4849_v42 = vld [vmem:[%s8290_s8 + $0x1e0] sm:$0xff]  ;;  %v4850_v33 = vld [vmem:[%s8290_s8 + $0x1e8] sm:$0xff] }
 0x2de   : > { %v5681_v62 = vpack.c.bf16 %v4850_v33, %v4849_v42  ;;  %v4862_v46 = vld [vmem:[%s8290_s8 + $0x248] sm:$0xff]  ;;  %v5666_v47 = vpack.c.bf16 %v4839_v40, %v4838_v39  ;;  %v4867_v33 = vld [vmem:[%s8290_s8 + $0x270] sm:$0xff]  ;;  %v4889_v39 = vld [vmem:[%s8290_s8 + $0x318] sm:$0xff] }
 0x2df   : > { %v3262_v54 = vsel %vm1927_vm4, %v3241_v49, %v3233_v48  ;;  %v3265_v55 = vsel %vm1927_vm4, %v3245_v50, %v3237_v41  ;;  %v4840_v48 = vld [vmem:[%s8290_s8 + $0x1a0] sm:$0xff]  ;;  %v4841_v41 = vld [vmem:[%s8290_s8 + $0x1a8] sm:$0xff]  ;;  %v5699_v49 = vpack.c.bf16 %v4862_v46, %v4861_v45  ;;  %v4863_v50 = vld [vmem:[%s8290_s8 + $0x250] sm:$0xff]  ;;  %v5708_v0 = vpack.c.bf16 %v4868_v60, %v4867_v33 }
 0x2e0   : > { %v3263_v56 = vsel %vm1929_vm5, %v3249_v21, %v3262_v54  ;;  %v3266_v57 = vsel %vm1929_vm5, %v3253_v51, %v3265_v55  ;;  %v4864_v21 = vld [vmem:[%s8290_s8 + $0x258] sm:$0xff]  ;;  %v5669_v51 = vpack.c.bf16 %v4841_v41, %v4840_v48  ;;  %v4865_v55 = vld [vmem:[%s8290_s8 + $0x260] sm:$0xff]  ;;  %v4887_v36 = vld [vmem:[%s8290_s8 + $0x308] sm:$0xff]  ;;  %vm4232_vm4 = vcmask 326656  }
 0x2e1   : > { %v3264_v58 = vsel %vm1931_vm6, %v3257_v52, %v3263_v56  ;;  %v3267_v59 = vsel %vm1931_vm6, %v3261_v53, %v3266_v57  ;;  %v4842_v52 = vld [vmem:[%s8290_s8 + $0x1b0] sm:$0xff]  ;;  %v4843_v53 = vld [vmem:[%s8290_s8 + $0x1b8] sm:$0xff]  ;;  %v5702_v54 = vpack.c.bf16 %v4864_v21, %v4863_v50  ;;  %v4866_v56 = vld [vmem:[%s8290_s8 + $0x268] sm:$0xff]  ;;  %vm4306_vm5 = vcmask 27648  }
 0x2e2   : > { %3270 = vst [vmem:[#allocation4] sm:$0x3c] %v3264_v58  ;;  %3272 = vst.msk [vmem:[#allocation4 + $0x8] sm:$0x3c] %vm3271_vm0, %v3267_v59  ;;  %v5672_v57 = vpack.c.bf16 %v4843_v53, %v4842_v52  ;;  %v4844_v58 = vld [vmem:[%s8290_s8 + $0x1c0] sm:$0xff]  ;;  %v4845_v59 = vld [vmem:[%s8290_s8 + $0x1c8] sm:$0xff]  ;;  %v5705_v42 = vpack.c.bf16 %v4866_v56, %v4865_v55 }
 0x2e3   : > { %v5675_v61 = vpack.c.bf16 %v4845_v59, %v4844_v58  ;;  %v4892_v46 = vld [vmem:[%s8292_s10 + $0x50] sm:$0xff]  ;;  %v4904_v48 = vld [vmem:[%s8292_s10 + $0xa0] sm:$0xff]  ;;  %v4895_v21 = vld [vmem:[%s8292_s10 + $0x68] sm:$0xff] }
 0x2e4   : > { %v4894_v50 = vld [vmem:[%s8292_s10 + $0x60] sm:$0xff]  ;;  %v4906_v52 = vld [vmem:[%s8292_s10 + $0xb0] sm:$0xff]  ;;  %v4907_v53 = vld [vmem:[%s8292_s10 + $0xb8] sm:$0xff] }
 0x2e5   : > { %v5774_v55 = vpack.c.bf16 %v4907_v53, %v4906_v52  ;;  %v4896_v56 = vld [vmem:[%s8292_s10 + $0x70] sm:$0xff]  ;;  %v4908_v58 = vld [vmem:[%s8292_s10 + $0xc0] sm:$0xff]  ;;  %v4899_v60 = vld [vmem:[%s8292_s10 + $0x88] sm:$0xff] }
 0x2e6   : > { %v4898_v33 = vld [vmem:[%s8292_s10 + $0x80] sm:$0xff]  ;;  %v4933_v52 = vld [vmem:[%s8292_s10 + $0x178] sm:$0xff] }
 0x2e9   : > { %v3274_v1 = vld [vmem:[#allocation4 + $0x8] sm:$0xf]  ;;  %v3273_v2 = vld [vmem:[#allocation4] sm:$0xf] }
 0x2ea   : > { %v3296_v3 = vld [vmem:[#allocation4 + $0x8] sm:$0x1e]  ;;  %4827 = vmatprep.mubr.msk.f32.mxu1 %vm1850_vm2, %v3274_v1  ;;  %v3295_v7 = vld [vmem:[#allocation4] sm:$0x1e] }
 0x2eb   : > { %v3321_v4 = vrot.slane %v3296_v3, 1  ;;  %v3570_v6 = vld [vmem:[#allocation4 + $0x8] sm:$0x78]  ;;  %3463 = vmatmul.mubr.f32.vlgmr.msra.gmra.mrb[8].mxu1 %v3273_v2  ;;  %v3320_v10 = vrot.slane %v3295_v7, 1  ;;  %v3569_v2 = vld [vmem:[#allocation4] sm:$0x78] }
 0x2ec   : > { %v3595_v9 = vrot.slane %v3570_v6, 3  ;;  %v3469_v11 = vld [vmem:[#allocation4 + $0x8] sm:$0x3c]  ;;  %5682 = vmatpush1.bf16.msra.mxu1 %v5681_v62  ;;  %v4846_v62 = vld [vmem:[%s8290_s8 + $0x1d0] sm:$0xff]  ;;  %v3468_v6 = vld [vmem:[#allocation4] sm:$0x3c] }
 0x2ed   : > { %4826 = vmatprep.mubr.msk.f32.mxu0 %vm1850_vm2, %v3321_v4  ;;  %v3494_v14 = vrot.slane %v3469_v11, 2  ;;  %5683 = vmatprep.subr.bf16.mxu1 %v5996_v15  ;;  %v5678_v1 = vpack.c.bf16 %v4847_v63, %v4846_v62  ;;  %v4870_v3 = vld [vmem:[%s8290_s8 + $0x280] sm:$0xff]  ;;  %v4871_v4 = vld [vmem:[%s8290_s8 + $0x288] sm:$0xff]  ;;  %v3594_v7 = vrot.slane %v3569_v2, 3  ;;  %v4872_v11 = vld [vmem:[%s8290_s8 + $0x290] sm:$0xff] }
 0x2ee   : > { %4869 = vmatprep.mubr.msk.f32.mxu1 %vm1850_vm2, %v3595_v9  ;;  %3390 = vmatmul.mubr.f32.vlgmr.msra.gmra.mrb[6].mxu0 %v3320_v10  ;;  %v5711_v9 = vpack.c.bf16 %v4871_v4, %v4870_v3  ;;  %v3493_v10 = vrot.slane %v3468_v6, 2  ;;  %v4910_v62 = vld [vmem:[%s8292_s10 + $0xd0] sm:$0xff]  ;;  %v4911_v63 = vld [vmem:[%s8292_s10 + $0xd8] sm:$0xff]  ;;  %v4912_v4 = vld [vmem:[%s8292_s10 + $0xe0] sm:$0xff] }
 0x2ef   : > { %5652 = vmatpush1.bf16.msra.mxu0 %v5651_v8  ;;  %4848 = vmatprep.mubr.msk.f32.mxu0 %vm1850_vm2, %v3494_v14  ;;  %v3671_v8 = vld [vmem:[#allocation4 + $0x8] sm:$0xf0]  ;;  %v5714_v14 = vpack.c.bf16 %v4873_v12, %v4872_v11  ;;  %v4900_v2 = vld [vmem:[%s8292_s10 + $0x90] sm:$0xff]  ;;  %v4901_v3 = vld [vmem:[%s8292_s10 + $0x98] sm:$0xff] }
 0x2f0   : > { %5653 = vmatprep.subr.bf16.mxu0 %v5996_v15  ;;  %5685 = vmatpush1.bf16.msra.mxu1 %v5684_v16  ;;  %v3696_v13 = vrot.slane %v3671_v8, 4  ;;  %v4874_v16 = vld [vmem:[%s8290_s8 + $0x2a0] sm:$0xff]  ;;  %v4913_v6 = vld [vmem:[%s8292_s10 + $0xe8] sm:$0xff] }
 0x2f1   : > { %5686 = vmatprep.subr.bf16.mxu1 %v5996_v15  ;;  %v5717_v18 = vpack.c.bf16 %v4875_v17, %v4874_v16  ;;  %v5783_v8 = vpack.c.bf16 %v4913_v6, %v4912_v4  ;;  %v4920_v4 = vld [vmem:[%s8292_s10 + $0x118] sm:$0xff] }
 0x2f3   : > { %5655 = vmatpush1.bf16.msra.mxu0 %v5654_v19  ;;  %v4876_v19 = vld [vmem:[%s8290_s8 + $0x2b0] sm:$0xff] }
 0x2f4   : > { %5656 = vmatprep.subr.bf16.mxu0 %v5996_v15  ;;  %5688 = vmatpush1.bf16.msra.mxu1 %v5687_v23  ;;  %v5720_v22 = vpack.c.bf16 %v4877_v20, %v4876_v19  ;;  %v4878_v23 = vld [vmem:[%s8290_s8 + $0x2c0] sm:$0xff] }
 0x2f5   : > { %5689 = vmatprep.subr.bf16.mxu1 %v5996_v15  ;;  %v5723_v25 = vpack.c.bf16 %v4879_v24, %v4878_v23  ;;  %v4891_v23 = vld [vmem:[%s8291_s9] ss:$0 sm:$0xff] }
 0x2f7   : > { %5658 = vmatpush1.bf16.msra.mxu0 %v5657_v26  ;;  %v4880_v26 = vld [vmem:[%s8290_s8 + $0x2d0] sm:$0xff] }
 0x2f8   : > { %5659 = vmatprep.subr.bf16.mxu0 %v5996_v15  ;;  %5691 = vmatpush1.bf16.msra.mxu1 %v5690_v29  ;;  %v5726_v28 = vpack.c.bf16 %v4881_v27, %v4880_v26  ;;  %v4882_v29 = vld [vmem:[%s8290_s8 + $0x2e0] sm:$0xff] }
 0x2f9   : > { %5692 = vmatprep.subr.bf16.mxu1 %v5996_v15  ;;  %v5729_v31 = vpack.c.bf16 %v4883_v30, %v4882_v29  ;;  %v3786_v29 = vld [vmem:[%s8292_s10 + $0x8] sm:$0xff]  ;;  %v4926_v30 = vld [vmem:[%s8292_s10 + $0x140] sm:$0xff] }
 0x2fb   : > { %5661 = vmatpush1.bf16.msra.mxu0 %v5660_v32  ;;  %v4884_v32 = vld [vmem:[%s8290_s8 + $0x2f0] sm:$0xff] }
 0x2fc   : > { %5662 = vmatprep.subr.bf16.mxu0 %v5996_v15  ;;  %5694 = vmatpush1.bf16.msra.mxu1 %v5693_v35  ;;  %v5732_v44 = vpack.c.bf16 %v4885_v34, %v4884_v32  ;;  %v4886_v35 = vld [vmem:[%s8290_s8 + $0x300] sm:$0xff] }
 0x2fd   : > { %5695 = vmatprep.subr.bf16.mxu1 %v5996_v15  ;;  %v5735_v37 = vpack.c.bf16 %v4887_v36, %v4886_v35  ;;  %v3788_v35 = vld [vmem:[%s8292_s10 + $0x18] sm:$0xff]  ;;  %v4928_v36 = vld [vmem:[%s8292_s10 + $0x150] sm:$0xff] }
 0x2ff   : > { %5664 = vmatpush1.bf16.msra.mxu0 %v5663_v38  ;;  %v4888_v38 = vld [vmem:[%s8290_s8 + $0x310] sm:$0xff] }
 0x300   : > { %5665 = vmatprep.subr.bf16.mxu0 %v5996_v15  ;;  %5697 = vmatpush1.bf16.msra.mxu1 %v5696_v43  ;;  %v5738_v40 = vpack.c.bf16 %v4889_v39, %v4888_v38  ;;  %v3670_v43 = vld [vmem:[#allocation4] sm:$0xf0] }
 0x301   : > { %5698 = vmatprep.subr.bf16.mxu1 %v5996_v15  ;;  %v3695_v45 = vrot.slane %v3670_v43, 4 }
 0x303   : > { %5667 = vmatpush1.bf16.msra.mxu0 %v5666_v47  ;;  %v4893_v47 = vld [vmem:[%s8292_s10 + $0x58] sm:$0xff] }
 0x304   : > { %5668 = vmatprep.subr.bf16.mxu0 %v5996_v15  ;;  %5700 = vmatpush1.bf16.msra.mxu1 %v5699_v49  ;;  %v5741_v41 = vpack.c.bf16 %v4893_v47, %v4892_v46  ;;  %v4905_v49 = vld [vmem:[%s8292_s10 + $0xa8] sm:$0xff]  ;;  %v4930_v47 = vld [vmem:[%s8292_s10 + $0x160] sm:$0xff] }
 0x305   : > { %5701 = vmatprep.subr.bf16.mxu1 %v5996_v15  ;;  %v3790_v46 = vld [vmem:[%s8292_s10 + $0x28] sm:$0xff] }
 0x307   : > { %5670 = vmatpush1.bf16.msra.mxu0 %v5669_v51  ;;  %v5771_v51 = vpack.c.bf16 %v4905_v49, %v4904_v48  ;;  %v4931_v48 = vld [vmem:[%s8292_s10 + $0x168] sm:$0xff] }
 0x308   : > { %5671 = vmatprep.subr.bf16.mxu0 %v5996_v15  ;;  %5703 = vmatpush1.bf16.msra.mxu1 %v5702_v54  ;;  %v5744_v54 = vpack.c.bf16 %v4895_v21, %v4894_v50  ;;  %v5807_v49 = vpack.c.bf16 %v4931_v48, %v4930_v47  ;;  %v3791_v50 = vld [vmem:[%s8292_s10 + $0x30] sm:$0xff]  ;;  %v3792_v21 = vld [vmem:[%s8292_s10 + $0x38] sm:$0xff] }
 0x309   : > { %5704 = vmatprep.subr.bf16.mxu1 %v5996_v15  ;;  %v5765_v53 = vpack.c.bf16 %v3792_v21, %v3791_v50 }
 0x30b   : > { %5673 = vmatpush1.bf16.msra.mxu0 %v5672_v57  ;;  %v4897_v57 = vld [vmem:[%s8292_s10 + $0x78] sm:$0xff] }
 0x30c   : > { %5674 = vmatprep.subr.bf16.mxu0 %v5996_v15  ;;  %5706 = vmatpush1.bf16.msra.mxu1 %v5705_v42  ;;  %v5747_v59 = vpack.c.bf16 %v4897_v57, %v4896_v56  ;;  %v4909_v42 = vld [vmem:[%s8292_s10 + $0xc8] sm:$0xff]  ;;  %v4934_v57 = vld [vmem:[%s8292_s10 + $0x180] sm:$0xff] }
 0x30d   : > { %5707 = vmatprep.subr.bf16.mxu1 %v5996_v15  ;;  %v3794_v56 = vld [vmem:[%s8292_s10 + $0x48] sm:$0xff] }
 0x30f   : > { %5676 = vmatpush1.bf16.msra.mxu0 %v5675_v61  ;;  %v5777_v61 = vpack.c.bf16 %v4909_v42, %v4908_v58  ;;  %v4935_v58 = vld [vmem:[%s8292_s10 + $0x188] sm:$0xff] }
 0x310   : > { %5677 = vmatprep.subr.bf16.mxu0 %v5996_v15  ;;  %5709 = vmatpush1.bf16.msra.mxu1 %v5708_v0  ;;  %v5750_v0 = vpack.c.bf16 %v4899_v60, %v4898_v33  ;;  %v5813_v42 = vpack.c.bf16 %v4935_v58, %v4934_v57  ;;  %v4915_v33 = vld [vmem:[%s8292_s10 + $0xf0] sm:$0xff]  ;;  %v4916_v60 = vld [vmem:[%s8292_s10 + $0xf8] sm:$0xff] }
 0x311   : > { %5740 = vmatprep.subr.bf16.mxu1 %v5996_v15 }
 0x313   : > { %5679 = vmatpush1.bf16.msra.mxu0 %v5678_v1  ;;  %3664 = vmatmul.mubr.f32.vlgmr.msra.gmra.mrb[10].mxu1 %v3594_v7  ;;  %v5780_v1 = vpack.c.bf16 %v4911_v63, %v4910_v62  ;;  %v5753_v7 = vpack.c.bf16 %v4901_v3, %v4900_v2  ;;  %v4917_v62 = vld [vmem:[%s8292_s10 + $0x100] sm:$0xff]  ;;  %v4918_v63 = vld [vmem:[%s8292_s10 + $0x108] sm:$0xff]  ;;  %v4919_v3 = vld [vmem:[%s8292_s10 + $0x110] sm:$0xff] }
 0x314   : > { %5710 = vmatprep.subr.bf16.mxu0 %v5996_v15  ;;  %5742 = vmatpush3.bf16.msra.mxu1 %v5741_v41  ;;  %v5789_v2 = vpack.c.bf16 %v4918_v63, %v4917_v62  ;;  %v5792_v6 = vpack.c.bf16 %v4920_v4, %v4919_v3 }
 0x315   : > { %5743 = vmatprep.subr.bf16.mxu1 %v5996_v15 }
 0x316   : > { %3563 = vmatmul.mubr.f32.vlgmr.msra.gmra.mrb[8].mxu0 %v3493_v10 }
 0x317   : > { %5712 = vmatpush1.bf16.msra.mxu0 %v5711_v9  ;;  %4890 = vmatprep.mubr.msk.f32.mxu0 %vm1850_vm2, %v3696_v13  ;;  %vm5997_vm2 = vmmov 0  }
 0x318   : > { %5713 = vmatprep.subr.bf16.mxu0 %v5996_v15  ;;  %5745 = vmatpush3.bf16.msra.mxu1 %v5744_v54 }
 0x319   : > { %5746 = vmatprep.subr.bf16.mxu1 %v5996_v15  ;;  %5026 = vmatprep.mubr.msk.f32.mxu1 %vm5997_vm2, %v5994_v5 }
 0x31b   : > { %5715 = vmatpush1.bf16.msra.mxu0 %v5714_v14 }
 0x31c   : > { %5716 = vmatprep.subr.bf16.mxu0 %v5996_v15  ;;  %5748 = vmatpush3.bf16.msra.mxu1 %v5747_v59 }
 0x31d   : > { %5749 = vmatprep.subr.bf16.mxu1 %v5996_v15 }
 0x31f   : > { %5718 = vmatpush1.bf16.msra.mxu0 %v5717_v18 }
 0x320   : > { %5719 = vmatprep.subr.bf16.mxu0 %v5996_v15  ;;  %5751 = vmatpush3.bf16.msra.mxu1 %v5750_v0 }
 0x321   : > { %5752 = vmatprep.subr.bf16.mxu1 %v5996_v15 }
 0x323   : > { %5721 = vmatpush1.bf16.msra.mxu0 %v5720_v22 }
 0x324   : > { %5722 = vmatprep.subr.bf16.mxu0 %v5996_v15  ;;  %5754 = vmatpush3.bf16.msra.mxu1 %v5753_v7  ;;  %v4921_v7 = vld [vmem:[%s8292_s10 + $0x120] sm:$0xff] }
 0x325   : > { %5755 = vmatprep.subr.bf16.mxu1 %v5996_v15 }
 0x327   : > { %5724 = vmatpush1.bf16.msra.mxu0 %v5723_v25 }
 0x328   : > { %5725 = vmatprep.subr.bf16.mxu0 %v5996_v15 }
 0x32b   : > { %5727 = vmatpush1.bf16.msra.mxu0 %v5726_v28  ;;  %v3785_v28 = vld [vmem:[%s8292_s10] sm:$0xff] }
 0x32c   : > { %5728 = vmatprep.subr.bf16.mxu0 %v5996_v15  ;;  %v5756_v32 = vpack.c.bf16 %v3786_v29, %v3785_v28 }
 0x32f   : > { %5730 = vmatpush1.bf16.msra.mxu0 %v5729_v31  ;;  %v4927_v31 = vld [vmem:[%s8292_s10 + $0x148] sm:$0xff] }
 0x330   : > { %5731 = vmatprep.subr.bf16.mxu0 %v5996_v15  ;;  %v5801_v34 = vpack.c.bf16 %v4927_v31, %v4926_v30 }
 0x333   : > { %5733 = vmatpush1.bf16.msra.mxu0 %v5732_v44  ;;  %v3787_v44 = vld [vmem:[%s8292_s10 + $0x10] sm:$0xff] }
 0x334   : > { %5734 = vmatprep.subr.bf16.mxu0 %v5996_v15 }
 0x337   : > { %5736 = vmatpush1.bf16.msra.mxu0 %v5735_v37  ;;  %v4929_v37 = vld [vmem:[%s8292_s10 + $0x158] sm:$0xff] }
 0x338   : > { %5737 = vmatprep.subr.bf16.mxu0 %v5996_v15  ;;  %v5804_v43 = vpack.c.bf16 %v4929_v37, %v4928_v36 }
 0x33b   : > { %5739 = vmatpush1.bf16.msra.mxu0 %v5738_v40  ;;  %v5759_v40 = vpack.c.bf16 %v3788_v35, %v3787_v44  ;;  %v4937_v44 = vld [vmem:[%s8293_s11] ss:$0 sm:$0xff] }
 0x33c   : > { %5770 = vmatprep.subr.bf16.mxu0 %v5996_v15 }
 0x33e   : > { %3765 = vmatmul.mubr.f32.vlgmr.msra.gmra.mrb[10].mxu0 %v3695_v45  ;;  %v3789_v45 = vld [vmem:[%s8292_s10 + $0x20] sm:$0xff] }
 0x33f   : > { %5772 = vmatpush3.bf16.msra.mxu0 %v5771_v51  ;;  %5072 = vmatprep.mubr.msk.f32.mxu0 %vm5997_vm2, %v5994_v5  ;;  %v5762_v41 = vpack.c.bf16 %v3790_v46, %v3789_v45  ;;  %v4932_v51 = vld [vmem:[%s8292_s10 + $0x170] sm:$0xff] }
 0x340   : > { %5773 = vmatprep.subr.bf16.mxu0 %v5996_v15  ;;  %v5810_v54 = vpack.c.bf16 %v4933_v52, %v4932_v51 }
 0x343   : > { %5775 = vmatpush3.bf16.msra.mxu0 %v5774_v55  ;;  %v3793_v55 = vld [vmem:[%s8292_s10 + $0x40] sm:$0xff] }
 0x344   : > { %5776 = vmatprep.subr.bf16.mxu0 %v5996_v15  ;;  %v5768_v59 = vpack.c.bf16 %v3794_v56, %v3793_v55 }
 0x347   : > { %5778 = vmatpush3.bf16.msra.mxu0 %v5777_v61  ;;  %v5786_v61 = vpack.c.bf16 %v4916_v60, %v4915_v33 }
 0x348   : > { %5779 = vmatprep.subr.bf16.mxu0 %v5996_v15 }
 0x34b   : > { %5781 = vmatpush3.bf16.msra.mxu0 %v5780_v1 }
 0x34c   : > { %5782 = vmatprep.subr.bf16.mxu0 %v5996_v15 }
 0x34f   : > { %5784 = vmatpush3.bf16.msra.mxu0 %v5783_v8  ;;  %v4922_v8 = vld [vmem:[%s8292_s10 + $0x128] sm:$0xff] }
 0x350   : > { %5800 = vmatprep.subr.bf16.mxu0 %v5996_v15 }
 0x3be   : > { %v3464_v9 = vpop.f32.mrb[8].mxu1 }
 0x3bf   : > { %v3466_v10 = vpop.f32.mrb[9].mxu1 }
 0x3c0   : > { %v4923_v10 = vld [vmem:[%s8292_s10 + $0x130] sm:$0xff] }
 0x3c1   : > { %v3391_v11 = vpop.f32.mrb[6].mxu0 }
 0x3c2   : > { %v3465_v12 = vadd.f32 %v3464_v9, %v3391_v11  ;;  %v3393_v13 = vpop.f32.mrb[7].mxu0  ;;  %v5795_v9 = vpack.c.bf16 %v4922_v8, %v4921_v7  ;;  %v4924_v11 = vld [vmem:[%s8292_s10 + $0x138] sm:$0xff] }
 0x3e6   : > { %v3665_v14 = vpop.f32.mrb[10].mxu1 }
 0x3e7   : > { %v3667_v16 = vpop.f32.mrb[11].mxu1 }
 0x3e8   : > { %v4221_v16 = vld [vmem:[%s8294_s12 + $0x8] sm:$0xff] }
 0x3e9   : > { %v3564_v17 = vpop.f32.mrb[8].mxu0 }
 0x3ea   : > { %v3568_v18 = vadd.f32 %v3564_v17, %v3465_v12  ;;  %v3566_v19 = vpop.f32.mrb[9].mxu0  ;;  %v5798_v12 = vpack.c.bf16 %v4924_v11, %v4923_v10  ;;  %v4222_v17 = vld [vmem:[%s8294_s12 + $0x10] sm:$0xff] }
 0x3eb   : > { %v4223_v19 = vld [vmem:[%s8294_s12 + $0x18] sm:$0xff] }
 0x3ec   : > { %v3669_v20 = vadd.f32 %v3665_v14, %v3568_v18  ;;  %v4220_v14 = vld [vmem:[%s8294_s12] sm:$0xff] }
 0x3ed   : > { %v5816_v18 = vpack.c.bf16 %v4221_v16, %v4220_v14 }
 0x411   : > { %v3766_v22 = vpop.f32.mrb[10].mxu0 }
 0x412   : > { %v3770_v24 = vadd.f32 %v3766_v22, %v3669_v20  ;;  %v3768_v25 = vpop.f32.mrb[11].mxu0  ;;  %v5819_v20 = vpack.c.bf16 %v4223_v19, %v4222_v17  ;;  %v4224_v22 = vld [vmem:[%s8294_s12 + $0x20] sm:$0xff] }
 0x414   : > { %v3778_v26 = vadd.f32 %v4891_v23, %v3770_v24 }
 0x416   : > { %v3779_v27 = vmax.f32 %v3778_v26, 0.0 }
 0x418   : > { %3783 = vst.msk [vmem:[#allocation5 + $0x2] sm:$0xf] %vm3782_vm3, %v3779_v27 }
 0x41f   : > { %v3795_v38 = vld [vmem:[#allocation5 + $0x1] sm:$0xf] }
 0x420   : > { %v3953_v39 = vld [vmem:[#allocation5 + $0x2] sm:$0xf]  ;;  %5027 = vmatmul.mubr.msk.f32.vlgmr.msra.gmra.mrb[12].mxu1 %vm3780_vm1, %v3795_v38  ;;  %v4938_v38 = vld [vmem:[%s8295_s13] ss:$0 sm:$0xff] }
 0x421   : > { %5073 = vmatmul.mubr.msk.f32.vlgmr.msra.gmra.mrb[12].mxu0 %vm3780_vm1, %v3953_v39  ;;  %5757 = vmatpush3.bf16.msra.mxu1 %v5756_v32  ;;  %v3784_v0 = vld [vmem:[#allocation5] sm:$0xf]  ;;  %v4125_v1 = vld [vmem:[#allocation5 + $0x4] sm:$0xf] }
 0x422   : > { %5802 = vmatpush3.bf16.msra.mxu0 %v5801_v34  ;;  %5758 = vmatprep.subr.bf16.mxu1 %v5996_v15  ;;  %v4039_v13 = vld [vmem:[#allocation5 + $0x3] sm:$0xf] }
 0x423   : > { %5803 = vmatprep.subr.bf16.mxu0 %v5996_v15  ;;  %5049 = vmatprep.mubr.msk.f32.mxu1 %vm5997_vm2, %v5994_v5 }
 0x424   : > { %5118 = vmatprep.mubr.msk.f32.mxu0 %vm5997_vm2, %v5994_v5 }
 0x425   : > { %5760 = vmatpush3.bf16.msra.mxu1 %v5759_v40 }
 0x426   : > { %5805 = vmatpush3.bf16.msra.mxu0 %v5804_v43  ;;  %5761 = vmatprep.subr.bf16.mxu1 %v5996_v15 }
 0x427   : > { %5806 = vmatprep.subr.bf16.mxu0 %v5996_v15 }
 0x429   : > { %5763 = vmatpush3.bf16.msra.mxu1 %v5762_v41 }
 0x42a   : > { %5808 = vmatpush3.bf16.msra.mxu0 %v5807_v49  ;;  %5764 = vmatprep.subr.bf16.mxu1 %v5996_v15 }
 0x42b   : > { %5809 = vmatprep.subr.bf16.mxu0 %v5996_v15 }
 0x42d   : > { %5766 = vmatpush3.bf16.msra.mxu1 %v5765_v53 }
 0x42e   : > { %5811 = vmatpush3.bf16.msra.mxu0 %v5810_v54  ;;  %5767 = vmatprep.subr.bf16.mxu1 %v5996_v15 }
 0x42f   : > { %5812 = vmatprep.subr.bf16.mxu0 %v5996_v15 }
 0x431   : > { %5769 = vmatpush3.bf16.msra.mxu1 %v5768_v59 }
 0x432   : > { %5814 = vmatpush3.bf16.msra.mxu0 %v5813_v42  ;;  %5785 = vmatprep.subr.bf16.mxu1 %v5996_v15 }
 0x434   : > { %5050 = vmatmul.mubr.msk.f32.vlgmr.msra.gmra.mrb[14].mxu1 %vm3780_vm1, %v3784_v0 }
 0x435   : > { %5119 = vmatmul.mubr.msk.f32.vlgmr.msra.gmra.mrb[14].mxu0 %vm3780_vm1, %v4125_v1  ;;  %5787 = vmatpush3.bf16.msra.mxu1 %v5786_v61 }
 0x436   : > { %5095 = vmatprep.mubr.msk.f32.mxu1 %vm5997_vm2, %v5994_v5  ;;  %5788 = vmatprep.subr.bf16.mxu1 %v5996_v15 }
 0x439   : > { %5790 = vmatpush3.bf16.msra.mxu1 %v5789_v2 }
 0x43a   : > { %5791 = vmatprep.subr.bf16.mxu1 %v5996_v15 }
 0x43d   : > { %5793 = vmatpush3.bf16.msra.mxu1 %v5792_v6 }
 0x43e   : > { %5794 = vmatprep.subr.bf16.mxu1 %v5996_v15 }
 0x441   : > { %5796 = vmatpush3.bf16.msra.mxu1 %v5795_v9 }
 0x442   : > { %5797 = vmatprep.subr.bf16.mxu1 %v5996_v15 }
 0x445   : > { %5799 = vmatpush3.bf16.msra.mxu1 %v5798_v12 }
 0x446   : > { %5815 = vmatprep.subr.bf16.mxu1 %v5996_v15 }
 0x448   : > { %5096 = vmatmul.mubr.msk.f32.vlgmr.msra.gmra.mrb[16].mxu1 %vm3780_vm1, %v4039_v13 }
 0x449   : > { %5131 = vmatprep.mubr.msk.f32.mxu1 %vm5997_vm2, %v5994_v5  ;;  %5817 = vmatpush3.bf16.msra.mxu1 %v5816_v18 }
 0x44a   : > { %5818 = vmatprep.subr.bf16.mxu1 %v5996_v15 }
 0x44d   : > { %5820 = vmatpush3.bf16.msra.mxu1 %v5819_v20 }
 0x44e   : > { %5129 = vmatprep.subr.mxu1 %v5994_v5 }
 0x451   : > { %5130 = vmatpush3.msra.mxu1 %v4224_v22 }
 0x4f3   : > { %v3876_v23 = vpop.f32.mrb[12].mxu1 }
 0x4f4   : > { %v4034_v24 = vpop.f32.mrb[12].mxu0  ;;  %v5028_v25 = vpop.f32.mrb[13].mxu1 }
 0x4f5   : > { %v5074_v26 = vpop.f32.mrb[13].mxu0 }
 0x507   : > { %v3949_v27 = vpop.f32.mrb[14].mxu1 }
 0x508   : > { %v4206_v28 = vpop.f32.mrb[14].mxu0  ;;  %v3950_v29 = vadd.f32 %v3949_v27, %v3876_v23  ;;  %v5051_v30 = vpop.f32.mrb[15].mxu1 }
 0x509   : > { %v5120_v31 = vpop.f32.mrb[15].mxu0 }
 0x50a   : > { %v4038_v15 = vadd.f32 %v4034_v24, %v3950_v29 }
 0x51b   : > { %v4120_v32 = vpop.f32.mrb[16].mxu1 }
 0x51c   : > { %v4124_v34 = vadd.f32 %v4120_v32, %v4038_v15  ;;  %v5097_v5 = vpop.f32.mrb[17].mxu1 }
 0x51e   : > { %v4210_v35 = vadd.f32 %v4206_v28, %v4124_v34 }
 0x520   : > { %v4218_v36 = vadd.f32 %v4937_v44, %v4210_v35 }
 0x522   : > { %v4219_v37 = vmax.f32 %v4218_v36, 0.0 }
 0x524   : > { %5132 = vmatmul.mubr.msk.f32.vlgmr.msra.gmra.mrb[18].mxu1 %vm4232_vm4, %v4219_v37 }
 0x5f7   : > { %v4302_v39 = vpop.f32.mrb[18].mxu1 }
 0x5f8   : > { %v4303_v40 = vadd.f32 %v4938_v38, %v4302_v39  ;;  %v5133_v43 = vpop.f32.mrb[19].mxu1 }
 0x5fa   : > { %4307 = vst.msk [vmem:[%s460_s24] sm:$0xf] %vm4306_vm5, %v4303_v40 }
 0x5fb   : > { %5943 = shalt.err (!%p5940_p3)
}
 0x5fc   : > { %s5944_s19 = scalar_lea.hbm %s8240_s20, 64  ;;  %s5948_s24 = scalar_lea.hbm %s8296_s14, 128 }
 0x5fd   : > { %p5945_p4 = scmp.ne.s32.totalorder %s8240_s20, %s5944_s19  ;;  %p5949_p9 = scmp.lt.u32.totalorder %s8240_s20, %s8296_s14 }
 0x5fe   : > { %p5950_p10 = scmp.lt.u32.totalorder %s5948_s24, %s5944_s19  ;;  %p5952_p12 = scmp.lt.u32.totalorder %s5944_s19, %s8240_s20 }
 0x5ff   : > { %p5946_p7 = pnand %p5945_p4, %p6112_p5 }
 0x600   : > { %p5951_p11 = por %p5950_p10, %p5949_p9 }
 0x601   : > { %p5947_p8 = pneg %p5946_p7 }
 0x602   : > { %p5953_p13 = por %p5952_p12, %p5951_p11 }
 0x604   : > { %p5954_p0 = pnand %p5953_p13, %p5947_p8 }
 0x606   : > { %5957 = shalt.err (!%p5954_p0)
}
 0x607   : > { %5887 = dma.vmem_to_hbm [thread:$0]  (%p6112_p5), %s8242_s15, 64, %s8240_s20, %s4309_s21  }
 0x608 PF: > { %p5893_p1 = scmp.ge.s32.totalorder %s5992_s16, 2  ;;  %s4334_s17 = sand.u32 1, %s5980_s29  }
 0x609   : > { %s4335_s22 = scalar_lea.sflag [#allocation7], %s4334_s17 }
 0x60a   : > { %p5890_p2 = pnand %p5893_p1, %p6116_p6 }
 0x60c   : > { %5975 = dma.done.wait (!%p5890_p2), %s4335_s22, 64  }
 0x60d   : > { %5977 = vsyncadd (!%p5890_p2), %s4335_s22, 4294967232  ;;  %s8310_s16 = sld [smem:[#allocation10_spill]]  ;;  %s8311_s26 = sld [smem:[#allocation9_spill]] }
 0x60e   : > { %s8312_s15 = sld [smem:[#allocation11_spill]]  ;;  %s8313_s29 = smov %s5984_s30 }
 0x613   : > { %p24_p3 = scmp.ge.s32.totalorder %s8310_s16, 4   ;;  %s8314_s30 = smov %s8311_s26 }
 0x615   :  { %26 = sbr.rel (!%p24_p3) target bundleno = 5 (0x5), region = 139 }
 0x61c   :  { %4340 = vsyncpa [#allocation7], 1 }
 0x61d   :  { %4342 = vsyncpa [#allocation7 + $0x1], 1 }

</bundles_post_ra>
